<compile_context>
chip_gen: v5e
topology: v5e:2x2
jax: 0.10.0
libtpu: 0.0.40
codegen_flags: <defaults>
</compile_context>

<pallas_src>
import functools

import jax
import jax.numpy as jnp
from jax import lax
from jax.experimental import pallas as pl
from jax.experimental.pallas import tpu as pltpu


_VMEM = pl.BlockSpec(memory_space=pltpu.MemorySpace.VMEM)


# ----------------------------- Pallas kernels ------------------------------

def _bilstm_kernel(x_ref, wih_ref, whh_ref, b_ref, out_ref, gin_ref):
    """Fused bidirectional LSTM layer (PyTorch gate order i,f,g,o per direction).

    x_ref:   (T, Fin)  input sequence
    wih_ref: (Fin, 8H) [fwd i,f,g,o | rev i,f,g,o] input->gate weights
    whh_ref: (2H, 8H)  block-diagonal hidden->gate weights (fwd block, rev block)
    b_ref:   (1, 8H)   folded b_ih + b_hh for both directions
    out_ref: (T, 2H)   [:, :H] forward hidden, [:, H:] reverse hidden
    gin_ref: (T, 8H)   VMEM scratch for the hoisted input projection
    """
    T = x_ref.shape[0]
    H = whh_ref.shape[0] // 2

    # Hoisted input projection: one well-shaped bf16 MXU matmul instead of T
    # tiny (1, Fin) matmuls on the serial critical path.
    gin_ref[...] = (
        jnp.dot(x_ref[...].astype(jnp.bfloat16),
                wih_ref[...].astype(jnp.bfloat16),
                preferred_element_type=jnp.float32)
        + b_ref[...])

    whh = whh_ref[...]

    def dir_update(g, c_dir):
        i = jax.nn.sigmoid(g[:, 0 * H:1 * H])
        f = jax.nn.sigmoid(g[:, 1 * H:2 * H])
        gg = jnp.tanh(g[:, 2 * H:3 * H])
        o = jax.nn.sigmoid(g[:, 3 * H:4 * H])
        c_new = f * c_dir + i * gg
        return o * jnp.tanh(c_new), c_new

    def step(t, carry):
        h, c = carry                                           # (1, 2H) each [fwd|rev]
        rt = T - 1 - t
        # Single block-diagonal MXU push for both directions' recurrence.
        rec = jnp.dot(h, whh, preferred_element_type=jnp.float32)       # (1, 8H)
        g_f = gin_ref[pl.ds(t, 1), 0:4 * H] + rec[:, 0:4 * H]
        g_r = gin_ref[pl.ds(rt, 1), 4 * H:8 * H] + rec[:, 4 * H:8 * H]
        h_f, c_f = dir_update(g_f, c[:, 0:H])
        h_r, c_r = dir_update(g_r, c[:, H:2 * H])
        # Stores go to the VMEM-resident output block; HBM writeback is one slab.
        out_ref[pl.ds(t, 1), 0:H] = h_f
        out_ref[pl.ds(rt, 1), H:2 * H] = h_r
        return (jnp.concatenate([h_f, h_r], axis=1),
                jnp.concatenate([c_f, c_r], axis=1))

    z = jnp.zeros((1, 2 * H), jnp.float32)
    # T is static and small; full unroll gives the scheduler cross-step visibility.
    lax.fori_loop(0, T, step, (z, z), unroll=True)


def _tag_head_kernel(h_ref, a_ref, w1_ref, b1_ref, w2_ref, b2_ref, out_ref,
                     *, target_size):
    """Fused TAGConv -> (dropout=identity) -> TAGConv -> log_softmax.

    h_ref:  (N, 2H)         bi-LSTM output
    a_ref:  (N, N)          dense normalized adjacency D^-1/2 A D^-1/2
    w1_ref: (K+1, 2H, 4H)   tag1 hop weights, b1_ref: (1, 4H)
    w2_ref: (K+1, 4H, P)    tag2 hop weights zero-padded to P=128 lanes,
    b2_ref: (1, P)
    out_ref:(N, P)          row-wise log_softmax over the first `target_size` cols
    """
    a = a_ref[...].astype(jnp.bfloat16)

    def tagconv(x, w_ref, b):
        # out = sum_{k=0..K} (A_hat^k x) @ W_k + b   (bf16 operands, f32 accumulate)
        xk = x.astype(jnp.bfloat16)
        acc = jnp.dot(xk, w_ref[0].astype(jnp.bfloat16),
                      preferred_element_type=jnp.float32)
        for k in range(1, w_ref.shape[0]):          # static unroll over K hops
            xk = jnp.dot(a, xk, preferred_element_type=jnp.float32).astype(jnp.bfloat16)
            acc = acc + jnp.dot(xk, w_ref[k].astype(jnp.bfloat16),
                                preferred_element_type=jnp.float32)
        return acc + b

    h1 = tagconv(h_ref[...], w1_ref, b1_ref[...])   # (N, 4H), stays in VMEM/vregs
    # self.dropout: identity (eval/inference semantics)
    h2 = tagconv(h1, w2_ref, b2_ref[...])           # (N, P) lane-dense

    # Masked, numerically stable log_softmax over the real (first target_size) cols.
    col = lax.broadcasted_iota(jnp.int32, h2.shape, 1)
    logits = jnp.where(col < target_size, h2, -jnp.inf)
    m = jnp.max(logits, axis=1, keepdims=True)
    s = logits - m
    lse = jnp.log(jnp.sum(jnp.exp(s), axis=1, keepdims=True))
    out_ref[...] = s - lse


# ------------------------------ thin wrappers -------------------------------

def pack_bilstm(w_ih_f, w_hh_f, b_f, w_ih_r, w_hh_r, b_r):
    """Pack per-direction weights into the fused layout used by _bilstm_kernel."""
    H = w_hh_f.shape[0]
    w_ih = jnp.concatenate([w_ih_f, w_ih_r], axis=1)                     # (Fin, 8H)
    w_hh = jnp.zeros((2 * H, 8 * H), jnp.float32)
    w_hh = w_hh.at[:H, :4 * H].set(w_hh_f).at[H:, 4 * H:].set(w_hh_r)    # block-diag
    b = jnp.concatenate([b_f, b_r]).reshape(1, -1)                       # (1, 8H)
    return w_ih, w_hh, b


def bilstm_layer(x_seq, w_ih, w_hh, b):
    T = x_seq.shape[0]
    H = w_hh.shape[0] // 2
    return pl.pallas_call(
        _bilstm_kernel,
        out_shape=jax.ShapeDtypeStruct((T, 2 * H), jnp.float32),
        in_specs=[_VMEM, _VMEM, _VMEM, _VMEM],
        out_specs=_VMEM,
        scratch_shapes=[pltpu.VMEM((T, 8 * H), jnp.float32)],
    )(x_seq, w_ih, w_hh, b)


def tag_head(h, a_hat, w1, b1, w2, b2):
    """Fused tag1 -> tag2 -> log_softmax; returns (N, target_size) log-probs."""
    N = h.shape[0]
    target_size = w2.shape[-1]
    pad_to = ((target_size + 127) // 128) * 128          # lane-dense output width
    pad = pad_to - target_size
    w2p = jnp.pad(w2, ((0, 0), (0, 0), (0, pad)))
    b2p = jnp.pad(b2.reshape(1, -1), ((0, 0), (0, pad)))
    out = pl.pallas_call(
        functools.partial(_tag_head_kernel, target_size=target_size),
        out_shape=jax.ShapeDtypeStruct((N, pad_to), jnp.float32),
        in_specs=[_VMEM] * 6,
        out_specs=_VMEM,
    )(h, a_hat, w1, b1.reshape(1, -1), w2p, b2p)
    return out[:, :target_size]


# --------------------------------- glue -------------------------------------

def gcn_norm_dense(edge_index, num_nodes):
    """Dense D^{-1/2} A D^{-1/2} as used by TAGConv (no self loops).

    Built once per graph (depends only on edge_index), outside the jitted forward.
    """
    row, col = edge_index[0], edge_index[1]
    w = jnp.ones(row.shape[0], jnp.float32)
    deg = jnp.zeros((num_nodes,), jnp.float32).at[col].add(w)
    dinv = jnp.where(deg > 0, lax.rsqrt(jnp.maximum(deg, 1e-30)), 0.0)
    vals = dinv[row] * w * dinv[col]
    # aggregation target is col:  out[col] += norm * x[row]
    return jnp.zeros((num_nodes, num_nodes), jnp.float32).at[col, row].add(vals)


def init_params(key, emb, hidden, num_layers, target_size, K=3):
    keys = iter(jax.random.split(key, 4 * num_layers * 3 + 8))
    lstm = []
    for l in range(num_layers):
        in_size = emb if l == 0 else 2 * hidden
        dirs = []
        for _d in range(2):  # forward / reverse
            w_ih = 0.1 * jax.random.normal(next(keys), (in_size, 4 * hidden), jnp.float32)
            w_hh = 0.1 * jax.random.normal(next(keys), (hidden, 4 * hidden), jnp.float32)
            b = 0.1 * jax.random.normal(next(keys), (4 * hidden,), jnp.float32)  # b_ih + b_hh folded
            dirs.append((w_ih, w_hh, b))
        lstm.append(dirs)
    return {
        "lstm": lstm,
        "tag1_w": 0.1 * jax.random.normal(next(keys), (K + 1, 2 * hidden, 4 * hidden), jnp.float32),
        "tag1_b": 0.1 * jax.random.normal(next(keys), (4 * hidden,), jnp.float32),
        "tag2_w": 0.1 * jax.random.normal(next(keys), (K + 1, 4 * hidden, target_size), jnp.float32),
        "tag2_b": 0.1 * jax.random.normal(next(keys), (target_size,), jnp.float32),
    }


def lstm_tag_net_forward(params, x, a_hat):
    """x: (N, emb) f32, a_hat: (N, N) f32  ->  (N, target_size) log-probs."""
    h = x
    for (w_ih_f, w_hh_f, b_f), (w_ih_r, w_hh_r, b_r) in params["lstm"]:
        w_ih, w_hh, b = pack_bilstm(w_ih_f, w_hh_f, b_f, w_ih_r, w_hh_r, b_r)
        h = bilstm_layer(h, w_ih, w_hh, b)         # (N, 2H)
        # inter-layer LSTM dropout: identity (eval/inference semantics)
    return tag_head(h, a_hat, params["tag1_w"], params["tag1_b"],
                    params["tag2_w"], params["tag2_b"])


# --------------------------------- main --------------------------------------

if __name__ == "__main__":
    N, EMB, HID, LAYERS, TGT = 8, 16, 32, 2, 2

    key = jax.random.PRNGKey(0)
    kx, kp = jax.random.split(key)
    x = jax.random.normal(kx, (N, EMB), jnp.float32)

    # bidirectional ring graph: edges i -> (i+1)%N and (i+1)%N -> i
    src = jnp.arange(N, dtype=jnp.int32)
    dst = (src + 1) % N
    edge_index = jnp.stack(
        [jnp.concatenate([src, dst]), jnp.concatenate([dst, src])]
    ).astype(jnp.int32)

    params = init_params(kp, EMB, HID, LAYERS, TGT)

    # A_hat depends only on the graph: build once, reuse across forward calls.
    a_hat = gcn_norm_dense(edge_index, N)

    fwd = jax.jit(functools.partial(lstm_tag_net_forward, params))
    out = fwd(x, a_hat)
    jax.block_until_ready(out)

    assert out.shape == (N, TGT)
    assert bool(jnp.all(jnp.isfinite(out)))
    print("KERNEL_OK")
</pallas_src>

<mosaic_0001>
module attributes {stable_mosaic.version = 11 : i64} {
  func.func @_bilstm_kernel(%arg0: memref<8x64xf32, #tpu.memory_space<vmem>>, %arg1: memref<64x256xf32, #tpu.memory_space<vmem>>, %arg2: memref<64x256xf32, #tpu.memory_space<vmem>>, %arg3: memref<1x256xf32, #tpu.memory_space<vmem>>, %arg4: memref<8x64xf32, #tpu.memory_space<vmem>>, %arg5: memref<8x256xf32, #tpu.memory_space<vmem>>) attributes {dimension_semantics = [], scalar_prefetch = 0 : i64, scratch_operands = 1 : i64, tpu.core_type = #tpu.core_type<tc>} {
    %c0 = arith.constant 0 : index
    %c0_0 = arith.constant 0 : index
    %0 = vector.load %arg0[%c0, %c0_0] : memref<8x64xf32, #tpu.memory_space<vmem>>, vector<8x64xf32>
    %1 = arith.truncf %0 : vector<8x64xf32> to vector<8x64xbf16>
    %c0_1 = arith.constant 0 : index
    %c0_2 = arith.constant 0 : index
    %2 = vector.load %arg1[%c0_1, %c0_2] : memref<64x256xf32, #tpu.memory_space<vmem>>, vector<64x256xf32>
    %3 = arith.truncf %2 : vector<64x256xf32> to vector<64x256xbf16>
    %cst = arith.constant dense<0.000000e+00> : vector<8x256xf32>
    %4 = tpu.matmul %1, %3, %cst {dimension_numbers = #tpu.dot_dimension_numbers<[1], [0], [0], [1], [0, 0, 1, 1], [], []>} : vector<8x64xbf16>, vector<64x256xbf16>, vector<8x256xf32> -> vector<8x256xf32>
    %c0_3 = arith.constant 0 : index
    %c0_4 = arith.constant 0 : index
    %5 = vector.load %arg3[%c0_3, %c0_4] : memref<1x256xf32, #tpu.memory_space<vmem>>, vector<1x256xf32>
    %6 = vector.broadcast %5 : vector<1x256xf32> to vector<8x256xf32>
    %7 = arith.addf %4, %6 : vector<8x256xf32>
    %c0_5 = arith.constant 0 : index
    %c0_6 = arith.constant 0 : index
    %8 = vector.load %arg5[%c0_5, %c0_6] : memref<8x256xf32, #tpu.memory_space<vmem>>, vector<8x256xf32>
    tpu.vector_store %arg5[%c0_5, %c0_6], %7 {strides = array<i32>} : memref<8x256xf32, #tpu.memory_space<vmem>>, vector<8x256xf32>,
    %c0_7 = arith.constant 0 : index
    %c0_8 = arith.constant 0 : index
    %9 = vector.load %arg2[%c0_7, %c0_8] : memref<64x256xf32, #tpu.memory_space<vmem>>, vector<64x256xf32>
    %cst_9 = arith.constant 0.000000e+00 : f32
    %10 = vector.broadcast %cst_9 : f32 to vector<1x64xf32>
    %c0_i32 = arith.constant 0 : i32
    %c7_i32 = arith.constant 7 : i32
    %11 = arith.subi %c7_i32, %c0_i32 : i32
    %cst_10 = arith.constant dense<0.000000e+00> : vector<1x256xf32>
    %12 = tpu.matmul %10, %9, %cst_10 {dimension_numbers = #tpu.dot_dimension_numbers<[1], [0], [0], [1], [0, 0, 1, 1], [], []>} : vector<1x64xf32>, vector<64x256xf32>, vector<1x256xf32> -> vector<1x256xf32>
    %13 = arith.index_cast %c0_i32 : i32 to index
    %c0_11 = arith.constant 0 : index
    %14 = vector.load %arg5[%13, %c0_11] : memref<8x256xf32, #tpu.memory_space<vmem>>, vector<1x128xf32>
    %15 = vector.extract_strided_slice %12 {offsets = [0, 0], sizes = [1, 128], strides = [1, 1]} : vector<1x256xf32> to vector<1x128xf32>
    %16 = arith.addf %14, %15 : vector<1x128xf32>
    %17 = arith.index_cast %11 : i32 to index
    %c128 = arith.constant 128 : index
    %18 = vector.load %arg5[%17, %c128] : memref<8x256xf32, #tpu.memory_space<vmem>>, vector<1x128xf32>
    %19 = vector.extract_strided_slice %12 {offsets = [0, 128], sizes = [1, 128], strides = [1, 1]} : vector<1x256xf32> to vector<1x128xf32>
    %20 = arith.addf %18, %19 : vector<1x128xf32>
    %21 = vector.extract_strided_slice %10 {offsets = [0, 0], sizes = [1, 32], strides = [1, 1]} : vector<1x64xf32> to vector<1x32xf32>
    %22 = vector.extract_strided_slice %16 {offsets = [0, 0], sizes = [1, 32], strides = [1, 1]} : vector<1x128xf32> to vector<1x32xf32>
    %23 = arith.negf %22 : vector<1x32xf32>
    %24 = math.exp %23 : vector<1x32xf32>
    %cst_12 = arith.constant 1.000000e+00 : f32
    %25 = vector.broadcast %cst_12 : f32 to vector<1x32xf32>
    %26 = arith.addf %25, %24 : vector<1x32xf32>
    %27 = arith.divf %25, %26 : vector<1x32xf32>
    %28 = vector.extract_strided_slice %16 {offsets = [0, 32], sizes = [1, 32], strides = [1, 1]} : vector<1x128xf32> to vector<1x32xf32>
    %29 = arith.negf %28 : vector<1x32xf32>
    %30 = math.exp %29 : vector<1x32xf32>
    %cst_13 = arith.constant 1.000000e+00 : f32
    %31 = vector.broadcast %cst_13 : f32 to vector<1x32xf32>
    %32 = arith.addf %31, %30 : vector<1x32xf32>
    %33 = arith.divf %31, %32 : vector<1x32xf32>
    %34 = vector.extract_strided_slice %16 {offsets = [0, 64], sizes = [1, 32], strides = [1, 1]} : vector<1x128xf32> to vector<1x32xf32>
    %35 = math.tanh %34 : vector<1x32xf32>
    %36 = vector.extract_strided_slice %16 {offsets = [0, 96], sizes = [1, 32], strides = [1, 1]} : vector<1x128xf32> to vector<1x32xf32>
    %37 = arith.negf %36 : vector<1x32xf32>
    %38 = math.exp %37 : vector<1x32xf32>
    %cst_14 = arith.constant 1.000000e+00 : f32
    %39 = vector.broadcast %cst_14 : f32 to vector<1x32xf32>
    %40 = arith.addf %39, %38 : vector<1x32xf32>
    %41 = arith.divf %39, %40 : vector<1x32xf32>
    %42 = arith.mulf %33, %21 : vector<1x32xf32>
    %43 = arith.mulf %27, %35 : vector<1x32xf32>
    %44 = arith.addf %42, %43 : vector<1x32xf32>
    %45 = math.tanh %44 : vector<1x32xf32>
    %46 = arith.mulf %41, %45 : vector<1x32xf32>
    %47 = vector.extract_strided_slice %10 {offsets = [0, 32], sizes = [1, 32], strides = [1, 1]} : vector<1x64xf32> to vector<1x32xf32>
    %48 = vector.extract_strided_slice %20 {offsets = [0, 0], sizes = [1, 32], strides = [1, 1]} : vector<1x128xf32> to vector<1x32xf32>
    %49 = arith.negf %48 : vector<1x32xf32>
    %50 = math.exp %49 : vector<1x32xf32>
    %cst_15 = arith.constant 1.000000e+00 : f32
    %51 = vector.broadcast %cst_15 : f32 to vector<1x32xf32>
    %52 = arith.addf %51, %50 : vector<1x32xf32>
    %53 = arith.divf %51, %52 : vector<1x32xf32>
    %54 = vector.extract_strided_slice %20 {offsets = [0, 32], sizes = [1, 32], strides = [1, 1]} : vector<1x128xf32> to vector<1x32xf32>
    %55 = arith.negf %54 : vector<1x32xf32>
    %56 = math.exp %55 : vector<1x32xf32>
    %cst_16 = arith.constant 1.000000e+00 : f32
    %57 = vector.broadcast %cst_16 : f32 to vector<1x32xf32>
    %58 = arith.addf %57, %56 : vector<1x32xf32>
    %59 = arith.divf %57, %58 : vector<1x32xf32>
    %60 = vector.extract_strided_slice %20 {offsets = [0, 64], sizes = [1, 32], strides = [1, 1]} : vector<1x128xf32> to vector<1x32xf32>
    %61 = math.tanh %60 : vector<1x32xf32>
    %62 = vector.extract_strided_slice %20 {offsets = [0, 96], sizes = [1, 32], strides = [1, 1]} : vector<1x128xf32> to vector<1x32xf32>
    %63 = arith.negf %62 : vector<1x32xf32>
    %64 = math.exp %63 : vector<1x32xf32>
    %cst_17 = arith.constant 1.000000e+00 : f32
    %65 = vector.broadcast %cst_17 : f32 to vector<1x32xf32>
    %66 = arith.addf %65, %64 : vector<1x32xf32>
    %67 = arith.divf %65, %66 : vector<1x32xf32>
    %68 = arith.mulf %59, %47 : vector<1x32xf32>
    %69 = arith.mulf %53, %61 : vector<1x32xf32>
    %70 = arith.addf %68, %69 : vector<1x32xf32>
    %71 = math.tanh %70 : vector<1x32xf32>
    %72 = arith.mulf %67, %71 : vector<1x32xf32>
    %73 = arith.index_cast %c0_i32 : i32 to index
    %c0_18 = arith.constant 0 : index
    %74 = vector.load %arg4[%73, %c0_18] : memref<8x64xf32, #tpu.memory_space<vmem>>, vector<1x32xf32>
    tpu.vector_store %arg4[%73, %c0_18], %46 {strides = array<i32>} : memref<8x64xf32, #tpu.memory_space<vmem>>, vector<1x32xf32>,
    %75 = arith.index_cast %11 : i32 to index
    %c32 = arith.constant 32 : index
    %76 = vector.load %arg4[%75, %c32] : memref<8x64xf32, #tpu.memory_space<vmem>>, vector<1x32xf32>
    tpu.vector_store %arg4[%75, %c32], %72 {strides = array<i32>} : memref<8x64xf32, #tpu.memory_space<vmem>>, vector<1x32xf32>,
    %77 = tpu.concatenate %46, %72 in 1 : vector<1x32xf32>, vector<1x32xf32> -> vector<1x64xf32>
    %78 = tpu.concatenate %44, %70 in 1 : vector<1x32xf32>, vector<1x32xf32> -> vector<1x64xf32>
    %c1_i32 = arith.constant 1 : i32
    %c7_i32_19 = arith.constant 7 : i32
    %79 = arith.subi %c7_i32_19, %c1_i32 : i32
    %cst_20 = arith.constant dense<0.000000e+00> : vector<1x256xf32>
    %80 = tpu.matmul %77, %9, %cst_20 {dimension_numbers = #tpu.dot_dimension_numbers<[1], [0], [0], [1], [0, 0, 1, 1], [], []>} : vector<1x64xf32>, vector<64x256xf32>, vector<1x256xf32> -> vector<1x256xf32>
    %81 = arith.index_cast %c1_i32 : i32 to index
    %c0_21 = arith.constant 0 : index
    %82 = vector.load %arg5[%81, %c0_21] : memref<8x256xf32, #tpu.memory_space<vmem>>, vector<1x128xf32>
    %83 = vector.extract_strided_slice %80 {offsets = [0, 0], sizes = [1, 128], strides = [1, 1]} : vector<1x256xf32> to vector<1x128xf32>
    %84 = arith.addf %82, %83 : vector<1x128xf32>
    %85 = arith.index_cast %79 : i32 to index
    %c128_22 = arith.constant 128 : index
    %86 = vector.load %arg5[%85, %c128_22] : memref<8x256xf32, #tpu.memory_space<vmem>>, vector<1x128xf32>
    %87 = vector.extract_strided_slice %80 {offsets = [0, 128], sizes = [1, 128], strides = [1, 1]} : vector<1x256xf32> to vector<1x128xf32>
    %88 = arith.addf %86, %87 : vector<1x128xf32>
    %89 = vector.extract_strided_slice %78 {offsets = [0, 0], sizes = [1, 32], strides = [1, 1]} : vector<1x64xf32> to vector<1x32xf32>
    %90 = vector.extract_strided_slice %84 {offsets = [0, 0], sizes = [1, 32], strides = [1, 1]} : vector<1x128xf32> to vector<1x32xf32>
    %91 = arith.negf %90 : vector<1x32xf32>
    %92 = math.exp %91 : vector<1x32xf32>
    %cst_23 = arith.constant 1.000000e+00 : f32
    %93 = vector.broadcast %cst_23 : f32 to vector<1x32xf32>
    %94 = arith.addf %93, %92 : vector<1x32xf32>
    %95 = arith.divf %93, %94 : vector<1x32xf32>
    %96 = vector.extract_strided_slice %84 {offsets = [0, 32], sizes = [1, 32], strides = [1, 1]} : vector<1x128xf32> to vector<1x32xf32>
    %97 = arith.negf %96 : vector<1x32xf32>
    %98 = math.exp %97 : vector<1x32xf32>
    %cst_24 = arith.constant 1.000000e+00 : f32
    %99 = vector.broadcast %cst_24 : f32 to vector<1x32xf32>
    %100 = arith.addf %99, %98 : vector<1x32xf32>
    %101 = arith.divf %99, %100 : vector<1x32xf32>
    %102 = vector.extract_strided_slice %84 {offsets = [0, 64], sizes = [1, 32], strides = [1, 1]} : vector<1x128xf32> to vector<1x32xf32>
    %103 = math.tanh %102 : vector<1x32xf32>
    %104 = vector.extract_strided_slice %84 {offsets = [0, 96], sizes = [1, 32], strides = [1, 1]} : vector<1x128xf32> to vector<1x32xf32>
    %105 = arith.negf %104 : vector<1x32xf32>
    %106 = math.exp %105 : vector<1x32xf32>
    %cst_25 = arith.constant 1.000000e+00 : f32
    %107 = vector.broadcast %cst_25 : f32 to vector<1x32xf32>
    %108 = arith.addf %107, %106 : vector<1x32xf32>
    %109 = arith.divf %107, %108 : vector<1x32xf32>
    %110 = arith.mulf %101, %89 : vector<1x32xf32>
    %111 = arith.mulf %95, %103 : vector<1x32xf32>
    %112 = arith.addf %110, %111 : vector<1x32xf32>
    %113 = math.tanh %112 : vector<1x32xf32>
    %114 = arith.mulf %109, %113 : vector<1x32xf32>
    %115 = vector.extract_strided_slice %78 {offsets = [0, 32], sizes = [1, 32], strides = [1, 1]} : vector<1x64xf32> to vector<1x32xf32>
    %116 = vector.extract_strided_slice %88 {offsets = [0, 0], sizes = [1, 32], strides = [1, 1]} : vector<1x128xf32> to vector<1x32xf32>
    %117 = arith.negf %116 : vector<1x32xf32>
    %118 = math.exp %117 : vector<1x32xf32>
    %cst_26 = arith.constant 1.000000e+00 : f32
    %119 = vector.broadcast %cst_26 : f32 to vector<1x32xf32>
    %120 = arith.addf %119, %118 : vector<1x32xf32>
    %121 = arith.divf %119, %120 : vector<1x32xf32>
    %122 = vector.extract_strided_slice %88 {offsets = [0, 32], sizes = [1, 32], strides = [1, 1]} : vector<1x128xf32> to vector<1x32xf32>
    %123 = arith.negf %122 : vector<1x32xf32>
    %124 = math.exp %123 : vector<1x32xf32>
    %cst_27 = arith.constant 1.000000e+00 : f32
    %125 = vector.broadcast %cst_27 : f32 to vector<1x32xf32>
    %126 = arith.addf %125, %124 : vector<1x32xf32>
    %127 = arith.divf %125, %126 : vector<1x32xf32>
    %128 = vector.extract_strided_slice %88 {offsets = [0, 64], sizes = [1, 32], strides = [1, 1]} : vector<1x128xf32> to vector<1x32xf32>
    %129 = math.tanh %128 : vector<1x32xf32>
    %130 = vector.extract_strided_slice %88 {offsets = [0, 96], sizes = [1, 32], strides = [1, 1]} : vector<1x128xf32> to vector<1x32xf32>
    %131 = arith.negf %130 : vector<1x32xf32>
    %132 = math.exp %131 : vector<1x32xf32>
    %cst_28 = arith.constant 1.000000e+00 : f32
    %133 = vector.broadcast %cst_28 : f32 to vector<1x32xf32>
    %134 = arith.addf %133, %132 : vector<1x32xf32>
    %135 = arith.divf %133, %134 : vector<1x32xf32>
    %136 = arith.mulf %127, %115 : vector<1x32xf32>
    %137 = arith.mulf %121, %129 : vector<1x32xf32>
    %138 = arith.addf %136, %137 : vector<1x32xf32>
    %139 = math.tanh %138 : vector<1x32xf32>
    %140 = arith.mulf %135, %139 : vector<1x32xf32>
    %141 = arith.index_cast %c1_i32 : i32 to index
    %c0_29 = arith.constant 0 : index
    %142 = vector.load %arg4[%141, %c0_29] : memref<8x64xf32, #tpu.memory_space<vmem>>, vector<1x32xf32>
    tpu.vector_store %arg4[%141, %c0_29], %114 {strides = array<i32>} : memref<8x64xf32, #tpu.memory_space<vmem>>, vector<1x32xf32>,
    %143 = arith.index_cast %79 : i32 to index
    %c32_30 = arith.constant 32 : index
    %144 = vector.load %arg4[%143, %c32_30] : memref<8x64xf32, #tpu.memory_space<vmem>>, vector<1x32xf32>
    tpu.vector_store %arg4[%143, %c32_30], %140 {strides = array<i32>} : memref<8x64xf32, #tpu.memory_space<vmem>>, vector<1x32xf32>,
    %145 = tpu.concatenate %114, %140 in 1 : vector<1x32xf32>, vector<1x32xf32> -> vector<1x64xf32>
    %146 = tpu.concatenate %112, %138 in 1 : vector<1x32xf32>, vector<1x32xf32> -> vector<1x64xf32>
    %c2_i32 = arith.constant 2 : i32
    %c7_i32_31 = arith.constant 7 : i32
    %147 = arith.subi %c7_i32_31, %c2_i32 : i32
    %cst_32 = arith.constant dense<0.000000e+00> : vector<1x256xf32>
    %148 = tpu.matmul %145, %9, %cst_32 {dimension_numbers = #tpu.dot_dimension_numbers<[1], [0], [0], [1], [0, 0, 1, 1], [], []>} : vector<1x64xf32>, vector<64x256xf32>, vector<1x256xf32> -> vector<1x256xf32>
    %149 = arith.index_cast %c2_i32 : i32 to index
    %c0_33 = arith.constant 0 : index
    %150 = vector.load %arg5[%149, %c0_33] : memref<8x256xf32, #tpu.memory_space<vmem>>, vector<1x128xf32>
    %151 = vector.extract_strided_slice %148 {offsets = [0, 0], sizes = [1, 128], strides = [1, 1]} : vector<1x256xf32> to vector<1x128xf32>
    %152 = arith.addf %150, %151 : vector<1x128xf32>
    %153 = arith.index_cast %147 : i32 to index
    %c128_34 = arith.constant 128 : index
    %154 = vector.load %arg5[%153, %c128_34] : memref<8x256xf32, #tpu.memory_space<vmem>>, vector<1x128xf32>
    %155 = vector.extract_strided_slice %148 {offsets = [0, 128], sizes = [1, 128], strides = [1, 1]} : vector<1x256xf32> to vector<1x128xf32>
    %156 = arith.addf %154, %155 : vector<1x128xf32>
    %157 = vector.extract_strided_slice %146 {offsets = [0, 0], sizes = [1, 32], strides = [1, 1]} : vector<1x64xf32> to vector<1x32xf32>
    %158 = vector.extract_strided_slice %152 {offsets = [0, 0], sizes = [1, 32], strides = [1, 1]} : vector<1x128xf32> to vector<1x32xf32>
    %159 = arith.negf %158 : vector<1x32xf32>
    %160 = math.exp %159 : vector<1x32xf32>
    %cst_35 = arith.constant 1.000000e+00 : f32
    %161 = vector.broadcast %cst_35 : f32 to vector<1x32xf32>
    %162 = arith.addf %161, %160 : vector<1x32xf32>
    %163 = arith.divf %161, %162 : vector<1x32xf32>
    %164 = vector.extract_strided_slice %152 {offsets = [0, 32], sizes = [1, 32], strides = [1, 1]} : vector<1x128xf32> to vector<1x32xf32>
    %165 = arith.negf %164 : vector<1x32xf32>
    %166 = math.exp %165 : vector<1x32xf32>
    %cst_36 = arith.constant 1.000000e+00 : f32
    %167 = vector.broadcast %cst_36 : f32 to vector<1x32xf32>
    %168 = arith.addf %167, %166 : vector<1x32xf32>
    %169 = arith.divf %167, %168 : vector<1x32xf32>
    %170 = vector.extract_strided_slice %152 {offsets = [0, 64], sizes = [1, 32], strides = [1, 1]} : vector<1x128xf32> to vector<1x32xf32>
    %171 = math.tanh %170 : vector<1x32xf32>
    %172 = vector.extract_strided_slice %152 {offsets = [0, 96], sizes = [1, 32], strides = [1, 1]} : vector<1x128xf32> to vector<1x32xf32>
    %173 = arith.negf %172 : vector<1x32xf32>
    %174 = math.exp %173 : vector<1x32xf32>
    %cst_37 = arith.constant 1.000000e+00 : f32
    %175 = vector.broadcast %cst_37 : f32 to vector<1x32xf32>
    %176 = arith.addf %175, %174 : vector<1x32xf32>
    %177 = arith.divf %175, %176 : vector<1x32xf32>
    %178 = arith.mulf %169, %157 : vector<1x32xf32>
    %179 = arith.mulf %163, %171 : vector<1x32xf32>
    %180 = arith.addf %178, %179 : vector<1x32xf32>
    %181 = math.tanh %180 : vector<1x32xf32>
    %182 = arith.mulf %177, %181 : vector<1x32xf32>
    %183 = vector.extract_strided_slice %146 {offsets = [0, 32], sizes = [1, 32], strides = [1, 1]} : vector<1x64xf32> to vector<1x32xf32>
    %184 = vector.extract_strided_slice %156 {offsets = [0, 0], sizes = [1, 32], strides = [1, 1]} : vector<1x128xf32> to vector<1x32xf32>
    %185 = arith.negf %184 : vector<1x32xf32>
    %186 = math.exp %185 : vector<1x32xf32>
    %cst_38 = arith.constant 1.000000e+00 : f32
    %187 = vector.broadcast %cst_38 : f32 to vector<1x32xf32>
    %188 = arith.addf %187, %186 : vector<1x32xf32>
    %189 = arith.divf %187, %188 : vector<1x32xf32>
    %190 = vector.extract_strided_slice %156 {offsets = [0, 32], sizes = [1, 32], strides = [1, 1]} : vector<1x128xf32> to vector<1x32xf32>
    %191 = arith.negf %190 : vector<1x32xf32>
    %192 = math.exp %191 : vector<1x32xf32>
    %cst_39 = arith.constant 1.000000e+00 : f32
    %193 = vector.broadcast %cst_39 : f32 to vector<1x32xf32>
    %194 = arith.addf %193, %192 : vector<1x32xf32>
    %195 = arith.divf %193, %194 : vector<1x32xf32>
    %196 = vector.extract_strided_slice %156 {offsets = [0, 64], sizes = [1, 32], strides = [1, 1]} : vector<1x128xf32> to vector<1x32xf32>
    %197 = math.tanh %196 : vector<1x32xf32>
    %198 = vector.extract_strided_slice %156 {offsets = [0, 96], sizes = [1, 32], strides = [1, 1]} : vector<1x128xf32> to vector<1x32xf32>
    %199 = arith.negf %198 : vector<1x32xf32>
    %200 = math.exp %199 : vector<1x32xf32>
    %cst_40 = arith.constant 1.000000e+00 : f32
    %201 = vector.broadcast %cst_40 : f32 to vector<1x32xf32>
    %202 = arith.addf %201, %200 : vector<1x32xf32>
    %203 = arith.divf %201, %202 : vector<1x32xf32>
    %204 = arith.mulf %195, %183 : vector<1x32xf32>
    %205 = arith.mulf %189, %197 : vector<1x32xf32>
    %206 = arith.addf %204, %205 : vector<1x32xf32>
    %207 = math.tanh %206 : vector<1x32xf32>
    %208 = arith.mulf %203, %207 : vector<1x32xf32>
    %209 = arith.index_cast %c2_i32 : i32 to index
    %c0_41 = arith.constant 0 : index
    %210 = vector.load %arg4[%209, %c0_41] : memref<8x64xf32, #tpu.memory_space<vmem>>, vector<1x32xf32>
    tpu.vector_store %arg4[%209, %c0_41], %182 {strides = array<i32>} : memref<8x64xf32, #tpu.memory_space<vmem>>, vector<1x32xf32>,
    %211 = arith.index_cast %147 : i32 to index
    %c32_42 = arith.constant 32 : index
    %212 = vector.load %arg4[%211, %c32_42] : memref<8x64xf32, #tpu.memory_space<vmem>>, vector<1x32xf32>
    tpu.vector_store %arg4[%211, %c32_42], %208 {strides = array<i32>} : memref<8x64xf32, #tpu.memory_space<vmem>>, vector<1x32xf32>,
    %213 = tpu.concatenate %182, %208 in 1 : vector<1x32xf32>, vector<1x32xf32> -> vector<1x64xf32>
    %214 = tpu.concatenate %180, %206 in 1 : vector<1x32xf32>, vector<1x32xf32> -> vector<1x64xf32>
    %c3_i32 = arith.constant 3 : i32
    %c7_i32_43 = arith.constant 7 : i32
    %215 = arith.subi %c7_i32_43, %c3_i32 : i32
    %cst_44 = arith.constant dense<0.000000e+00> : vector<1x256xf32>
    %216 = tpu.matmul %213, %9, %cst_44 {dimension_numbers = #tpu.dot_dimension_numbers<[1], [0], [0], [1], [0, 0, 1, 1], [], []>} : vector<1x64xf32>, vector<64x256xf32>, vector<1x256xf32> -> vector<1x256xf32>
    %217 = arith.index_cast %c3_i32 : i32 to index
    %c0_45 = arith.constant 0 : index
    %218 = vector.load %arg5[%217, %c0_45] : memref<8x256xf32, #tpu.memory_space<vmem>>, vector<1x128xf32>
    %219 = vector.extract_strided_slice %216 {offsets = [0, 0], sizes = [1, 128], strides = [1, 1]} : vector<1x256xf32> to vector<1x128xf32>
    %220 = arith.addf %218, %219 : vector<1x128xf32>
    %221 = arith.index_cast %215 : i32 to index
    %c128_46 = arith.constant 128 : index
    %222 = vector.load %arg5[%221, %c128_46] : memref<8x256xf32, #tpu.memory_space<vmem>>, vector<1x128xf32>
    %223 = vector.extract_strided_slice %216 {offsets = [0, 128], sizes = [1, 128], strides = [1, 1]} : vector<1x256xf32> to vector<1x128xf32>
    %224 = arith.addf %222, %223 : vector<1x128xf32>
    %225 = vector.extract_strided_slice %214 {offsets = [0, 0], sizes = [1, 32], strides = [1, 1]} : vector<1x64xf32> to vector<1x32xf32>
    %226 = vector.extract_strided_slice %220 {offsets = [0, 0], sizes = [1, 32], strides = [1, 1]} : vector<1x128xf32> to vector<1x32xf32>
    %227 = arith.negf %226 : vector<1x32xf32>
    %228 = math.exp %227 : vector<1x32xf32>
    %cst_47 = arith.constant 1.000000e+00 : f32
    %229 = vector.broadcast %cst_47 : f32 to vector<1x32xf32>
    %230 = arith.addf %229, %228 : vector<1x32xf32>
    %231 = arith.divf %229, %230 : vector<1x32xf32>
    %232 = vector.extract_strided_slice %220 {offsets = [0, 32], sizes = [1, 32], strides = [1, 1]} : vector<1x128xf32> to vector<1x32xf32>
    %233 = arith.negf %232 : vector<1x32xf32>
    %234 = math.exp %233 : vector<1x32xf32>
    %cst_48 = arith.constant 1.000000e+00 : f32
    %235 = vector.broadcast %cst_48 : f32 to vector<1x32xf32>
    %236 = arith.addf %235, %234 : vector<1x32xf32>
    %237 = arith.divf %235, %236 : vector<1x32xf32>
    %238 = vector.extract_strided_slice %220 {offsets = [0, 64], sizes = [1, 32], strides = [1, 1]} : vector<1x128xf32> to vector<1x32xf32>
    %239 = math.tanh %238 : vector<1x32xf32>
    %240 = vector.extract_strided_slice %220 {offsets = [0, 96], sizes = [1, 32], strides = [1, 1]} : vector<1x128xf32> to vector<1x32xf32>
    %241 = arith.negf %240 : vector<1x32xf32>
    %242 = math.exp %241 : vector<1x32xf32>
    %cst_49 = arith.constant 1.000000e+00 : f32
    %243 = vector.broadcast %cst_49 : f32 to vector<1x32xf32>
    %244 = arith.addf %243, %242 : vector<1x32xf32>
    %245 = arith.divf %243, %244 : vector<1x32xf32>
    %246 = arith.mulf %237, %225 : vector<1x32xf32>
    %247 = arith.mulf %231, %239 : vector<1x32xf32>
    %248 = arith.addf %246, %247 : vector<1x32xf32>
    %249 = math.tanh %248 : vector<1x32xf32>
    %250 = arith.mulf %245, %249 : vector<1x32xf32>
    %251 = vector.extract_strided_slice %214 {offsets = [0, 32], sizes = [1, 32], strides = [1, 1]} : vector<1x64xf32> to vector<1x32xf32>
    %252 = vector.extract_strided_slice %224 {offsets = [0, 0], sizes = [1, 32], strides = [1, 1]} : vector<1x128xf32> to vector<1x32xf32>
    %253 = arith.negf %252 : vector<1x32xf32>
    %254 = math.exp %253 : vector<1x32xf32>
    %cst_50 = arith.constant 1.000000e+00 : f32
    %255 = vector.broadcast %cst_50 : f32 to vector<1x32xf32>
    %256 = arith.addf %255, %254 : vector<1x32xf32>
    %257 = arith.divf %255, %256 : vector<1x32xf32>
    %258 = vector.extract_strided_slice %224 {offsets = [0, 32], sizes = [1, 32], strides = [1, 1]} : vector<1x128xf32> to vector<1x32xf32>
    %259 = arith.negf %258 : vector<1x32xf32>
    %260 = math.exp %259 : vector<1x32xf32>
    %cst_51 = arith.constant 1.000000e+00 : f32
    %261 = vector.broadcast %cst_51 : f32 to vector<1x32xf32>
    %262 = arith.addf %261, %260 : vector<1x32xf32>
    %263 = arith.divf %261, %262 : vector<1x32xf32>
    %264 = vector.extract_strided_slice %224 {offsets = [0, 64], sizes = [1, 32], strides = [1, 1]} : vector<1x128xf32> to vector<1x32xf32>
    %265 = math.tanh %264 : vector<1x32xf32>
    %266 = vector.extract_strided_slice %224 {offsets = [0, 96], sizes = [1, 32], strides = [1, 1]} : vector<1x128xf32> to vector<1x32xf32>
    %267 = arith.negf %266 : vector<1x32xf32>
    %268 = math.exp %267 : vector<1x32xf32>
    %cst_52 = arith.constant 1.000000e+00 : f32
    %269 = vector.broadcast %cst_52 : f32 to vector<1x32xf32>
    %270 = arith.addf %269, %268 : vector<1x32xf32>
    %271 = arith.divf %269, %270 : vector<1x32xf32>
    %272 = arith.mulf %263, %251 : vector<1x32xf32>
    %273 = arith.mulf %257, %265 : vector<1x32xf32>
    %274 = arith.addf %272, %273 : vector<1x32xf32>
    %275 = math.tanh %274 : vector<1x32xf32>
    %276 = arith.mulf %271, %275 : vector<1x32xf32>
    %277 = arith.index_cast %c3_i32 : i32 to index
    %c0_53 = arith.constant 0 : index
    %278 = vector.load %arg4[%277, %c0_53] : memref<8x64xf32, #tpu.memory_space<vmem>>, vector<1x32xf32>
    tpu.vector_store %arg4[%277, %c0_53], %250 {strides = array<i32>} : memref<8x64xf32, #tpu.memory_space<vmem>>, vector<1x32xf32>,
    %279 = arith.index_cast %215 : i32 to index
    %c32_54 = arith.constant 32 : index
    %280 = vector.load %arg4[%279, %c32_54] : memref<8x64xf32, #tpu.memory_space<vmem>>, vector<1x32xf32>
    tpu.vector_store %arg4[%279, %c32_54], %276 {strides = array<i32>} : memref<8x64xf32, #tpu.memory_space<vmem>>, vector<1x32xf32>,
    %281 = tpu.concatenate %250, %276 in 1 : vector<1x32xf32>, vector<1x32xf32> -> vector<1x64xf32>
    %282 = tpu.concatenate %248, %274 in 1 : vector<1x32xf32>, vector<1x32xf32> -> vector<1x64xf32>
    %c4_i32 = arith.constant 4 : i32
    %c7_i32_55 = arith.constant 7 : i32
    %283 = arith.subi %c7_i32_55, %c4_i32 : i32
    %cst_56 = arith.constant dense<0.000000e+00> : vector<1x256xf32>
    %284 = tpu.matmul %281, %9, %cst_56 {dimension_numbers = #tpu.dot_dimension_numbers<[1], [0], [0], [1], [0, 0, 1, 1], [], []>} : vector<1x64xf32>, vector<64x256xf32>, vector<1x256xf32> -> vector<1x256xf32>
    %285 = arith.index_cast %c4_i32 : i32 to index
    %c0_57 = arith.constant 0 : index
    %286 = vector.load %arg5[%285, %c0_57] : memref<8x256xf32, #tpu.memory_space<vmem>>, vector<1x128xf32>
    %287 = vector.extract_strided_slice %284 {offsets = [0, 0], sizes = [1, 128], strides = [1, 1]} : vector<1x256xf32> to vector<1x128xf32>
    %288 = arith.addf %286, %287 : vector<1x128xf32>
    %289 = arith.index_cast %283 : i32 to index
    %c128_58 = arith.constant 128 : index
    %290 = vector.load %arg5[%289, %c128_58] : memref<8x256xf32, #tpu.memory_space<vmem>>, vector<1x128xf32>
    %291 = vector.extract_strided_slice %284 {offsets = [0, 128], sizes = [1, 128], strides = [1, 1]} : vector<1x256xf32> to vector<1x128xf32>
    %292 = arith.addf %290, %291 : vector<1x128xf32>
    %293 = vector.extract_strided_slice %282 {offsets = [0, 0], sizes = [1, 32], strides = [1, 1]} : vector<1x64xf32> to vector<1x32xf32>
    %294 = vector.extract_strided_slice %288 {offsets = [0, 0], sizes = [1, 32], strides = [1, 1]} : vector<1x128xf32> to vector<1x32xf32>
    %295 = arith.negf %294 : vector<1x32xf32>
    %296 = math.exp %295 : vector<1x32xf32>
    %cst_59 = arith.constant 1.000000e+00 : f32
    %297 = vector.broadcast %cst_59 : f32 to vector<1x32xf32>
    %298 = arith.addf %297, %296 : vector<1x32xf32>
    %299 = arith.divf %297, %298 : vector<1x32xf32>
    %300 = vector.extract_strided_slice %288 {offsets = [0, 32], sizes = [1, 32], strides = [1, 1]} : vector<1x128xf32> to vector<1x32xf32>
    %301 = arith.negf %300 : vector<1x32xf32>
    %302 = math.exp %301 : vector<1x32xf32>
    %cst_60 = arith.constant 1.000000e+00 : f32
    %303 = vector.broadcast %cst_60 : f32 to vector<1x32xf32>
    %304 = arith.addf %303, %302 : vector<1x32xf32>
    %305 = arith.divf %303, %304 : vector<1x32xf32>
    %306 = vector.extract_strided_slice %288 {offsets = [0, 64], sizes = [1, 32], strides = [1, 1]} : vector<1x128xf32> to vector<1x32xf32>
    %307 = math.tanh %306 : vector<1x32xf32>
    %308 = vector.extract_strided_slice %288 {offsets = [0, 96], sizes = [1, 32], strides = [1, 1]} : vector<1x128xf32> to vector<1x32xf32>
    %309 = arith.negf %308 : vector<1x32xf32>
    %310 = math.exp %309 : vector<1x32xf32>
    %cst_61 = arith.constant 1.000000e+00 : f32
    %311 = vector.broadcast %cst_61 : f32 to vector<1x32xf32>
    %312 = arith.addf %311, %310 : vector<1x32xf32>
    %313 = arith.divf %311, %312 : vector<1x32xf32>
    %314 = arith.mulf %305, %293 : vector<1x32xf32>
    %315 = arith.mulf %299, %307 : vector<1x32xf32>
    %316 = arith.addf %314, %315 : vector<1x32xf32>
    %317 = math.tanh %316 : vector<1x32xf32>
    %318 = arith.mulf %313, %317 : vector<1x32xf32>
    %319 = vector.extract_strided_slice %282 {offsets = [0, 32], sizes = [1, 32], strides = [1, 1]} : vector<1x64xf32> to vector<1x32xf32>
    %320 = vector.extract_strided_slice %292 {offsets = [0, 0], sizes = [1, 32], strides = [1, 1]} : vector<1x128xf32> to vector<1x32xf32>
    %321 = arith.negf %320 : vector<1x32xf32>
    %322 = math.exp %321 : vector<1x32xf32>
    %cst_62 = arith.constant 1.000000e+00 : f32
    %323 = vector.broadcast %cst_62 : f32 to vector<1x32xf32>
    %324 = arith.addf %323, %322 : vector<1x32xf32>
    %325 = arith.divf %323, %324 : vector<1x32xf32>
    %326 = vector.extract_strided_slice %292 {offsets = [0, 32], sizes = [1, 32], strides = [1, 1]} : vector<1x128xf32> to vector<1x32xf32>
    %327 = arith.negf %326 : vector<1x32xf32>
    %328 = math.exp %327 : vector<1x32xf32>
    %cst_63 = arith.constant 1.000000e+00 : f32
    %329 = vector.broadcast %cst_63 : f32 to vector<1x32xf32>
    %330 = arith.addf %329, %328 : vector<1x32xf32>
    %331 = arith.divf %329, %330 : vector<1x32xf32>
    %332 = vector.extract_strided_slice %292 {offsets = [0, 64], sizes = [1, 32], strides = [1, 1]} : vector<1x128xf32> to vector<1x32xf32>
    %333 = math.tanh %332 : vector<1x32xf32>
    %334 = vector.extract_strided_slice %292 {offsets = [0, 96], sizes = [1, 32], strides = [1, 1]} : vector<1x128xf32> to vector<1x32xf32>
    %335 = arith.negf %334 : vector<1x32xf32>
    %336 = math.exp %335 : vector<1x32xf32>
    %cst_64 = arith.constant 1.000000e+00 : f32
    %337 = vector.broadcast %cst_64 : f32 to vector<1x32xf32>
    %338 = arith.addf %337, %336 : vector<1x32xf32>
    %339 = arith.divf %337, %338 : vector<1x32xf32>
    %340 = arith.mulf %331, %319 : vector<1x32xf32>
    %341 = arith.mulf %325, %333 : vector<1x32xf32>
    %342 = arith.addf %340, %341 : vector<1x32xf32>
    %343 = math.tanh %342 : vector<1x32xf32>
    %344 = arith.mulf %339, %343 : vector<1x32xf32>
    %345 = arith.index_cast %c4_i32 : i32 to index
    %c0_65 = arith.constant 0 : index
    %346 = vector.load %arg4[%345, %c0_65] : memref<8x64xf32, #tpu.memory_space<vmem>>, vector<1x32xf32>
    tpu.vector_store %arg4[%345, %c0_65], %318 {strides = array<i32>} : memref<8x64xf32, #tpu.memory_space<vmem>>, vector<1x32xf32>,
    %347 = arith.index_cast %283 : i32 to index
    %c32_66 = arith.constant 32 : index
    %348 = vector.load %arg4[%347, %c32_66] : memref<8x64xf32, #tpu.memory_space<vmem>>, vector<1x32xf32>
    tpu.vector_store %arg4[%347, %c32_66], %344 {strides = array<i32>} : memref<8x64xf32, #tpu.memory_space<vmem>>, vector<1x32xf32>,
    %349 = tpu.concatenate %318, %344 in 1 : vector<1x32xf32>, vector<1x32xf32> -> vector<1x64xf32>
    %350 = tpu.concatenate %316, %342 in 1 : vector<1x32xf32>, vector<1x32xf32> -> vector<1x64xf32>
    %c5_i32 = arith.constant 5 : i32
    %c7_i32_67 = arith.constant 7 : i32
    %351 = arith.subi %c7_i32_67, %c5_i32 : i32
    %cst_68 = arith.constant dense<0.000000e+00> : vector<1x256xf32>
    %352 = tpu.matmul %349, %9, %cst_68 {dimension_numbers = #tpu.dot_dimension_numbers<[1], [0], [0], [1], [0, 0, 1, 1], [], []>} : vector<1x64xf32>, vector<64x256xf32>, vector<1x256xf32> -> vector<1x256xf32>
    %353 = arith.index_cast %c5_i32 : i32 to index
    %c0_69 = arith.constant 0 : index
    %354 = vector.load %arg5[%353, %c0_69] : memref<8x256xf32, #tpu.memory_space<vmem>>, vector<1x128xf32>
    %355 = vector.extract_strided_slice %352 {offsets = [0, 0], sizes = [1, 128], strides = [1, 1]} : vector<1x256xf32> to vector<1x128xf32>
    %356 = arith.addf %354, %355 : vector<1x128xf32>
    %357 = arith.index_cast %351 : i32 to index
    %c128_70 = arith.constant 128 : index
    %358 = vector.load %arg5[%357, %c128_70] : memref<8x256xf32, #tpu.memory_space<vmem>>, vector<1x128xf32>
    %359 = vector.extract_strided_slice %352 {offsets = [0, 128], sizes = [1, 128], strides = [1, 1]} : vector<1x256xf32> to vector<1x128xf32>
    %360 = arith.addf %358, %359 : vector<1x128xf32>
    %361 = vector.extract_strided_slice %350 {offsets = [0, 0], sizes = [1, 32], strides = [1, 1]} : vector<1x64xf32> to vector<1x32xf32>
    %362 = vector.extract_strided_slice %356 {offsets = [0, 0], sizes = [1, 32], strides = [1, 1]} : vector<1x128xf32> to vector<1x32xf32>
    %363 = arith.negf %362 : vector<1x32xf32>
    %364 = math.exp %363 : vector<1x32xf32>
    %cst_71 = arith.constant 1.000000e+00 : f32
    %365 = vector.broadcast %cst_71 : f32 to vector<1x32xf32>
    %366 = arith.addf %365, %364 : vector<1x32xf32>
    %367 = arith.divf %365, %366 : vector<1x32xf32>
    %368 = vector.extract_strided_slice %356 {offsets = [0, 32], sizes = [1, 32], strides = [1, 1]} : vector<1x128xf32> to vector<1x32xf32>
    %369 = arith.negf %368 : vector<1x32xf32>
    %370 = math.exp %369 : vector<1x32xf32>
    %cst_72 = arith.constant 1.000000e+00 : f32
    %371 = vector.broadcast %cst_72 : f32 to vector<1x32xf32>
    %372 = arith.addf %371, %370 : vector<1x32xf32>
    %373 = arith.divf %371, %372 : vector<1x32xf32>
    %374 = vector.extract_strided_slice %356 {offsets = [0, 64], sizes = [1, 32], strides = [1, 1]} : vector<1x128xf32> to vector<1x32xf32>
    %375 = math.tanh %374 : vector<1x32xf32>
    %376 = vector.extract_strided_slice %356 {offsets = [0, 96], sizes = [1, 32], strides = [1, 1]} : vector<1x128xf32> to vector<1x32xf32>
    %377 = arith.negf %376 : vector<1x32xf32>
    %378 = math.exp %377 : vector<1x32xf32>
    %cst_73 = arith.constant 1.000000e+00 : f32
    %379 = vector.broadcast %cst_73 : f32 to vector<1x32xf32>
    %380 = arith.addf %379, %378 : vector<1x32xf32>
    %381 = arith.divf %379, %380 : vector<1x32xf32>
    %382 = arith.mulf %373, %361 : vector<1x32xf32>
    %383 = arith.mulf %367, %375 : vector<1x32xf32>
    %384 = arith.addf %382, %383 : vector<1x32xf32>
    %385 = math.tanh %384 : vector<1x32xf32>
    %386 = arith.mulf %381, %385 : vector<1x32xf32>
    %387 = vector.extract_strided_slice %350 {offsets = [0, 32], sizes = [1, 32], strides = [1, 1]} : vector<1x64xf32> to vector<1x32xf32>
    %388 = vector.extract_strided_slice %360 {offsets = [0, 0], sizes = [1, 32], strides = [1, 1]} : vector<1x128xf32> to vector<1x32xf32>
    %389 = arith.negf %388 : vector<1x32xf32>
    %390 = math.exp %389 : vector<1x32xf32>
    %cst_74 = arith.constant 1.000000e+00 : f32
    %391 = vector.broadcast %cst_74 : f32 to vector<1x32xf32>
    %392 = arith.addf %391, %390 : vector<1x32xf32>
    %393 = arith.divf %391, %392 : vector<1x32xf32>
    %394 = vector.extract_strided_slice %360 {offsets = [0, 32], sizes = [1, 32], strides = [1, 1]} : vector<1x128xf32> to vector<1x32xf32>
    %395 = arith.negf %394 : vector<1x32xf32>
    %396 = math.exp %395 : vector<1x32xf32>
    %cst_75 = arith.constant 1.000000e+00 : f32
    %397 = vector.broadcast %cst_75 : f32 to vector<1x32xf32>
    %398 = arith.addf %397, %396 : vector<1x32xf32>
    %399 = arith.divf %397, %398 : vector<1x32xf32>
    %400 = vector.extract_strided_slice %360 {offsets = [0, 64], sizes = [1, 32], strides = [1, 1]} : vector<1x128xf32> to vector<1x32xf32>
    %401 = math.tanh %400 : vector<1x32xf32>
    %402 = vector.extract_strided_slice %360 {offsets = [0, 96], sizes = [1, 32], strides = [1, 1]} : vector<1x128xf32> to vector<1x32xf32>
    %403 = arith.negf %402 : vector<1x32xf32>
    %404 = math.exp %403 : vector<1x32xf32>
    %cst_76 = arith.constant 1.000000e+00 : f32
    %405 = vector.broadcast %cst_76 : f32 to vector<1x32xf32>
    %406 = arith.addf %405, %404 : vector<1x32xf32>
    %407 = arith.divf %405, %406 : vector<1x32xf32>
    %408 = arith.mulf %399, %387 : vector<1x32xf32>
    %409 = arith.mulf %393, %401 : vector<1x32xf32>
    %410 = arith.addf %408, %409 : vector<1x32xf32>
    %411 = math.tanh %410 : vector<1x32xf32>
    %412 = arith.mulf %407, %411 : vector<1x32xf32>
    %413 = arith.index_cast %c5_i32 : i32 to index
    %c0_77 = arith.constant 0 : index
    %414 = vector.load %arg4[%413, %c0_77] : memref<8x64xf32, #tpu.memory_space<vmem>>, vector<1x32xf32>
    tpu.vector_store %arg4[%413, %c0_77], %386 {strides = array<i32>} : memref<8x64xf32, #tpu.memory_space<vmem>>, vector<1x32xf32>,
    %415 = arith.index_cast %351 : i32 to index
    %c32_78 = arith.constant 32 : index
    %416 = vector.load %arg4[%415, %c32_78] : memref<8x64xf32, #tpu.memory_space<vmem>>, vector<1x32xf32>
    tpu.vector_store %arg4[%415, %c32_78], %412 {strides = array<i32>} : memref<8x64xf32, #tpu.memory_space<vmem>>, vector<1x32xf32>,
    %417 = tpu.concatenate %386, %412 in 1 : vector<1x32xf32>, vector<1x32xf32> -> vector<1x64xf32>
    %418 = tpu.concatenate %384, %410 in 1 : vector<1x32xf32>, vector<1x32xf32> -> vector<1x64xf32>
    %c6_i32 = arith.constant 6 : i32
    %c7_i32_79 = arith.constant 7 : i32
    %419 = arith.subi %c7_i32_79, %c6_i32 : i32
    %cst_80 = arith.constant dense<0.000000e+00> : vector<1x256xf32>
    %420 = tpu.matmul %417, %9, %cst_80 {dimension_numbers = #tpu.dot_dimension_numbers<[1], [0], [0], [1], [0, 0, 1, 1], [], []>} : vector<1x64xf32>, vector<64x256xf32>, vector<1x256xf32> -> vector<1x256xf32>
    %421 = arith.index_cast %c6_i32 : i32 to index
    %c0_81 = arith.constant 0 : index
    %422 = vector.load %arg5[%421, %c0_81] : memref<8x256xf32, #tpu.memory_space<vmem>>, vector<1x128xf32>
    %423 = vector.extract_strided_slice %420 {offsets = [0, 0], sizes = [1, 128], strides = [1, 1]} : vector<1x256xf32> to vector<1x128xf32>
    %424 = arith.addf %422, %423 : vector<1x128xf32>
    %425 = arith.index_cast %419 : i32 to index
    %c128_82 = arith.constant 128 : index
    %426 = vector.load %arg5[%425, %c128_82] : memref<8x256xf32, #tpu.memory_space<vmem>>, vector<1x128xf32>
    %427 = vector.extract_strided_slice %420 {offsets = [0, 128], sizes = [1, 128], strides = [1, 1]} : vector<1x256xf32> to vector<1x128xf32>
    %428 = arith.addf %426, %427 : vector<1x128xf32>
    %429 = vector.extract_strided_slice %418 {offsets = [0, 0], sizes = [1, 32], strides = [1, 1]} : vector<1x64xf32> to vector<1x32xf32>
    %430 = vector.extract_strided_slice %424 {offsets = [0, 0], sizes = [1, 32], strides = [1, 1]} : vector<1x128xf32> to vector<1x32xf32>
    %431 = arith.negf %430 : vector<1x32xf32>
    %432 = math.exp %431 : vector<1x32xf32>
    %cst_83 = arith.constant 1.000000e+00 : f32
    %433 = vector.broadcast %cst_83 : f32 to vector<1x32xf32>
    %434 = arith.addf %433, %432 : vector<1x32xf32>
    %435 = arith.divf %433, %434 : vector<1x32xf32>
    %436 = vector.extract_strided_slice %424 {offsets = [0, 32], sizes = [1, 32], strides = [1, 1]} : vector<1x128xf32> to vector<1x32xf32>
    %437 = arith.negf %436 : vector<1x32xf32>
    %438 = math.exp %437 : vector<1x32xf32>
    %cst_84 = arith.constant 1.000000e+00 : f32
    %439 = vector.broadcast %cst_84 : f32 to vector<1x32xf32>
    %440 = arith.addf %439, %438 : vector<1x32xf32>
    %441 = arith.divf %439, %440 : vector<1x32xf32>
    %442 = vector.extract_strided_slice %424 {offsets = [0, 64], sizes = [1, 32], strides = [1, 1]} : vector<1x128xf32> to vector<1x32xf32>
    %443 = math.tanh %442 : vector<1x32xf32>
    %444 = vector.extract_strided_slice %424 {offsets = [0, 96], sizes = [1, 32], strides = [1, 1]} : vector<1x128xf32> to vector<1x32xf32>
    %445 = arith.negf %444 : vector<1x32xf32>
    %446 = math.exp %445 : vector<1x32xf32>
    %cst_85 = arith.constant 1.000000e+00 : f32
    %447 = vector.broadcast %cst_85 : f32 to vector<1x32xf32>
    %448 = arith.addf %447, %446 : vector<1x32xf32>
    %449 = arith.divf %447, %448 : vector<1x32xf32>
    %450 = arith.mulf %441, %429 : vector<1x32xf32>
    %451 = arith.mulf %435, %443 : vector<1x32xf32>
    %452 = arith.addf %450, %451 : vector<1x32xf32>
    %453 = math.tanh %452 : vector<1x32xf32>
    %454 = arith.mulf %449, %453 : vector<1x32xf32>
    %455 = vector.extract_strided_slice %418 {offsets = [0, 32], sizes = [1, 32], strides = [1, 1]} : vector<1x64xf32> to vector<1x32xf32>
    %456 = vector.extract_strided_slice %428 {offsets = [0, 0], sizes = [1, 32], strides = [1, 1]} : vector<1x128xf32> to vector<1x32xf32>
    %457 = arith.negf %456 : vector<1x32xf32>
    %458 = math.exp %457 : vector<1x32xf32>
    %cst_86 = arith.constant 1.000000e+00 : f32
    %459 = vector.broadcast %cst_86 : f32 to vector<1x32xf32>
    %460 = arith.addf %459, %458 : vector<1x32xf32>
    %461 = arith.divf %459, %460 : vector<1x32xf32>
    %462 = vector.extract_strided_slice %428 {offsets = [0, 32], sizes = [1, 32], strides = [1, 1]} : vector<1x128xf32> to vector<1x32xf32>
    %463 = arith.negf %462 : vector<1x32xf32>
    %464 = math.exp %463 : vector<1x32xf32>
    %cst_87 = arith.constant 1.000000e+00 : f32
    %465 = vector.broadcast %cst_87 : f32 to vector<1x32xf32>
    %466 = arith.addf %465, %464 : vector<1x32xf32>
    %467 = arith.divf %465, %466 : vector<1x32xf32>
    %468 = vector.extract_strided_slice %428 {offsets = [0, 64], sizes = [1, 32], strides = [1, 1]} : vector<1x128xf32> to vector<1x32xf32>
    %469 = math.tanh %468 : vector<1x32xf32>
    %470 = vector.extract_strided_slice %428 {offsets = [0, 96], sizes = [1, 32], strides = [1, 1]} : vector<1x128xf32> to vector<1x32xf32>
    %471 = arith.negf %470 : vector<1x32xf32>
    %472 = math.exp %471 : vector<1x32xf32>
    %cst_88 = arith.constant 1.000000e+00 : f32
    %473 = vector.broadcast %cst_88 : f32 to vector<1x32xf32>
    %474 = arith.addf %473, %472 : vector<1x32xf32>
    %475 = arith.divf %473, %474 : vector<1x32xf32>
    %476 = arith.mulf %467, %455 : vector<1x32xf32>
    %477 = arith.mulf %461, %469 : vector<1x32xf32>
    %478 = arith.addf %476, %477 : vector<1x32xf32>
    %479 = math.tanh %478 : vector<1x32xf32>
    %480 = arith.mulf %475, %479 : vector<1x32xf32>
    %481 = arith.index_cast %c6_i32 : i32 to index
    %c0_89 = arith.constant 0 : index
    %482 = vector.load %arg4[%481, %c0_89] : memref<8x64xf32, #tpu.memory_space<vmem>>, vector<1x32xf32>
    tpu.vector_store %arg4[%481, %c0_89], %454 {strides = array<i32>} : memref<8x64xf32, #tpu.memory_space<vmem>>, vector<1x32xf32>,
    %483 = arith.index_cast %419 : i32 to index
    %c32_90 = arith.constant 32 : index
    %484 = vector.load %arg4[%483, %c32_90] : memref<8x64xf32, #tpu.memory_space<vmem>>, vector<1x32xf32>
    tpu.vector_store %arg4[%483, %c32_90], %480 {strides = array<i32>} : memref<8x64xf32, #tpu.memory_space<vmem>>, vector<1x32xf32>,
    %485 = tpu.concatenate %454, %480 in 1 : vector<1x32xf32>, vector<1x32xf32> -> vector<1x64xf32>
    %486 = tpu.concatenate %452, %478 in 1 : vector<1x32xf32>, vector<1x32xf32> -> vector<1x64xf32>
    %c7_i32_91 = arith.constant 7 : i32
    %c7_i32_92 = arith.constant 7 : i32
    %487 = arith.subi %c7_i32_92, %c7_i32_91 : i32
    %cst_93 = arith.constant dense<0.000000e+00> : vector<1x256xf32>
    %488 = tpu.matmul %485, %9, %cst_93 {dimension_numbers = #tpu.dot_dimension_numbers<[1], [0], [0], [1], [0, 0, 1, 1], [], []>} : vector<1x64xf32>, vector<64x256xf32>, vector<1x256xf32> -> vector<1x256xf32>
    %489 = arith.index_cast %c7_i32_91 : i32 to index
    %c0_94 = arith.constant 0 : index
    %490 = vector.load %arg5[%489, %c0_94] : memref<8x256xf32, #tpu.memory_space<vmem>>, vector<1x128xf32>
    %491 = vector.extract_strided_slice %488 {offsets = [0, 0], sizes = [1, 128], strides = [1, 1]} : vector<1x256xf32> to vector<1x128xf32>
    %492 = arith.addf %490, %491 : vector<1x128xf32>
    %493 = arith.index_cast %487 : i32 to index
    %c128_95 = arith.constant 128 : index
    %494 = vector.load %arg5[%493, %c128_95] : memref<8x256xf32, #tpu.memory_space<vmem>>, vector<1x128xf32>
    %495 = vector.extract_strided_slice %488 {offsets = [0, 128], sizes = [1, 128], strides = [1, 1]} : vector<1x256xf32> to vector<1x128xf32>
    %496 = arith.addf %494, %495 : vector<1x128xf32>
    %497 = vector.extract_strided_slice %486 {offsets = [0, 0], sizes = [1, 32], strides = [1, 1]} : vector<1x64xf32> to vector<1x32xf32>
    %498 = vector.extract_strided_slice %492 {offsets = [0, 0], sizes = [1, 32], strides = [1, 1]} : vector<1x128xf32> to vector<1x32xf32>
    %499 = arith.negf %498 : vector<1x32xf32>
    %500 = math.exp %499 : vector<1x32xf32>
    %cst_96 = arith.constant 1.000000e+00 : f32
    %501 = vector.broadcast %cst_96 : f32 to vector<1x32xf32>
    %502 = arith.addf %501, %500 : vector<1x32xf32>
    %503 = arith.divf %501, %502 : vector<1x32xf32>
    %504 = vector.extract_strided_slice %492 {offsets = [0, 32], sizes = [1, 32], strides = [1, 1]} : vector<1x128xf32> to vector<1x32xf32>
    %505 = arith.negf %504 : vector<1x32xf32>
    %506 = math.exp %505 : vector<1x32xf32>
    %cst_97 = arith.constant 1.000000e+00 : f32
    %507 = vector.broadcast %cst_97 : f32 to vector<1x32xf32>
    %508 = arith.addf %507, %506 : vector<1x32xf32>
    %509 = arith.divf %507, %508 : vector<1x32xf32>
    %510 = vector.extract_strided_slice %492 {offsets = [0, 64], sizes = [1, 32], strides = [1, 1]} : vector<1x128xf32> to vector<1x32xf32>
    %511 = math.tanh %510 : vector<1x32xf32>
    %512 = vector.extract_strided_slice %492 {offsets = [0, 96], sizes = [1, 32], strides = [1, 1]} : vector<1x128xf32> to vector<1x32xf32>
    %513 = arith.negf %512 : vector<1x32xf32>
    %514 = math.exp %513 : vector<1x32xf32>
    %cst_98 = arith.constant 1.000000e+00 : f32
    %515 = vector.broadcast %cst_98 : f32 to vector<1x32xf32>
    %516 = arith.addf %515, %514 : vector<1x32xf32>
    %517 = arith.divf %515, %516 : vector<1x32xf32>
    %518 = arith.mulf %509, %497 : vector<1x32xf32>
    %519 = arith.mulf %503, %511 : vector<1x32xf32>
    %520 = arith.addf %518, %519 : vector<1x32xf32>
    %521 = math.tanh %520 : vector<1x32xf32>
    %522 = arith.mulf %517, %521 : vector<1x32xf32>
    %523 = vector.extract_strided_slice %486 {offsets = [0, 32], sizes = [1, 32], strides = [1, 1]} : vector<1x64xf32> to vector<1x32xf32>
    %524 = vector.extract_strided_slice %496 {offsets = [0, 0], sizes = [1, 32], strides = [1, 1]} : vector<1x128xf32> to vector<1x32xf32>
    %525 = arith.negf %524 : vector<1x32xf32>
    %526 = math.exp %525 : vector<1x32xf32>
    %cst_99 = arith.constant 1.000000e+00 : f32
    %527 = vector.broadcast %cst_99 : f32 to vector<1x32xf32>
    %528 = arith.addf %527, %526 : vector<1x32xf32>
    %529 = arith.divf %527, %528 : vector<1x32xf32>
    %530 = vector.extract_strided_slice %496 {offsets = [0, 32], sizes = [1, 32], strides = [1, 1]} : vector<1x128xf32> to vector<1x32xf32>
    %531 = arith.negf %530 : vector<1x32xf32>
    %532 = math.exp %531 : vector<1x32xf32>
    %cst_100 = arith.constant 1.000000e+00 : f32
    %533 = vector.broadcast %cst_100 : f32 to vector<1x32xf32>
    %534 = arith.addf %533, %532 : vector<1x32xf32>
    %535 = arith.divf %533, %534 : vector<1x32xf32>
    %536 = vector.extract_strided_slice %496 {offsets = [0, 64], sizes = [1, 32], strides = [1, 1]} : vector<1x128xf32> to vector<1x32xf32>
    %537 = math.tanh %536 : vector<1x32xf32>
    %538 = vector.extract_strided_slice %496 {offsets = [0, 96], sizes = [1, 32], strides = [1, 1]} : vector<1x128xf32> to vector<1x32xf32>
    %539 = arith.negf %538 : vector<1x32xf32>
    %540 = math.exp %539 : vector<1x32xf32>
    %cst_101 = arith.constant 1.000000e+00 : f32
    %541 = vector.broadcast %cst_101 : f32 to vector<1x32xf32>
    %542 = arith.addf %541, %540 : vector<1x32xf32>
    %543 = arith.divf %541, %542 : vector<1x32xf32>
    %544 = arith.mulf %535, %523 : vector<1x32xf32>
    %545 = arith.mulf %529, %537 : vector<1x32xf32>
    %546 = arith.addf %544, %545 : vector<1x32xf32>
    %547 = math.tanh %546 : vector<1x32xf32>
    %548 = arith.mulf %543, %547 : vector<1x32xf32>
    %549 = arith.index_cast %c7_i32_91 : i32 to index
    %c0_102 = arith.constant 0 : index
    %550 = vector.load %arg4[%549, %c0_102] : memref<8x64xf32, #tpu.memory_space<vmem>>, vector<1x32xf32>
    tpu.vector_store %arg4[%549, %c0_102], %522 {strides = array<i32>} : memref<8x64xf32, #tpu.memory_space<vmem>>, vector<1x32xf32>,
    %551 = arith.index_cast %487 : i32 to index
    %c32_103 = arith.constant 32 : index
    %552 = vector.load %arg4[%551, %c32_103] : memref<8x64xf32, #tpu.memory_space<vmem>>, vector<1x32xf32>
    tpu.vector_store %arg4[%551, %c32_103], %548 {strides = array<i32>} : memref<8x64xf32, #tpu.memory_space<vmem>>, vector<1x32xf32>,
    %553 = tpu.concatenate %522, %548 in 1 : vector<1x32xf32>, vector<1x32xf32> -> vector<1x64xf32>
    %554 = tpu.concatenate %520, %546 in 1 : vector<1x32xf32>, vector<1x32xf32> -> vector<1x64xf32>
    %c8_i32 = arith.constant 8 : i32
    return
  }
}

module attributes {stable_mosaic.version = 11 : i64} {
  func.func @_tag_head_kernel(%arg0: memref<8x64xf32, #tpu.memory_space<vmem>>, %arg1: memref<8x8xf32, #tpu.memory_space<vmem>>, %arg2: memref<4x64x128xf32, #tpu.memory_space<vmem>>, %arg3: memref<1x128xf32, #tpu.memory_space<vmem>>, %arg4: memref<4x128x128xf32, #tpu.memory_space<vmem>>, %arg5: memref<1x128xf32, #tpu.memory_space<vmem>>, %arg6: memref<8x128xf32, #tpu.memory_space<vmem>>) attributes {dimension_semantics = [], scalar_prefetch = 0 : i64, scratch_operands = 0 : i64, tpu.core_type = #tpu.core_type<tc>} {
    %c0 = arith.constant 0 : index
    %c0_0 = arith.constant 0 : index
    %0 = vector.load %arg1[%c0, %c0_0] : memref<8x8xf32, #tpu.memory_space<vmem>>, vector<8x8xf32>
    %1 = arith.truncf %0 : vector<8x8xf32> to vector<8x8xbf16>
    %c0_1 = arith.constant 0 : index
    %c0_2 = arith.constant 0 : index
    %2 = vector.load %arg0[%c0_1, %c0_2] : memref<8x64xf32, #tpu.memory_space<vmem>>, vector<8x64xf32>
    %c0_3 = arith.constant 0 : index
    %c0_4 = arith.constant 0 : index
    %3 = vector.load %arg3[%c0_3, %c0_4] : memref<1x128xf32, #tpu.memory_space<vmem>>, vector<1x128xf32>
    %4 = arith.truncf %2 : vector<8x64xf32> to vector<8x64xbf16>
    %c0_5 = arith.constant 0 : index
    %c0_6 = arith.constant 0 : index
    %c0_7 = arith.constant 0 : index
    %5 = vector.load %arg2[%c0_5, %c0_6, %c0_7] : memref<4x64x128xf32, #tpu.memory_space<vmem>>, vector<1x64x128xf32>
    %6 = vector.shape_cast %5 : vector<1x64x128xf32> to vector<64x128xf32>
    %7 = arith.truncf %6 : vector<64x128xf32> to vector<64x128xbf16>
    %cst = arith.constant dense<0.000000e+00> : vector<8x128xf32>
    %8 = tpu.matmul %4, %7, %cst {dimension_numbers = #tpu.dot_dimension_numbers<[1], [0], [0], [1], [0, 0, 1, 1], [], []>} : vector<8x64xbf16>, vector<64x128xbf16>, vector<8x128xf32> -> vector<8x128xf32>
    %cst_8 = arith.constant dense<0.000000e+00> : vector<8x64xf32>
    %9 = tpu.matmul %1, %4, %cst_8 {dimension_numbers = #tpu.dot_dimension_numbers<[1], [0], [0], [1], [0, 0, 1, 1], [], []>} : vector<8x8xbf16>, vector<8x64xbf16>, vector<8x64xf32> -> vector<8x64xf32>
    %10 = arith.truncf %9 : vector<8x64xf32> to vector<8x64xbf16>
    %c1 = arith.constant 1 : index
    %c0_9 = arith.constant 0 : index
    %c0_10 = arith.constant 0 : index
    %11 = vector.load %arg2[%c1, %c0_9, %c0_10] : memref<4x64x128xf32, #tpu.memory_space<vmem>>, vector<1x64x128xf32>
    %12 = vector.shape_cast %11 : vector<1x64x128xf32> to vector<64x128xf32>
    %13 = arith.truncf %12 : vector<64x128xf32> to vector<64x128xbf16>
    %cst_11 = arith.constant dense<0.000000e+00> : vector<8x128xf32>
    %14 = tpu.matmul %10, %13, %cst_11 {dimension_numbers = #tpu.dot_dimension_numbers<[1], [0], [0], [1], [0, 0, 1, 1], [], []>} : vector<8x64xbf16>, vector<64x128xbf16>, vector<8x128xf32> -> vector<8x128xf32>
    %15 = arith.addf %8, %14 : vector<8x128xf32>
    %cst_12 = arith.constant dense<0.000000e+00> : vector<8x64xf32>
    %16 = tpu.matmul %1, %10, %cst_12 {dimension_numbers = #tpu.dot_dimension_numbers<[1], [0], [0], [1], [0, 0, 1, 1], [], []>} : vector<8x8xbf16>, vector<8x64xbf16>, vector<8x64xf32> -> vector<8x64xf32>
    %17 = arith.truncf %16 : vector<8x64xf32> to vector<8x64xbf16>
    %c2 = arith.constant 2 : index
    %c0_13 = arith.constant 0 : index
    %c0_14 = arith.constant 0 : index
    %18 = vector.load %arg2[%c2, %c0_13, %c0_14] : memref<4x64x128xf32, #tpu.memory_space<vmem>>, vector<1x64x128xf32>
    %19 = vector.shape_cast %18 : vector<1x64x128xf32> to vector<64x128xf32>
    %20 = arith.truncf %19 : vector<64x128xf32> to vector<64x128xbf16>
    %cst_15 = arith.constant dense<0.000000e+00> : vector<8x128xf32>
    %21 = tpu.matmul %17, %20, %cst_15 {dimension_numbers = #tpu.dot_dimension_numbers<[1], [0], [0], [1], [0, 0, 1, 1], [], []>} : vector<8x64xbf16>, vector<64x128xbf16>, vector<8x128xf32> -> vector<8x128xf32>
    %22 = arith.addf %15, %21 : vector<8x128xf32>
    %cst_16 = arith.constant dense<0.000000e+00> : vector<8x64xf32>
    %23 = tpu.matmul %1, %17, %cst_16 {dimension_numbers = #tpu.dot_dimension_numbers<[1], [0], [0], [1], [0, 0, 1, 1], [], []>} : vector<8x8xbf16>, vector<8x64xbf16>, vector<8x64xf32> -> vector<8x64xf32>
    %24 = arith.truncf %23 : vector<8x64xf32> to vector<8x64xbf16>
    %c3 = arith.constant 3 : index
    %c0_17 = arith.constant 0 : index
    %c0_18 = arith.constant 0 : index
    %25 = vector.load %arg2[%c3, %c0_17, %c0_18] : memref<4x64x128xf32, #tpu.memory_space<vmem>>, vector<1x64x128xf32>
    %26 = vector.shape_cast %25 : vector<1x64x128xf32> to vector<64x128xf32>
    %27 = arith.truncf %26 : vector<64x128xf32> to vector<64x128xbf16>
    %cst_19 = arith.constant dense<0.000000e+00> : vector<8x128xf32>
    %28 = tpu.matmul %24, %27, %cst_19 {dimension_numbers = #tpu.dot_dimension_numbers<[1], [0], [0], [1], [0, 0, 1, 1], [], []>} : vector<8x64xbf16>, vector<64x128xbf16>, vector<8x128xf32> -> vector<8x128xf32>
    %29 = arith.addf %22, %28 : vector<8x128xf32>
    %30 = vector.broadcast %3 : vector<1x128xf32> to vector<8x128xf32>
    %31 = arith.addf %29, %30 : vector<8x128xf32>
    %c0_20 = arith.constant 0 : index
    %c0_21 = arith.constant 0 : index
    %32 = vector.load %arg5[%c0_20, %c0_21] : memref<1x128xf32, #tpu.memory_space<vmem>>, vector<1x128xf32>
    %33 = arith.truncf %31 : vector<8x128xf32> to vector<8x128xbf16>
    %c0_22 = arith.constant 0 : index
    %c0_23 = arith.constant 0 : index
    %c0_24 = arith.constant 0 : index
    %34 = vector.load %arg4[%c0_22, %c0_23, %c0_24] : memref<4x128x128xf32, #tpu.memory_space<vmem>>, vector<1x128x128xf32>
    %35 = vector.shape_cast %34 : vector<1x128x128xf32> to vector<128x128xf32>
    %36 = arith.truncf %35 : vector<128x128xf32> to vector<128x128xbf16>
    %cst_25 = arith.constant dense<0.000000e+00> : vector<8x128xf32>
    %37 = tpu.matmul %33, %36, %cst_25 {dimension_numbers = #tpu.dot_dimension_numbers<[1], [0], [0], [1], [0, 0, 1, 1], [], []>} : vector<8x128xbf16>, vector<128x128xbf16>, vector<8x128xf32> -> vector<8x128xf32>
    %cst_26 = arith.constant dense<0.000000e+00> : vector<8x128xf32>
    %38 = tpu.matmul %1, %33, %cst_26 {dimension_numbers = #tpu.dot_dimension_numbers<[1], [0], [0], [1], [0, 0, 1, 1], [], []>} : vector<8x8xbf16>, vector<8x128xbf16>, vector<8x128xf32> -> vector<8x128xf32>
    %39 = arith.truncf %38 : vector<8x128xf32> to vector<8x128xbf16>
    %c1_27 = arith.constant 1 : index
    %c0_28 = arith.constant 0 : index
    %c0_29 = arith.constant 0 : index
    %40 = vector.load %arg4[%c1_27, %c0_28, %c0_29] : memref<4x128x128xf32, #tpu.memory_space<vmem>>, vector<1x128x128xf32>
    %41 = vector.shape_cast %40 : vector<1x128x128xf32> to vector<128x128xf32>
    %42 = arith.truncf %41 : vector<128x128xf32> to vector<128x128xbf16>
    %cst_30 = arith.constant dense<0.000000e+00> : vector<8x128xf32>
    %43 = tpu.matmul %39, %42, %cst_30 {dimension_numbers = #tpu.dot_dimension_numbers<[1], [0], [0], [1], [0, 0, 1, 1], [], []>} : vector<8x128xbf16>, vector<128x128xbf16>, vector<8x128xf32> -> vector<8x128xf32>
    %44 = arith.addf %37, %43 : vector<8x128xf32>
    %cst_31 = arith.constant dense<0.000000e+00> : vector<8x128xf32>
    %45 = tpu.matmul %1, %39, %cst_31 {dimension_numbers = #tpu.dot_dimension_numbers<[1], [0], [0], [1], [0, 0, 1, 1], [], []>} : vector<8x8xbf16>, vector<8x128xbf16>, vector<8x128xf32> -> vector<8x128xf32>
    %46 = arith.truncf %45 : vector<8x128xf32> to vector<8x128xbf16>
    %c2_32 = arith.constant 2 : index
    %c0_33 = arith.constant 0 : index
    %c0_34 = arith.constant 0 : index
    %47 = vector.load %arg4[%c2_32, %c0_33, %c0_34] : memref<4x128x128xf32, #tpu.memory_space<vmem>>, vector<1x128x128xf32>
    %48 = vector.shape_cast %47 : vector<1x128x128xf32> to vector<128x128xf32>
    %49 = arith.truncf %48 : vector<128x128xf32> to vector<128x128xbf16>
    %cst_35 = arith.constant dense<0.000000e+00> : vector<8x128xf32>
    %50 = tpu.matmul %46, %49, %cst_35 {dimension_numbers = #tpu.dot_dimension_numbers<[1], [0], [0], [1], [0, 0, 1, 1], [], []>} : vector<8x128xbf16>, vector<128x128xbf16>, vector<8x128xf32> -> vector<8x128xf32>
    %51 = arith.addf %44, %50 : vector<8x128xf32>
    %cst_36 = arith.constant dense<0.000000e+00> : vector<8x128xf32>
    %52 = tpu.matmul %1, %46, %cst_36 {dimension_numbers = #tpu.dot_dimension_numbers<[1], [0], [0], [1], [0, 0, 1, 1], [], []>} : vector<8x8xbf16>, vector<8x128xbf16>, vector<8x128xf32> -> vector<8x128xf32>
    %53 = arith.truncf %52 : vector<8x128xf32> to vector<8x128xbf16>
    %c3_37 = arith.constant 3 : index
    %c0_38 = arith.constant 0 : index
    %c0_39 = arith.constant 0 : index
    %54 = vector.load %arg4[%c3_37, %c0_38, %c0_39] : memref<4x128x128xf32, #tpu.memory_space<vmem>>, vector<1x128x128xf32>
    %55 = vector.shape_cast %54 : vector<1x128x128xf32> to vector<128x128xf32>
    %56 = arith.truncf %55 : vector<128x128xf32> to vector<128x128xbf16>
    %cst_40 = arith.constant dense<0.000000e+00> : vector<8x128xf32>
    %57 = tpu.matmul %53, %56, %cst_40 {dimension_numbers = #tpu.dot_dimension_numbers<[1], [0], [0], [1], [0, 0, 1, 1], [], []>} : vector<8x128xbf16>, vector<128x128xbf16>, vector<8x128xf32> -> vector<8x128xf32>
    %58 = arith.addf %51, %57 : vector<8x128xf32>
    %59 = vector.broadcast %32 : vector<1x128xf32> to vector<8x128xf32>
    %60 = arith.addf %58, %59 : vector<8x128xf32>
    %61 = tpu.iota {dimensions = array<i32: 1>} : vector<8x128xi32>
    %c2_i32 = arith.constant 2 : i32
    %62 = vector.broadcast %c2_i32 : i32 to vector<8x128xi32>
    %63 = arith.cmpi slt, %61, %62 : vector<8x128xi32>
    %cst_41 = arith.constant 0xFF800000 : f32
    %64 = vector.broadcast %cst_41 : f32 to vector<8x128xf32>
    %65 = arith.select %63, %60, %64 : vector<8x128xi1>, vector<8x128xf32>
    %cst_42 = arith.constant dense<0xFF800000> : vector<8xf32>
    %66 = vector.multi_reduction <maximumf>, %65, %cst_42 [1] : vector<8x128xf32> to vector<8xf32>
    %67 = vector.shape_cast %66 : vector<8xf32> to vector<8x1xf32>
    %68 = vector.broadcast %67 : vector<8x1xf32> to vector<8x128xf32>
    %69 = arith.subf %65, %68 : vector<8x128xf32>
    %70 = math.exp %69 : vector<8x128xf32>
    %cst_43 = arith.constant dense<0.000000e+00> : vector<8xf32>
    %71 = vector.multi_reduction <add>, %70, %cst_43 [1] : vector<8x128xf32> to vector<8xf32>
    %72 = vector.shape_cast %71 : vector<8xf32> to vector<8x1xf32>
    %73 = math.log %72 : vector<8x1xf32>
    %74 = vector.broadcast %73 : vector<8x1xf32> to vector<8x128xf32>
    %75 = arith.subf %69, %74 : vector<8x128xf32>
    %c0_44 = arith.constant 0 : index
    %c0_45 = arith.constant 0 : index
    %76 = vector.load %arg6[%c0_44, %c0_45] : memref<8x128xf32, #tpu.memory_space<vmem>>, vector<8x128xf32>
    tpu.vector_store %arg6[%c0_44, %c0_45], %75 {strides = array<i32>} : memref<8x128xf32, #tpu.memory_space<vmem>>, vector<8x128xf32>,
    return
  }
}

module attributes {stable_mosaic.version = 11 : i64} {
  func.func @_bilstm_kernel(%arg0: memref<8x16xf32, #tpu.memory_space<vmem>>, %arg1: memref<16x256xf32, #tpu.memory_space<vmem>>, %arg2: memref<64x256xf32, #tpu.memory_space<vmem>>, %arg3: memref<1x256xf32, #tpu.memory_space<vmem>>, %arg4: memref<8x64xf32, #tpu.memory_space<vmem>>, %arg5: memref<8x256xf32, #tpu.memory_space<vmem>>) attributes {dimension_semantics = [], scalar_prefetch = 0 : i64, scratch_operands = 1 : i64, tpu.core_type = #tpu.core_type<tc>} {
    %c0 = arith.constant 0 : index
    %c0_0 = arith.constant 0 : index
    %0 = vector.load %arg0[%c0, %c0_0] : memref<8x16xf32, #tpu.memory_space<vmem>>, vector<8x16xf32>
    %1 = arith.truncf %0 : vector<8x16xf32> to vector<8x16xbf16>
    %c0_1 = arith.constant 0 : index
    %c0_2 = arith.constant 0 : index
    %2 = vector.load %arg1[%c0_1, %c0_2] : memref<16x256xf32, #tpu.memory_space<vmem>>, vector<16x256xf32>
    %3 = arith.truncf %2 : vector<16x256xf32> to vector<16x256xbf16>
    %cst = arith.constant dense<0.000000e+00> : vector<8x256xf32>
    %4 = tpu.matmul %1, %3, %cst {dimension_numbers = #tpu.dot_dimension_numbers<[1], [0], [0], [1], [0, 0, 1, 1], [], []>} : vector<8x16xbf16>, vector<16x256xbf16>, vector<8x256xf32> -> vector<8x256xf32>
    %c0_3 = arith.constant 0 : index
    %c0_4 = arith.constant 0 : index
    %5 = vector.load %arg3[%c0_3, %c0_4] : memref<1x256xf32, #tpu.memory_space<vmem>>, vector<1x256xf32>
    %6 = vector.broadcast %5 : vector<1x256xf32> to vector<8x256xf32>
    %7 = arith.addf %4, %6 : vector<8x256xf32>
    %c0_5 = arith.constant 0 : index
    %c0_6 = arith.constant 0 : index
    %8 = vector.load %arg5[%c0_5, %c0_6] : memref<8x256xf32, #tpu.memory_space<vmem>>, vector<8x256xf32>
    tpu.vector_store %arg5[%c0_5, %c0_6], %7 {strides = array<i32>} : memref<8x256xf32, #tpu.memory_space<vmem>>, vector<8x256xf32>,
    %c0_7 = arith.constant 0 : index
    %c0_8 = arith.constant 0 : index
    %9 = vector.load %arg2[%c0_7, %c0_8] : memref<64x256xf32, #tpu.memory_space<vmem>>, vector<64x256xf32>
    %cst_9 = arith.constant 0.000000e+00 : f32
    %10 = vector.broadcast %cst_9 : f32 to vector<1x64xf32>
    %c0_i32 = arith.constant 0 : i32
    %c7_i32 = arith.constant 7 : i32
    %11 = arith.subi %c7_i32, %c0_i32 : i32
    %cst_10 = arith.constant dense<0.000000e+00> : vector<1x256xf32>
    %12 = tpu.matmul %10, %9, %cst_10 {dimension_numbers = #tpu.dot_dimension_numbers<[1], [0], [0], [1], [0, 0, 1, 1], [], []>} : vector<1x64xf32>, vector<64x256xf32>, vector<1x256xf32> -> vector<1x256xf32>
    %13 = arith.index_cast %c0_i32 : i32 to index
    %c0_11 = arith.constant 0 : index
    %14 = vector.load %arg5[%13, %c0_11] : memref<8x256xf32, #tpu.memory_space<vmem>>, vector<1x128xf32>
    %15 = vector.extract_strided_slice %12 {offsets = [0, 0], sizes = [1, 128], strides = [1, 1]} : vector<1x256xf32> to vector<1x128xf32>
    %16 = arith.addf %14, %15 : vector<1x128xf32>
    %17 = arith.index_cast %11 : i32 to index
    %c128 = arith.constant 128 : index
    %18 = vector.load %arg5[%17, %c128] : memref<8x256xf32, #tpu.memory_space<vmem>>, vector<1x128xf32>
    %19 = vector.extract_strided_slice %12 {offsets = [0, 128], sizes = [1, 128], strides = [1, 1]} : vector<1x256xf32> to vector<1x128xf32>
    %20 = arith.addf %18, %19 : vector<1x128xf32>
    %21 = vector.extract_strided_slice %10 {offsets = [0, 0], sizes = [1, 32], strides = [1, 1]} : vector<1x64xf32> to vector<1x32xf32>
    %22 = vector.extract_strided_slice %16 {offsets = [0, 0], sizes = [1, 32], strides = [1, 1]} : vector<1x128xf32> to vector<1x32xf32>
    %23 = arith.negf %22 : vector<1x32xf32>
    %24 = math.exp %23 : vector<1x32xf32>
    %cst_12 = arith.constant 1.000000e+00 : f32
    %25 = vector.broadcast %cst_12 : f32 to vector<1x32xf32>
    %26 = arith.addf %25, %24 : vector<1x32xf32>
    %27 = arith.divf %25, %26 : vector<1x32xf32>
    %28 = vector.extract_strided_slice %16 {offsets = [0, 32], sizes = [1, 32], strides = [1, 1]} : vector<1x128xf32> to vector<1x32xf32>
    %29 = arith.negf %28 : vector<1x32xf32>
    %30 = math.exp %29 : vector<1x32xf32>
    %cst_13 = arith.constant 1.000000e+00 : f32
    %31 = vector.broadcast %cst_13 : f32 to vector<1x32xf32>
    %32 = arith.addf %31, %30 : vector<1x32xf32>
    %33 = arith.divf %31, %32 : vector<1x32xf32>
    %34 = vector.extract_strided_slice %16 {offsets = [0, 64], sizes = [1, 32], strides = [1, 1]} : vector<1x128xf32> to vector<1x32xf32>
    %35 = math.tanh %34 : vector<1x32xf32>
    %36 = vector.extract_strided_slice %16 {offsets = [0, 96], sizes = [1, 32], strides = [1, 1]} : vector<1x128xf32> to vector<1x32xf32>
    %37 = arith.negf %36 : vector<1x32xf32>
    %38 = math.exp %37 : vector<1x32xf32>
    %cst_14 = arith.constant 1.000000e+00 : f32
    %39 = vector.broadcast %cst_14 : f32 to vector<1x32xf32>
    %40 = arith.addf %39, %38 : vector<1x32xf32>
    %41 = arith.divf %39, %40 : vector<1x32xf32>
    %42 = arith.mulf %33, %21 : vector<1x32xf32>
    %43 = arith.mulf %27, %35 : vector<1x32xf32>
    %44 = arith.addf %42, %43 : vector<1x32xf32>
    %45 = math.tanh %44 : vector<1x32xf32>
    %46 = arith.mulf %41, %45 : vector<1x32xf32>
    %47 = vector.extract_strided_slice %10 {offsets = [0, 32], sizes = [1, 32], strides = [1, 1]} : vector<1x64xf32> to vector<1x32xf32>
    %48 = vector.extract_strided_slice %20 {offsets = [0, 0], sizes = [1, 32], strides = [1, 1]} : vector<1x128xf32> to vector<1x32xf32>
    %49 = arith.negf %48 : vector<1x32xf32>
    %50 = math.exp %49 : vector<1x32xf32>
    %cst_15 = arith.constant 1.000000e+00 : f32
    %51 = vector.broadcast %cst_15 : f32 to vector<1x32xf32>
    %52 = arith.addf %51, %50 : vector<1x32xf32>
    %53 = arith.divf %51, %52 : vector<1x32xf32>
    %54 = vector.extract_strided_slice %20 {offsets = [0, 32], sizes = [1, 32], strides = [1, 1]} : vector<1x128xf32> to vector<1x32xf32>
    %55 = arith.negf %54 : vector<1x32xf32>
    %56 = math.exp %55 : vector<1x32xf32>
    %cst_16 = arith.constant 1.000000e+00 : f32
    %57 = vector.broadcast %cst_16 : f32 to vector<1x32xf32>
    %58 = arith.addf %57, %56 : vector<1x32xf32>
    %59 = arith.divf %57, %58 : vector<1x32xf32>
    %60 = vector.extract_strided_slice %20 {offsets = [0, 64], sizes = [1, 32], strides = [1, 1]} : vector<1x128xf32> to vector<1x32xf32>
    %61 = math.tanh %60 : vector<1x32xf32>
    %62 = vector.extract_strided_slice %20 {offsets = [0, 96], sizes = [1, 32], strides = [1, 1]} : vector<1x128xf32> to vector<1x32xf32>
    %63 = arith.negf %62 : vector<1x32xf32>
    %64 = math.exp %63 : vector<1x32xf32>
    %cst_17 = arith.constant 1.000000e+00 : f32
    %65 = vector.broadcast %cst_17 : f32 to vector<1x32xf32>
    %66 = arith.addf %65, %64 : vector<1x32xf32>
    %67 = arith.divf %65, %66 : vector<1x32xf32>
    %68 = arith.mulf %59, %47 : vector<1x32xf32>
    %69 = arith.mulf %53, %61 : vector<1x32xf32>
    %70 = arith.addf %68, %69 : vector<1x32xf32>
    %71 = math.tanh %70 : vector<1x32xf32>
    %72 = arith.mulf %67, %71 : vector<1x32xf32>
    %73 = arith.index_cast %c0_i32 : i32 to index
    %c0_18 = arith.constant 0 : index
    %74 = vector.load %arg4[%73, %c0_18] : memref<8x64xf32, #tpu.memory_space<vmem>>, vector<1x32xf32>
    tpu.vector_store %arg4[%73, %c0_18], %46 {strides = array<i32>} : memref<8x64xf32, #tpu.memory_space<vmem>>, vector<1x32xf32>,
    %75 = arith.index_cast %11 : i32 to index
    %c32 = arith.constant 32 : index
    %76 = vector.load %arg4[%75, %c32] : memref<8x64xf32, #tpu.memory_space<vmem>>, vector<1x32xf32>
    tpu.vector_store %arg4[%75, %c32], %72 {strides = array<i32>} : memref<8x64xf32, #tpu.memory_space<vmem>>, vector<1x32xf32>,
    %77 = tpu.concatenate %46, %72 in 1 : vector<1x32xf32>, vector<1x32xf32> -> vector<1x64xf32>
    %78 = tpu.concatenate %44, %70 in 1 : vector<1x32xf32>, vector<1x32xf32> -> vector<1x64xf32>
    %c1_i32 = arith.constant 1 : i32
    %c7_i32_19 = arith.constant 7 : i32
    %79 = arith.subi %c7_i32_19, %c1_i32 : i32
    %cst_20 = arith.constant dense<0.000000e+00> : vector<1x256xf32>
    %80 = tpu.matmul %77, %9, %cst_20 {dimension_numbers = #tpu.dot_dimension_numbers<[1], [0], [0], [1], [0, 0, 1, 1], [], []>} : vector<1x64xf32>, vector<64x256xf32>, vector<1x256xf32> -> vector<1x256xf32>
    %81 = arith.index_cast %c1_i32 : i32 to index
    %c0_21 = arith.constant 0 : index
    %82 = vector.load %arg5[%81, %c0_21] : memref<8x256xf32, #tpu.memory_space<vmem>>, vector<1x128xf32>
    %83 = vector.extract_strided_slice %80 {offsets = [0, 0], sizes = [1, 128], strides = [1, 1]} : vector<1x256xf32> to vector<1x128xf32>
    %84 = arith.addf %82, %83 : vector<1x128xf32>
    %85 = arith.index_cast %79 : i32 to index
    %c128_22 = arith.constant 128 : index
    %86 = vector.load %arg5[%85, %c128_22] : memref<8x256xf32, #tpu.memory_space<vmem>>, vector<1x128xf32>
    %87 = vector.extract_strided_slice %80 {offsets = [0, 128], sizes = [1, 128], strides = [1, 1]} : vector<1x256xf32> to vector<1x128xf32>
    %88 = arith.addf %86, %87 : vector<1x128xf32>
    %89 = vector.extract_strided_slice %78 {offsets = [0, 0], sizes = [1, 32], strides = [1, 1]} : vector<1x64xf32> to vector<1x32xf32>
    %90 = vector.extract_strided_slice %84 {offsets = [0, 0], sizes = [1, 32], strides = [1, 1]} : vector<1x128xf32> to vector<1x32xf32>
    %91 = arith.negf %90 : vector<1x32xf32>
    %92 = math.exp %91 : vector<1x32xf32>
    %cst_23 = arith.constant 1.000000e+00 : f32
    %93 = vector.broadcast %cst_23 : f32 to vector<1x32xf32>
    %94 = arith.addf %93, %92 : vector<1x32xf32>
    %95 = arith.divf %93, %94 : vector<1x32xf32>
    %96 = vector.extract_strided_slice %84 {offsets = [0, 32], sizes = [1, 32], strides = [1, 1]} : vector<1x128xf32> to vector<1x32xf32>
    %97 = arith.negf %96 : vector<1x32xf32>
    %98 = math.exp %97 : vector<1x32xf32>
    %cst_24 = arith.constant 1.000000e+00 : f32
    %99 = vector.broadcast %cst_24 : f32 to vector<1x32xf32>
    %100 = arith.addf %99, %98 : vector<1x32xf32>
    %101 = arith.divf %99, %100 : vector<1x32xf32>
    %102 = vector.extract_strided_slice %84 {offsets = [0, 64], sizes = [1, 32], strides = [1, 1]} : vector<1x128xf32> to vector<1x32xf32>
    %103 = math.tanh %102 : vector<1x32xf32>
    %104 = vector.extract_strided_slice %84 {offsets = [0, 96], sizes = [1, 32], strides = [1, 1]} : vector<1x128xf32> to vector<1x32xf32>
    %105 = arith.negf %104 : vector<1x32xf32>
    %106 = math.exp %105 : vector<1x32xf32>
    %cst_25 = arith.constant 1.000000e+00 : f32
    %107 = vector.broadcast %cst_25 : f32 to vector<1x32xf32>
    %108 = arith.addf %107, %106 : vector<1x32xf32>
    %109 = arith.divf %107, %108 : vector<1x32xf32>
    %110 = arith.mulf %101, %89 : vector<1x32xf32>
    %111 = arith.mulf %95, %103 : vector<1x32xf32>
    %112 = arith.addf %110, %111 : vector<1x32xf32>
    %113 = math.tanh %112 : vector<1x32xf32>
    %114 = arith.mulf %109, %113 : vector<1x32xf32>
    %115 = vector.extract_strided_slice %78 {offsets = [0, 32], sizes = [1, 32], strides = [1, 1]} : vector<1x64xf32> to vector<1x32xf32>
    %116 = vector.extract_strided_slice %88 {offsets = [0, 0], sizes = [1, 32], strides = [1, 1]} : vector<1x128xf32> to vector<1x32xf32>
    %117 = arith.negf %116 : vector<1x32xf32>
    %118 = math.exp %117 : vector<1x32xf32>
    %cst_26 = arith.constant 1.000000e+00 : f32
    %119 = vector.broadcast %cst_26 : f32 to vector<1x32xf32>
    %120 = arith.addf %119, %118 : vector<1x32xf32>
    %121 = arith.divf %119, %120 : vector<1x32xf32>
    %122 = vector.extract_strided_slice %88 {offsets = [0, 32], sizes = [1, 32], strides = [1, 1]} : vector<1x128xf32> to vector<1x32xf32>
    %123 = arith.negf %122 : vector<1x32xf32>
    %124 = math.exp %123 : vector<1x32xf32>
    %cst_27 = arith.constant 1.000000e+00 : f32
    %125 = vector.broadcast %cst_27 : f32 to vector<1x32xf32>
    %126 = arith.addf %125, %124 : vector<1x32xf32>
    %127 = arith.divf %125, %126 : vector<1x32xf32>
    %128 = vector.extract_strided_slice %88 {offsets = [0, 64], sizes = [1, 32], strides = [1, 1]} : vector<1x128xf32> to vector<1x32xf32>
    %129 = math.tanh %128 : vector<1x32xf32>
    %130 = vector.extract_strided_slice %88 {offsets = [0, 96], sizes = [1, 32], strides = [1, 1]} : vector<1x128xf32> to vector<1x32xf32>
    %131 = arith.negf %130 : vector<1x32xf32>
    %132 = math.exp %131 : vector<1x32xf32>
    %cst_28 = arith.constant 1.000000e+00 : f32
    %133 = vector.broadcast %cst_28 : f32 to vector<1x32xf32>
    %134 = arith.addf %133, %132 : vector<1x32xf32>
    %135 = arith.divf %133, %134 : vector<1x32xf32>
    %136 = arith.mulf %127, %115 : vector<1x32xf32>
    %137 = arith.mulf %121, %129 : vector<1x32xf32>
    %138 = arith.addf %136, %137 : vector<1x32xf32>
    %139 = math.tanh %138 : vector<1x32xf32>
    %140 = arith.mulf %135, %139 : vector<1x32xf32>
    %141 = arith.index_cast %c1_i32 : i32 to index
    %c0_29 = arith.constant 0 : index
    %142 = vector.load %arg4[%141, %c0_29] : memref<8x64xf32, #tpu.memory_space<vmem>>, vector<1x32xf32>
    tpu.vector_store %arg4[%141, %c0_29], %114 {strides = array<i32>} : memref<8x64xf32, #tpu.memory_space<vmem>>, vector<1x32xf32>,
    %143 = arith.index_cast %79 : i32 to index
    %c32_30 = arith.constant 32 : index
    %144 = vector.load %arg4[%143, %c32_30] : memref<8x64xf32, #tpu.memory_space<vmem>>, vector<1x32xf32>
    tpu.vector_store %arg4[%143, %c32_30], %140 {strides = array<i32>} : memref<8x64xf32, #tpu.memory_space<vmem>>, vector<1x32xf32>,
    %145 = tpu.concatenate %114, %140 in 1 : vector<1x32xf32>, vector<1x32xf32> -> vector<1x64xf32>
    %146 = tpu.concatenate %112, %138 in 1 : vector<1x32xf32>, vector<1x32xf32> -> vector<1x64xf32>
    %c2_i32 = arith.constant 2 : i32
    %c7_i32_31 = arith.constant 7 : i32
    %147 = arith.subi %c7_i32_31, %c2_i32 : i32
    %cst_32 = arith.constant dense<0.000000e+00> : vector<1x256xf32>
    %148 = tpu.matmul %145, %9, %cst_32 {dimension_numbers = #tpu.dot_dimension_numbers<[1], [0], [0], [1], [0, 0, 1, 1], [], []>} : vector<1x64xf32>, vector<64x256xf32>, vector<1x256xf32> -> vector<1x256xf32>
    %149 = arith.index_cast %c2_i32 : i32 to index
    %c0_33 = arith.constant 0 : index
    %150 = vector.load %arg5[%149, %c0_33] : memref<8x256xf32, #tpu.memory_space<vmem>>, vector<1x128xf32>
    %151 = vector.extract_strided_slice %148 {offsets = [0, 0], sizes = [1, 128], strides = [1, 1]} : vector<1x256xf32> to vector<1x128xf32>
    %152 = arith.addf %150, %151 : vector<1x128xf32>
    %153 = arith.index_cast %147 : i32 to index
    %c128_34 = arith.constant 128 : index
    %154 = vector.load %arg5[%153, %c128_34] : memref<8x256xf32, #tpu.memory_space<vmem>>, vector<1x128xf32>
    %155 = vector.extract_strided_slice %148 {offsets = [0, 128], sizes = [1, 128], strides = [1, 1]} : vector<1x256xf32> to vector<1x128xf32>
    %156 = arith.addf %154, %155 : vector<1x128xf32>
    %157 = vector.extract_strided_slice %146 {offsets = [0, 0], sizes = [1, 32], strides = [1, 1]} : vector<1x64xf32> to vector<1x32xf32>
    %158 = vector.extract_strided_slice %152 {offsets = [0, 0], sizes = [1, 32], strides = [1, 1]} : vector<1x128xf32> to vector<1x32xf32>
    %159 = arith.negf %158 : vector<1x32xf32>
    %160 = math.exp %159 : vector<1x32xf32>
    %cst_35 = arith.constant 1.000000e+00 : f32
    %161 = vector.broadcast %cst_35 : f32 to vector<1x32xf32>
    %162 = arith.addf %161, %160 : vector<1x32xf32>
    %163 = arith.divf %161, %162 : vector<1x32xf32>
    %164 = vector.extract_strided_slice %152 {offsets = [0, 32], sizes = [1, 32], strides = [1, 1]} : vector<1x128xf32> to vector<1x32xf32>
    %165 = arith.negf %164 : vector<1x32xf32>
    %166 = math.exp %165 : vector<1x32xf32>
    %cst_36 = arith.constant 1.000000e+00 : f32
    %167 = vector.broadcast %cst_36 : f32 to vector<1x32xf32>
    %168 = arith.addf %167, %166 : vector<1x32xf32>
    %169 = arith.divf %167, %168 : vector<1x32xf32>
    %170 = vector.extract_strided_slice %152 {offsets = [0, 64], sizes = [1, 32], strides = [1, 1]} : vector<1x128xf32> to vector<1x32xf32>
    %171 = math.tanh %170 : vector<1x32xf32>
    %172 = vector.extract_strided_slice %152 {offsets = [0, 96], sizes = [1, 32], strides = [1, 1]} : vector<1x128xf32> to vector<1x32xf32>
    %173 = arith.negf %172 : vector<1x32xf32>
    %174 = math.exp %173 : vector<1x32xf32>
    %cst_37 = arith.constant 1.000000e+00 : f32
    %175 = vector.broadcast %cst_37 : f32 to vector<1x32xf32>
    %176 = arith.addf %175, %174 : vector<1x32xf32>
    %177 = arith.divf %175, %176 : vector<1x32xf32>
    %178 = arith.mulf %169, %157 : vector<1x32xf32>
    %179 = arith.mulf %163, %171 : vector<1x32xf32>
    %180 = arith.addf %178, %179 : vector<1x32xf32>
    %181 = math.tanh %180 : vector<1x32xf32>
    %182 = arith.mulf %177, %181 : vector<1x32xf32>
    %183 = vector.extract_strided_slice %146 {offsets = [0, 32], sizes = [1, 32], strides = [1, 1]} : vector<1x64xf32> to vector<1x32xf32>
    %184 = vector.extract_strided_slice %156 {offsets = [0, 0], sizes = [1, 32], strides = [1, 1]} : vector<1x128xf32> to vector<1x32xf32>
    %185 = arith.negf %184 : vector<1x32xf32>
    %186 = math.exp %185 : vector<1x32xf32>
    %cst_38 = arith.constant 1.000000e+00 : f32
    %187 = vector.broadcast %cst_38 : f32 to vector<1x32xf32>
    %188 = arith.addf %187, %186 : vector<1x32xf32>
    %189 = arith.divf %187, %188 : vector<1x32xf32>
    %190 = vector.extract_strided_slice %156 {offsets = [0, 32], sizes = [1, 32], strides = [1, 1]} : vector<1x128xf32> to vector<1x32xf32>
    %191 = arith.negf %190 : vector<1x32xf32>
    %192 = math.exp %191 : vector<1x32xf32>
    %cst_39 = arith.constant 1.000000e+00 : f32
    %193 = vector.broadcast %cst_39 : f32 to vector<1x32xf32>
    %194 = arith.addf %193, %192 : vector<1x32xf32>
    %195 = arith.divf %193, %194 : vector<1x32xf32>
    %196 = vector.extract_strided_slice %156 {offsets = [0, 64], sizes = [1, 32], strides = [1, 1]} : vector<1x128xf32> to vector<1x32xf32>
    %197 = math.tanh %196 : vector<1x32xf32>
    %198 = vector.extract_strided_slice %156 {offsets = [0, 96], sizes = [1, 32], strides = [1, 1]} : vector<1x128xf32> to vector<1x32xf32>
    %199 = arith.negf %198 : vector<1x32xf32>
    %200 = math.exp %199 : vector<1x32xf32>
    %cst_40 = arith.constant 1.000000e+00 : f32
    %201 = vector.broadcast %cst_40 : f32 to vector<1x32xf32>
    %202 = arith.addf %201, %200 : vector<1x32xf32>
    %203 = arith.divf %201, %202 : vector<1x32xf32>
    %204 = arith.mulf %195, %183 : vector<1x32xf32>
    %205 = arith.mulf %189, %197 : vector<1x32xf32>
    %206 = arith.addf %204, %205 : vector<1x32xf32>
    %207 = math.tanh %206 : vector<1x32xf32>
    %208 = arith.mulf %203, %207 : vector<1x32xf32>
    %209 = arith.index_cast %c2_i32 : i32 to index
    %c0_41 = arith.constant 0 : index
    %210 = vector.load %arg4[%209, %c0_41] : memref<8x64xf32, #tpu.memory_space<vmem>>, vector<1x32xf32>
    tpu.vector_store %arg4[%209, %c0_41], %182 {strides = array<i32>} : memref<8x64xf32, #tpu.memory_space<vmem>>, vector<1x32xf32>,
    %211 = arith.index_cast %147 : i32 to index
    %c32_42 = arith.constant 32 : index
    %212 = vector.load %arg4[%211, %c32_42] : memref<8x64xf32, #tpu.memory_space<vmem>>, vector<1x32xf32>
    tpu.vector_store %arg4[%211, %c32_42], %208 {strides = array<i32>} : memref<8x64xf32, #tpu.memory_space<vmem>>, vector<1x32xf32>,
    %213 = tpu.concatenate %182, %208 in 1 : vector<1x32xf32>, vector<1x32xf32> -> vector<1x64xf32>
    %214 = tpu.concatenate %180, %206 in 1 : vector<1x32xf32>, vector<1x32xf32> -> vector<1x64xf32>
    %c3_i32 = arith.constant 3 : i32
    %c7_i32_43 = arith.constant 7 : i32
    %215 = arith.subi %c7_i32_43, %c3_i32 : i32
    %cst_44 = arith.constant dense<0.000000e+00> : vector<1x256xf32>
    %216 = tpu.matmul %213, %9, %cst_44 {dimension_numbers = #tpu.dot_dimension_numbers<[1], [0], [0], [1], [0, 0, 1, 1], [], []>} : vector<1x64xf32>, vector<64x256xf32>, vector<1x256xf32> -> vector<1x256xf32>
    %217 = arith.index_cast %c3_i32 : i32 to index
    %c0_45 = arith.constant 0 : index
    %218 = vector.load %arg5[%217, %c0_45] : memref<8x256xf32, #tpu.memory_space<vmem>>, vector<1x128xf32>
    %219 = vector.extract_strided_slice %216 {offsets = [0, 0], sizes = [1, 128], strides = [1, 1]} : vector<1x256xf32> to vector<1x128xf32>
    %220 = arith.addf %218, %219 : vector<1x128xf32>
    %221 = arith.index_cast %215 : i32 to index
    %c128_46 = arith.constant 128 : index
    %222 = vector.load %arg5[%221, %c128_46] : memref<8x256xf32, #tpu.memory_space<vmem>>, vector<1x128xf32>
    %223 = vector.extract_strided_slice %216 {offsets = [0, 128], sizes = [1, 128], strides = [1, 1]} : vector<1x256xf32> to vector<1x128xf32>
    %224 = arith.addf %222, %223 : vector<1x128xf32>
    %225 = vector.extract_strided_slice %214 {offsets = [0, 0], sizes = [1, 32], strides = [1, 1]} : vector<1x64xf32> to vector<1x32xf32>
    %226 = vector.extract_strided_slice %220 {offsets = [0, 0], sizes = [1, 32], strides = [1, 1]} : vector<1x128xf32> to vector<1x32xf32>
    %227 = arith.negf %226 : vector<1x32xf32>
    %228 = math.exp %227 : vector<1x32xf32>
    %cst_47 = arith.constant 1.000000e+00 : f32
    %229 = vector.broadcast %cst_47 : f32 to vector<1x32xf32>
    %230 = arith.addf %229, %228 : vector<1x32xf32>
    %231 = arith.divf %229, %230 : vector<1x32xf32>
    %232 = vector.extract_strided_slice %220 {offsets = [0, 32], sizes = [1, 32], strides = [1, 1]} : vector<1x128xf32> to vector<1x32xf32>
    %233 = arith.negf %232 : vector<1x32xf32>
    %234 = math.exp %233 : vector<1x32xf32>
    %cst_48 = arith.constant 1.000000e+00 : f32
    %235 = vector.broadcast %cst_48 : f32 to vector<1x32xf32>
    %236 = arith.addf %235, %234 : vector<1x32xf32>
    %237 = arith.divf %235, %236 : vector<1x32xf32>
    %238 = vector.extract_strided_slice %220 {offsets = [0, 64], sizes = [1, 32], strides = [1, 1]} : vector<1x128xf32> to vector<1x32xf32>
    %239 = math.tanh %238 : vector<1x32xf32>
    %240 = vector.extract_strided_slice %220 {offsets = [0, 96], sizes = [1, 32], strides = [1, 1]} : vector<1x128xf32> to vector<1x32xf32>
    %241 = arith.negf %240 : vector<1x32xf32>
    %242 = math.exp %241 : vector<1x32xf32>
    %cst_49 = arith.constant 1.000000e+00 : f32
    %243 = vector.broadcast %cst_49 : f32 to vector<1x32xf32>
    %244 = arith.addf %243, %242 : vector<1x32xf32>
    %245 = arith.divf %243, %244 : vector<1x32xf32>
    %246 = arith.mulf %237, %225 : vector<1x32xf32>
    %247 = arith.mulf %231, %239 : vector<1x32xf32>
    %248 = arith.addf %246, %247 : vector<1x32xf32>
    %249 = math.tanh %248 : vector<1x32xf32>
    %250 = arith.mulf %245, %249 : vector<1x32xf32>
    %251 = vector.extract_strided_slice %214 {offsets = [0, 32], sizes = [1, 32], strides = [1, 1]} : vector<1x64xf32> to vector<1x32xf32>
    %252 = vector.extract_strided_slice %224 {offsets = [0, 0], sizes = [1, 32], strides = [1, 1]} : vector<1x128xf32> to vector<1x32xf32>
    %253 = arith.negf %252 : vector<1x32xf32>
    %254 = math.exp %253 : vector<1x32xf32>
    %cst_50 = arith.constant 1.000000e+00 : f32
    %255 = vector.broadcast %cst_50 : f32 to vector<1x32xf32>
    %256 = arith.addf %255, %254 : vector<1x32xf32>
    %257 = arith.divf %255, %256 : vector<1x32xf32>
    %258 = vector.extract_strided_slice %224 {offsets = [0, 32], sizes = [1, 32], strides = [1, 1]} : vector<1x128xf32> to vector<1x32xf32>
    %259 = arith.negf %258 : vector<1x32xf32>
    %260 = math.exp %259 : vector<1x32xf32>
    %cst_51 = arith.constant 1.000000e+00 : f32
    %261 = vector.broadcast %cst_51 : f32 to vector<1x32xf32>
    %262 = arith.addf %261, %260 : vector<1x32xf32>
    %263 = arith.divf %261, %262 : vector<1x32xf32>
    %264 = vector.extract_strided_slice %224 {offsets = [0, 64], sizes = [1, 32], strides = [1, 1]} : vector<1x128xf32> to vector<1x32xf32>
    %265 = math.tanh %264 : vector<1x32xf32>
    %266 = vector.extract_strided_slice %224 {offsets = [0, 96], sizes = [1, 32], strides = [1, 1]} : vector<1x128xf32> to vector<1x32xf32>
    %267 = arith.negf %266 : vector<1x32xf32>
    %268 = math.exp %267 : vector<1x32xf32>
    %cst_52 = arith.constant 1.000000e+00 : f32
    %269 = vector.broadcast %cst_52 : f32 to vector<1x32xf32>
    %270 = arith.addf %269, %268 : vector<1x32xf32>
    %271 = arith.divf %269, %270 : vector<1x32xf32>
    %272 = arith.mulf %263, %251 : vector<1x32xf32>
    %273 = arith.mulf %257, %265 : vector<1x32xf32>
    %274 = arith.addf %272, %273 : vector<1x32xf32>
    %275 = math.tanh %274 : vector<1x32xf32>
    %276 = arith.mulf %271, %275 : vector<1x32xf32>
    %277 = arith.index_cast %c3_i32 : i32 to index
    %c0_53 = arith.constant 0 : index
    %278 = vector.load %arg4[%277, %c0_53] : memref<8x64xf32, #tpu.memory_space<vmem>>, vector<1x32xf32>
    tpu.vector_store %arg4[%277, %c0_53], %250 {strides = array<i32>} : memref<8x64xf32, #tpu.memory_space<vmem>>, vector<1x32xf32>,
    %279 = arith.index_cast %215 : i32 to index
    %c32_54 = arith.constant 32 : index
    %280 = vector.load %arg4[%279, %c32_54] : memref<8x64xf32, #tpu.memory_space<vmem>>, vector<1x32xf32>
    tpu.vector_store %arg4[%279, %c32_54], %276 {strides = array<i32>} : memref<8x64xf32, #tpu.memory_space<vmem>>, vector<1x32xf32>,
    %281 = tpu.concatenate %250, %276 in 1 : vector<1x32xf32>, vector<1x32xf32> -> vector<1x64xf32>
    %282 = tpu.concatenate %248, %274 in 1 : vector<1x32xf32>, vector<1x32xf32> -> vector<1x64xf32>
    %c4_i32 = arith.constant 4 : i32
    %c7_i32_55 = arith.constant 7 : i32
    %283 = arith.subi %c7_i32_55, %c4_i32 : i32
    %cst_56 = arith.constant dense<0.000000e+00> : vector<1x256xf32>
    %284 = tpu.matmul %281, %9, %cst_56 {dimension_numbers = #tpu.dot_dimension_numbers<[1], [0], [0], [1], [0, 0, 1, 1], [], []>} : vector<1x64xf32>, vector<64x256xf32>, vector<1x256xf32> -> vector<1x256xf32>
    %285 = arith.index_cast %c4_i32 : i32 to index
    %c0_57 = arith.constant 0 : index
    %286 = vector.load %arg5[%285, %c0_57] : memref<8x256xf32, #tpu.memory_space<vmem>>, vector<1x128xf32>
    %287 = vector.extract_strided_slice %284 {offsets = [0, 0], sizes = [1, 128], strides = [1, 1]} : vector<1x256xf32> to vector<1x128xf32>
    %288 = arith.addf %286, %287 : vector<1x128xf32>
    %289 = arith.index_cast %283 : i32 to index
    %c128_58 = arith.constant 128 : index
    %290 = vector.load %arg5[%289, %c128_58] : memref<8x256xf32, #tpu.memory_space<vmem>>, vector<1x128xf32>
    %291 = vector.extract_strided_slice %284 {offsets = [0, 128], sizes = [1, 128], strides = [1, 1]} : vector<1x256xf32> to vector<1x128xf32>
    %292 = arith.addf %290, %291 : vector<1x128xf32>
    %293 = vector.extract_strided_slice %282 {offsets = [0, 0], sizes = [1, 32], strides = [1, 1]} : vector<1x64xf32> to vector<1x32xf32>
    %294 = vector.extract_strided_slice %288 {offsets = [0, 0], sizes = [1, 32], strides = [1, 1]} : vector<1x128xf32> to vector<1x32xf32>
    %295 = arith.negf %294 : vector<1x32xf32>
    %296 = math.exp %295 : vector<1x32xf32>
    %cst_59 = arith.constant 1.000000e+00 : f32
    %297 = vector.broadcast %cst_59 : f32 to vector<1x32xf32>
    %298 = arith.addf %297, %296 : vector<1x32xf32>
    %299 = arith.divf %297, %298 : vector<1x32xf32>
    %300 = vector.extract_strided_slice %288 {offsets = [0, 32], sizes = [1, 32], strides = [1, 1]} : vector<1x128xf32> to vector<1x32xf32>
    %301 = arith.negf %300 : vector<1x32xf32>
    %302 = math.exp %301 : vector<1x32xf32>
    %cst_60 = arith.constant 1.000000e+00 : f32
    %303 = vector.broadcast %cst_60 : f32 to vector<1x32xf32>
    %304 = arith.addf %303, %302 : vector<1x32xf32>
    %305 = arith.divf %303, %304 : vector<1x32xf32>
    %306 = vector.extract_strided_slice %288 {offsets = [0, 64], sizes = [1, 32], strides = [1, 1]} : vector<1x128xf32> to vector<1x32xf32>
    %307 = math.tanh %306 : vector<1x32xf32>
    %308 = vector.extract_strided_slice %288 {offsets = [0, 96], sizes = [1, 32], strides = [1, 1]} : vector<1x128xf32> to vector<1x32xf32>
    %309 = arith.negf %308 : vector<1x32xf32>
    %310 = math.exp %309 : vector<1x32xf32>
    %cst_61 = arith.constant 1.000000e+00 : f32
    %311 = vector.broadcast %cst_61 : f32 to vector<1x32xf32>
    %312 = arith.addf %311, %310 : vector<1x32xf32>
    %313 = arith.divf %311, %312 : vector<1x32xf32>
    %314 = arith.mulf %305, %293 : vector<1x32xf32>
    %315 = arith.mulf %299, %307 : vector<1x32xf32>
    %316 = arith.addf %314, %315 : vector<1x32xf32>
    %317 = math.tanh %316 : vector<1x32xf32>
    %318 = arith.mulf %313, %317 : vector<1x32xf32>
    %319 = vector.extract_strided_slice %282 {offsets = [0, 32], sizes = [1, 32], strides = [1, 1]} : vector<1x64xf32> to vector<1x32xf32>
    %320 = vector.extract_strided_slice %292 {offsets = [0, 0], sizes = [1, 32], strides = [1, 1]} : vector<1x128xf32> to vector<1x32xf32>
    %321 = arith.negf %320 : vector<1x32xf32>
    %322 = math.exp %321 : vector<1x32xf32>
    %cst_62 = arith.constant 1.000000e+00 : f32
    %323 = vector.broadcast %cst_62 : f32 to vector<1x32xf32>
    %324 = arith.addf %323, %322 : vector<1x32xf32>
    %325 = arith.divf %323, %324 : vector<1x32xf32>
    %326 = vector.extract_strided_slice %292 {offsets = [0, 32], sizes = [1, 32], strides = [1, 1]} : vector<1x128xf32> to vector<1x32xf32>
    %327 = arith.negf %326 : vector<1x32xf32>
    %328 = math.exp %327 : vector<1x32xf32>
    %cst_63 = arith.constant 1.000000e+00 : f32
    %329 = vector.broadcast %cst_63 : f32 to vector<1x32xf32>
    %330 = arith.addf %329, %328 : vector<1x32xf32>
    %331 = arith.divf %329, %330 : vector<1x32xf32>
    %332 = vector.extract_strided_slice %292 {offsets = [0, 64], sizes = [1, 32], strides = [1, 1]} : vector<1x128xf32> to vector<1x32xf32>
    %333 = math.tanh %332 : vector<1x32xf32>
    %334 = vector.extract_strided_slice %292 {offsets = [0, 96], sizes = [1, 32], strides = [1, 1]} : vector<1x128xf32> to vector<1x32xf32>
    %335 = arith.negf %334 : vector<1x32xf32>
    %336 = math.exp %335 : vector<1x32xf32>
    %cst_64 = arith.constant 1.000000e+00 : f32
    %337 = vector.broadcast %cst_64 : f32 to vector<1x32xf32>
    %338 = arith.addf %337, %336 : vector<1x32xf32>
    %339 = arith.divf %337, %338 : vector<1x32xf32>
    %340 = arith.mulf %331, %319 : vector<1x32xf32>
    %341 = arith.mulf %325, %333 : vector<1x32xf32>
    %342 = arith.addf %340, %341 : vector<1x32xf32>
    %343 = math.tanh %342 : vector<1x32xf32>
    %344 = arith.mulf %339, %343 : vector<1x32xf32>
    %345 = arith.index_cast %c4_i32 : i32 to index
    %c0_65 = arith.constant 0 : index
    %346 = vector.load %arg4[%345, %c0_65] : memref<8x64xf32, #tpu.memory_space<vmem>>, vector<1x32xf32>
    tpu.vector_store %arg4[%345, %c0_65], %318 {strides = array<i32>} : memref<8x64xf32, #tpu.memory_space<vmem>>, vector<1x32xf32>,
    %347 = arith.index_cast %283 : i32 to index
    %c32_66 = arith.constant 32 : index
    %348 = vector.load %arg4[%347, %c32_66] : memref<8x64xf32, #tpu.memory_space<vmem>>, vector<1x32xf32>
    tpu.vector_store %arg4[%347, %c32_66], %344 {strides = array<i32>} : memref<8x64xf32, #tpu.memory_space<vmem>>, vector<1x32xf32>,
    %349 = tpu.concatenate %318, %344 in 1 : vector<1x32xf32>, vector<1x32xf32> -> vector<1x64xf32>
    %350 = tpu.concatenate %316, %342 in 1 : vector<1x32xf32>, vector<1x32xf32> -> vector<1x64xf32>
    %c5_i32 = arith.constant 5 : i32
    %c7_i32_67 = arith.constant 7 : i32
    %351 = arith.subi %c7_i32_67, %c5_i32 : i32
    %cst_68 = arith.constant dense<0.000000e+00> : vector<1x256xf32>
    %352 = tpu.matmul %349, %9, %cst_68 {dimension_numbers = #tpu.dot_dimension_numbers<[1], [0], [0], [1], [0, 0, 1, 1], [], []>} : vector<1x64xf32>, vector<64x256xf32>, vector<1x256xf32> -> vector<1x256xf32>
    %353 = arith.index_cast %c5_i32 : i32 to index
    %c0_69 = arith.constant 0 : index
    %354 = vector.load %arg5[%353, %c0_69] : memref<8x256xf32, #tpu.memory_space<vmem>>, vector<1x128xf32>
    %355 = vector.extract_strided_slice %352 {offsets = [0, 0], sizes = [1, 128], strides = [1, 1]} : vector<1x256xf32> to vector<1x128xf32>
    %356 = arith.addf %354, %355 : vector<1x128xf32>
    %357 = arith.index_cast %351 : i32 to index
    %c128_70 = arith.constant 128 : index
    %358 = vector.load %arg5[%357, %c128_70] : memref<8x256xf32, #tpu.memory_space<vmem>>, vector<1x128xf32>
    %359 = vector.extract_strided_slice %352 {offsets = [0, 128], sizes = [1, 128], strides = [1, 1]} : vector<1x256xf32> to vector<1x128xf32>
    %360 = arith.addf %358, %359 : vector<1x128xf32>
    %361 = vector.extract_strided_slice %350 {offsets = [0, 0], sizes = [1, 32], strides = [1, 1]} : vector<1x64xf32> to vector<1x32xf32>
    %362 = vector.extract_strided_slice %356 {offsets = [0, 0], sizes = [1, 32], strides = [1, 1]} : vector<1x128xf32> to vector<1x32xf32>
    %363 = arith.negf %362 : vector<1x32xf32>
    %364 = math.exp %363 : vector<1x32xf32>
    %cst_71 = arith.constant 1.000000e+00 : f32
    %365 = vector.broadcast %cst_71 : f32 to vector<1x32xf32>
    %366 = arith.addf %365, %364 : vector<1x32xf32>
    %367 = arith.divf %365, %366 : vector<1x32xf32>
    %368 = vector.extract_strided_slice %356 {offsets = [0, 32], sizes = [1, 32], strides = [1, 1]} : vector<1x128xf32> to vector<1x32xf32>
    %369 = arith.negf %368 : vector<1x32xf32>
    %370 = math.exp %369 : vector<1x32xf32>
    %cst_72 = arith.constant 1.000000e+00 : f32
    %371 = vector.broadcast %cst_72 : f32 to vector<1x32xf32>
    %372 = arith.addf %371, %370 : vector<1x32xf32>
    %373 = arith.divf %371, %372 : vector<1x32xf32>
    %374 = vector.extract_strided_slice %356 {offsets = [0, 64], sizes = [1, 32], strides = [1, 1]} : vector<1x128xf32> to vector<1x32xf32>
    %375 = math.tanh %374 : vector<1x32xf32>
    %376 = vector.extract_strided_slice %356 {offsets = [0, 96], sizes = [1, 32], strides = [1, 1]} : vector<1x128xf32> to vector<1x32xf32>
    %377 = arith.negf %376 : vector<1x32xf32>
    %378 = math.exp %377 : vector<1x32xf32>
    %cst_73 = arith.constant 1.000000e+00 : f32
    %379 = vector.broadcast %cst_73 : f32 to vector<1x32xf32>
    %380 = arith.addf %379, %378 : vector<1x32xf32>
    %381 = arith.divf %379, %380 : vector<1x32xf32>
    %382 = arith.mulf %373, %361 : vector<1x32xf32>
    %383 = arith.mulf %367, %375 : vector<1x32xf32>
    %384 = arith.addf %382, %383 : vector<1x32xf32>
    %385 = math.tanh %384 : vector<1x32xf32>
    %386 = arith.mulf %381, %385 : vector<1x32xf32>
    %387 = vector.extract_strided_slice %350 {offsets = [0, 32], sizes = [1, 32], strides = [1, 1]} : vector<1x64xf32> to vector<1x32xf32>
    %388 = vector.extract_strided_slice %360 {offsets = [0, 0], sizes = [1, 32], strides = [1, 1]} : vector<1x128xf32> to vector<1x32xf32>
    %389 = arith.negf %388 : vector<1x32xf32>
    %390 = math.exp %389 : vector<1x32xf32>
    %cst_74 = arith.constant 1.000000e+00 : f32
    %391 = vector.broadcast %cst_74 : f32 to vector<1x32xf32>
    %392 = arith.addf %391, %390 : vector<1x32xf32>
    %393 = arith.divf %391, %392 : vector<1x32xf32>
    %394 = vector.extract_strided_slice %360 {offsets = [0, 32], sizes = [1, 32], strides = [1, 1]} : vector<1x128xf32> to vector<1x32xf32>
    %395 = arith.negf %394 : vector<1x32xf32>
    %396 = math.exp %395 : vector<1x32xf32>
    %cst_75 = arith.constant 1.000000e+00 : f32
    %397 = vector.broadcast %cst_75 : f32 to vector<1x32xf32>
    %398 = arith.addf %397, %396 : vector<1x32xf32>
    %399 = arith.divf %397, %398 : vector<1x32xf32>
    %400 = vector.extract_strided_slice %360 {offsets = [0, 64], sizes = [1, 32], strides = [1, 1]} : vector<1x128xf32> to vector<1x32xf32>
    %401 = math.tanh %400 : vector<1x32xf32>
    %402 = vector.extract_strided_slice %360 {offsets = [0, 96], sizes = [1, 32], strides = [1, 1]} : vector<1x128xf32> to vector<1x32xf32>
    %403 = arith.negf %402 : vector<1x32xf32>
    %404 = math.exp %403 : vector<1x32xf32>
    %cst_76 = arith.constant 1.000000e+00 : f32
    %405 = vector.broadcast %cst_76 : f32 to vector<1x32xf32>
    %406 = arith.addf %405, %404 : vector<1x32xf32>
    %407 = arith.divf %405, %406 : vector<1x32xf32>
    %408 = arith.mulf %399, %387 : vector<1x32xf32>
    %409 = arith.mulf %393, %401 : vector<1x32xf32>
    %410 = arith.addf %408, %409 : vector<1x32xf32>
    %411 = math.tanh %410 : vector<1x32xf32>
    %412 = arith.mulf %407, %411 : vector<1x32xf32>
    %413 = arith.index_cast %c5_i32 : i32 to index
    %c0_77 = arith.constant 0 : index
    %414 = vector.load %arg4[%413, %c0_77] : memref<8x64xf32, #tpu.memory_space<vmem>>, vector<1x32xf32>
    tpu.vector_store %arg4[%413, %c0_77], %386 {strides = array<i32>} : memref<8x64xf32, #tpu.memory_space<vmem>>, vector<1x32xf32>,
    %415 = arith.index_cast %351 : i32 to index
    %c32_78 = arith.constant 32 : index
    %416 = vector.load %arg4[%415, %c32_78] : memref<8x64xf32, #tpu.memory_space<vmem>>, vector<1x32xf32>
    tpu.vector_store %arg4[%415, %c32_78], %412 {strides = array<i32>} : memref<8x64xf32, #tpu.memory_space<vmem>>, vector<1x32xf32>,
    %417 = tpu.concatenate %386, %412 in 1 : vector<1x32xf32>, vector<1x32xf32> -> vector<1x64xf32>
    %418 = tpu.concatenate %384, %410 in 1 : vector<1x32xf32>, vector<1x32xf32> -> vector<1x64xf32>
    %c6_i32 = arith.constant 6 : i32
    %c7_i32_79 = arith.constant 7 : i32
    %419 = arith.subi %c7_i32_79, %c6_i32 : i32
    %cst_80 = arith.constant dense<0.000000e+00> : vector<1x256xf32>
    %420 = tpu.matmul %417, %9, %cst_80 {dimension_numbers = #tpu.dot_dimension_numbers<[1], [0], [0], [1], [0, 0, 1, 1], [], []>} : vector<1x64xf32>, vector<64x256xf32>, vector<1x256xf32> -> vector<1x256xf32>
    %421 = arith.index_cast %c6_i32 : i32 to index
    %c0_81 = arith.constant 0 : index
    %422 = vector.load %arg5[%421, %c0_81] : memref<8x256xf32, #tpu.memory_space<vmem>>, vector<1x128xf32>
    %423 = vector.extract_strided_slice %420 {offsets = [0, 0], sizes = [1, 128], strides = [1, 1]} : vector<1x256xf32> to vector<1x128xf32>
    %424 = arith.addf %422, %423 : vector<1x128xf32>
    %425 = arith.index_cast %419 : i32 to index
    %c128_82 = arith.constant 128 : index
    %426 = vector.load %arg5[%425, %c128_82] : memref<8x256xf32, #tpu.memory_space<vmem>>, vector<1x128xf32>
    %427 = vector.extract_strided_slice %420 {offsets = [0, 128], sizes = [1, 128], strides = [1, 1]} : vector<1x256xf32> to vector<1x128xf32>
    %428 = arith.addf %426, %427 : vector<1x128xf32>
    %429 = vector.extract_strided_slice %418 {offsets = [0, 0], sizes = [1, 32], strides = [1, 1]} : vector<1x64xf32> to vector<1x32xf32>
    %430 = vector.extract_strided_slice %424 {offsets = [0, 0], sizes = [1, 32], strides = [1, 1]} : vector<1x128xf32> to vector<1x32xf32>
    %431 = arith.negf %430 : vector<1x32xf32>
    %432 = math.exp %431 : vector<1x32xf32>
    %cst_83 = arith.constant 1.000000e+00 : f32
    %433 = vector.broadcast %cst_83 : f32 to vector<1x32xf32>
    %434 = arith.addf %433, %432 : vector<1x32xf32>
    %435 = arith.divf %433, %434 : vector<1x32xf32>
    %436 = vector.extract_strided_slice %424 {offsets = [0, 32], sizes = [1, 32], strides = [1, 1]} : vector<1x128xf32> to vector<1x32xf32>
    %437 = arith.negf %436 : vector<1x32xf32>
    %438 = math.exp %437 : vector<1x32xf32>
    %cst_84 = arith.constant 1.000000e+00 : f32
    %439 = vector.broadcast %cst_84 : f32 to vector<1x32xf32>
    %440 = arith.addf %439, %438 : vector<1x32xf32>
    %441 = arith.divf %439, %440 : vector<1x32xf32>
    %442 = vector.extract_strided_slice %424 {offsets = [0, 64], sizes = [1, 32], strides = [1, 1]} : vector<1x128xf32> to vector<1x32xf32>
    %443 = math.tanh %442 : vector<1x32xf32>
    %444 = vector.extract_strided_slice %424 {offsets = [0, 96], sizes = [1, 32], strides = [1, 1]} : vector<1x128xf32> to vector<1x32xf32>
    %445 = arith.negf %444 : vector<1x32xf32>
    %446 = math.exp %445 : vector<1x32xf32>
    %cst_85 = arith.constant 1.000000e+00 : f32
    %447 = vector.broadcast %cst_85 : f32 to vector<1x32xf32>
    %448 = arith.addf %447, %446 : vector<1x32xf32>
    %449 = arith.divf %447, %448 : vector<1x32xf32>
    %450 = arith.mulf %441, %429 : vector<1x32xf32>
    %451 = arith.mulf %435, %443 : vector<1x32xf32>
    %452 = arith.addf %450, %451 : vector<1x32xf32>
    %453 = math.tanh %452 : vector<1x32xf32>
    %454 = arith.mulf %449, %453 : vector<1x32xf32>
    %455 = vector.extract_strided_slice %418 {offsets = [0, 32], sizes = [1, 32], strides = [1, 1]} : vector<1x64xf32> to vector<1x32xf32>
    %456 = vector.extract_strided_slice %428 {offsets = [0, 0], sizes = [1, 32], strides = [1, 1]} : vector<1x128xf32> to vector<1x32xf32>
    %457 = arith.negf %456 : vector<1x32xf32>
    %458 = math.exp %457 : vector<1x32xf32>
    %cst_86 = arith.constant 1.000000e+00 : f32
    %459 = vector.broadcast %cst_86 : f32 to vector<1x32xf32>
    %460 = arith.addf %459, %458 : vector<1x32xf32>
    %461 = arith.divf %459, %460 : vector<1x32xf32>
    %462 = vector.extract_strided_slice %428 {offsets = [0, 32], sizes = [1, 32], strides = [1, 1]} : vector<1x128xf32> to vector<1x32xf32>
    %463 = arith.negf %462 : vector<1x32xf32>
    %464 = math.exp %463 : vector<1x32xf32>
    %cst_87 = arith.constant 1.000000e+00 : f32
    %465 = vector.broadcast %cst_87 : f32 to vector<1x32xf32>
    %466 = arith.addf %465, %464 : vector<1x32xf32>
    %467 = arith.divf %465, %466 : vector<1x32xf32>
    %468 = vector.extract_strided_slice %428 {offsets = [0, 64], sizes = [1, 32], strides = [1, 1]} : vector<1x128xf32> to vector<1x32xf32>
    %469 = math.tanh %468 : vector<1x32xf32>
    %470 = vector.extract_strided_slice %428 {offsets = [0, 96], sizes = [1, 32], strides = [1, 1]} : vector<1x128xf32> to vector<1x32xf32>
    %471 = arith.negf %470 : vector<1x32xf32>
    %472 = math.exp %471 : vector<1x32xf32>
    %cst_88 = arith.constant 1.000000e+00 : f32
    %473 = vector.broadcast %cst_88 : f32 to vector<1x32xf32>
    %474 = arith.addf %473, %472 : vector<1x32xf32>
    %475 = arith.divf %473, %474 : vector<1x32xf32>
    %476 = arith.mulf %467, %455 : vector<1x32xf32>
    %477 = arith.mulf %461, %469 : vector<1x32xf32>
    %478 = arith.addf %476, %477 : vector<1x32xf32>
    %479 = math.tanh %478 : vector<1x32xf32>
    %480 = arith.mulf %475, %479 : vector<1x32xf32>
    %481 = arith.index_cast %c6_i32 : i32 to index
    %c0_89 = arith.constant 0 : index
    %482 = vector.load %arg4[%481, %c0_89] : memref<8x64xf32, #tpu.memory_space<vmem>>, vector<1x32xf32>
    tpu.vector_store %arg4[%481, %c0_89], %454 {strides = array<i32>} : memref<8x64xf32, #tpu.memory_space<vmem>>, vector<1x32xf32>,
    %483 = arith.index_cast %419 : i32 to index
    %c32_90 = arith.constant 32 : index
    %484 = vector.load %arg4[%483, %c32_90] : memref<8x64xf32, #tpu.memory_space<vmem>>, vector<1x32xf32>
    tpu.vector_store %arg4[%483, %c32_90], %480 {strides = array<i32>} : memref<8x64xf32, #tpu.memory_space<vmem>>, vector<1x32xf32>,
    %485 = tpu.concatenate %454, %480 in 1 : vector<1x32xf32>, vector<1x32xf32> -> vector<1x64xf32>
    %486 = tpu.concatenate %452, %478 in 1 : vector<1x32xf32>, vector<1x32xf32> -> vector<1x64xf32>
    %c7_i32_91 = arith.constant 7 : i32
    %c7_i32_92 = arith.constant 7 : i32
    %487 = arith.subi %c7_i32_92, %c7_i32_91 : i32
    %cst_93 = arith.constant dense<0.000000e+00> : vector<1x256xf32>
    %488 = tpu.matmul %485, %9, %cst_93 {dimension_numbers = #tpu.dot_dimension_numbers<[1], [0], [0], [1], [0, 0, 1, 1], [], []>} : vector<1x64xf32>, vector<64x256xf32>, vector<1x256xf32> -> vector<1x256xf32>
    %489 = arith.index_cast %c7_i32_91 : i32 to index
    %c0_94 = arith.constant 0 : index
    %490 = vector.load %arg5[%489, %c0_94] : memref<8x256xf32, #tpu.memory_space<vmem>>, vector<1x128xf32>
    %491 = vector.extract_strided_slice %488 {offsets = [0, 0], sizes = [1, 128], strides = [1, 1]} : vector<1x256xf32> to vector<1x128xf32>
    %492 = arith.addf %490, %491 : vector<1x128xf32>
    %493 = arith.index_cast %487 : i32 to index
    %c128_95 = arith.constant 128 : index
    %494 = vector.load %arg5[%493, %c128_95] : memref<8x256xf32, #tpu.memory_space<vmem>>, vector<1x128xf32>
    %495 = vector.extract_strided_slice %488 {offsets = [0, 128], sizes = [1, 128], strides = [1, 1]} : vector<1x256xf32> to vector<1x128xf32>
    %496 = arith.addf %494, %495 : vector<1x128xf32>
    %497 = vector.extract_strided_slice %486 {offsets = [0, 0], sizes = [1, 32], strides = [1, 1]} : vector<1x64xf32> to vector<1x32xf32>
    %498 = vector.extract_strided_slice %492 {offsets = [0, 0], sizes = [1, 32], strides = [1, 1]} : vector<1x128xf32> to vector<1x32xf32>
    %499 = arith.negf %498 : vector<1x32xf32>
    %500 = math.exp %499 : vector<1x32xf32>
    %cst_96 = arith.constant 1.000000e+00 : f32
    %501 = vector.broadcast %cst_96 : f32 to vector<1x32xf32>
    %502 = arith.addf %501, %500 : vector<1x32xf32>
    %503 = arith.divf %501, %502 : vector<1x32xf32>
    %504 = vector.extract_strided_slice %492 {offsets = [0, 32], sizes = [1, 32], strides = [1, 1]} : vector<1x128xf32> to vector<1x32xf32>
    %505 = arith.negf %504 : vector<1x32xf32>
    %506 = math.exp %505 : vector<1x32xf32>
    %cst_97 = arith.constant 1.000000e+00 : f32
    %507 = vector.broadcast %cst_97 : f32 to vector<1x32xf32>
    %508 = arith.addf %507, %506 : vector<1x32xf32>
    %509 = arith.divf %507, %508 : vector<1x32xf32>
    %510 = vector.extract_strided_slice %492 {offsets = [0, 64], sizes = [1, 32], strides = [1, 1]} : vector<1x128xf32> to vector<1x32xf32>
    %511 = math.tanh %510 : vector<1x32xf32>
    %512 = vector.extract_strided_slice %492 {offsets = [0, 96], sizes = [1, 32], strides = [1, 1]} : vector<1x128xf32> to vector<1x32xf32>
    %513 = arith.negf %512 : vector<1x32xf32>
    %514 = math.exp %513 : vector<1x32xf32>
    %cst_98 = arith.constant 1.000000e+00 : f32
    %515 = vector.broadcast %cst_98 : f32 to vector<1x32xf32>
    %516 = arith.addf %515, %514 : vector<1x32xf32>
    %517 = arith.divf %515, %516 : vector<1x32xf32>
    %518 = arith.mulf %509, %497 : vector<1x32xf32>
    %519 = arith.mulf %503, %511 : vector<1x32xf32>
    %520 = arith.addf %518, %519 : vector<1x32xf32>
    %521 = math.tanh %520 : vector<1x32xf32>
    %522 = arith.mulf %517, %521 : vector<1x32xf32>
    %523 = vector.extract_strided_slice %486 {offsets = [0, 32], sizes = [1, 32], strides = [1, 1]} : vector<1x64xf32> to vector<1x32xf32>
    %524 = vector.extract_strided_slice %496 {offsets = [0, 0], sizes = [1, 32], strides = [1, 1]} : vector<1x128xf32> to vector<1x32xf32>
    %525 = arith.negf %524 : vector<1x32xf32>
    %526 = math.exp %525 : vector<1x32xf32>
    %cst_99 = arith.constant 1.000000e+00 : f32
    %527 = vector.broadcast %cst_99 : f32 to vector<1x32xf32>
    %528 = arith.addf %527, %526 : vector<1x32xf32>
    %529 = arith.divf %527, %528 : vector<1x32xf32>
    %530 = vector.extract_strided_slice %496 {offsets = [0, 32], sizes = [1, 32], strides = [1, 1]} : vector<1x128xf32> to vector<1x32xf32>
    %531 = arith.negf %530 : vector<1x32xf32>
    %532 = math.exp %531 : vector<1x32xf32>
    %cst_100 = arith.constant 1.000000e+00 : f32
    %533 = vector.broadcast %cst_100 : f32 to vector<1x32xf32>
    %534 = arith.addf %533, %532 : vector<1x32xf32>
    %535 = arith.divf %533, %534 : vector<1x32xf32>
    %536 = vector.extract_strided_slice %496 {offsets = [0, 64], sizes = [1, 32], strides = [1, 1]} : vector<1x128xf32> to vector<1x32xf32>
    %537 = math.tanh %536 : vector<1x32xf32>
    %538 = vector.extract_strided_slice %496 {offsets = [0, 96], sizes = [1, 32], strides = [1, 1]} : vector<1x128xf32> to vector<1x32xf32>
    %539 = arith.negf %538 : vector<1x32xf32>
    %540 = math.exp %539 : vector<1x32xf32>
    %cst_101 = arith.constant 1.000000e+00 : f32
    %541 = vector.broadcast %cst_101 : f32 to vector<1x32xf32>
    %542 = arith.addf %541, %540 : vector<1x32xf32>
    %543 = arith.divf %541, %542 : vector<1x32xf32>
    %544 = arith.mulf %535, %523 : vector<1x32xf32>
    %545 = arith.mulf %529, %537 : vector<1x32xf32>
    %546 = arith.addf %544, %545 : vector<1x32xf32>
    %547 = math.tanh %546 : vector<1x32xf32>
    %548 = arith.mulf %543, %547 : vector<1x32xf32>
    %549 = arith.index_cast %c7_i32_91 : i32 to index
    %c0_102 = arith.constant 0 : index
    %550 = vector.load %arg4[%549, %c0_102] : memref<8x64xf32, #tpu.memory_space<vmem>>, vector<1x32xf32>
    tpu.vector_store %arg4[%549, %c0_102], %522 {strides = array<i32>} : memref<8x64xf32, #tpu.memory_space<vmem>>, vector<1x32xf32>,
    %551 = arith.index_cast %487 : i32 to index
    %c32_103 = arith.constant 32 : index
    %552 = vector.load %arg4[%551, %c32_103] : memref<8x64xf32, #tpu.memory_space<vmem>>, vector<1x32xf32>
    tpu.vector_store %arg4[%551, %c32_103], %548 {strides = array<i32>} : memref<8x64xf32, #tpu.memory_space<vmem>>, vector<1x32xf32>,
    %553 = tpu.concatenate %522, %548 in 1 : vector<1x32xf32>, vector<1x32xf32> -> vector<1x64xf32>
    %554 = tpu.concatenate %520, %546 in 1 : vector<1x32xf32>, vector<1x32xf32> -> vector<1x64xf32>
    %c8_i32 = arith.constant 8 : i32
    return
  }
}

</mosaic_0001>

<bundles_post_ra>
// kernel: lstm_tag_net_forward.5
= control target key start
LH: loop header
LB: loop body
LE: loop exit
PB: predicated region body
PF: predicated region fallthrough
CT: control target
= control target key end

     0   :  { %11 = vsyncpa [#allocation3], 0  ;;  %s705_s0 = inlined_call_operand.vmem [shape: f32[8,64], index: 0, kind: input, shape index: {}]   ;;  %s706_s1 = inlined_call_operand.hbm [shape: f32[8,8], index: 1, kind: input, shape index: {}]   ;;  %s707_s2 = inlined_call_operand.hbm [shape: f32[4,64,128], index: 2, kind: input, shape index: {}]   ;;  %s708_s3 = inlined_call_operand.hbm [shape: f32[1,128], index: 3, kind: input, shape index: {}]   ;;  %s709_s4 = inlined_call_operand.hbm [shape: f32[4,128,128], index: 4, kind: input, shape index: {}]   ;;  %s710_s5 = inlined_call_operand.vmem [shape: f32[1,128], index: 5, kind: input, shape index: {}]   ;;  %s711_s6 = inlined_call_operand.vmem [shape: f32[8,128], index: 6, kind: output, shape index: {}]  }
   0x1   :  { %12 = vsyncpa [#allocation5], 0  ;;  %s31_s23 = sshll.u32 %s707_s2, 4  ;;  %s32_s23 = int_to_ptr.hbm [resolvable:$true] %s31_s23 }
   0x2   :  { %13 = vsyncpa [#allocation8], 0  ;;  %s619_s24 = smov [#allocation4]   ;;  %s21_s28 = sshll.u32 %s706_s1, 4  ;;  %s22_s28 = int_to_ptr.hbm [resolvable:$true] %s21_s28 }
   0x3   :  { %s33_s25 = sshll.u32 %s619_s24, 4  ;;  %s620_s29 = smov 128   ;;  %s34_s25 = int_to_ptr.vmem [resolvable:$true] %s33_s25 }
   0x4   :  { %s621_s30 = smov 8   ;;  %s622_s7 = smov [#allocation2]  }
   0x5   :  { %39 = dma.hbm_to_vmem [thread:$0]  %s32_s23, 4096, %s34_s25, [#allocation5], %s620_s29, %s620_s29, %s621_s30  }
   0x6   :  { %s23_s8 = sshll.u32 %s622_s7, 4  ;;  %s45_s11 = sshll.u32 %s708_s3, 4  ;;  %s24_s8 = int_to_ptr.vmem [resolvable:$true] %s23_s8  ;;  %s46_s11 = int_to_ptr.hbm [resolvable:$true] %s45_s11 }
   0x7   :  { %26 = dma.hbm_to_vmem [thread:$0]  %s22_s28, 128, %s24_s8, [#allocation3]  }
   0x8   :  { %s55_s13 = sshll.u32 %s709_s4, 4  ;;  %s623_s14 = smov [#allocation6]   ;;  %s56_s13 = int_to_ptr.hbm [resolvable:$true] %s55_s13 }
   0x9   :  { %s47_s15 = sshll.u32 %s623_s14, 4  ;;  %s624_s1 = smov [#allocation7]   ;;  %s48_s15 = int_to_ptr.vmem [resolvable:$true] %s47_s15 }
   0xa   :  { %50 = dma.hbm_to_vmem [thread:$0]  %s46_s11, 16, %s48_s15, [#allocation5]  }
   0xb   :  { %s57_s16 = sshll.u32 %s624_s1, 4  ;;  %s58_s16 = int_to_ptr.vmem [resolvable:$true] %s57_s16 }
   0xc   :  { %63 = dma.hbm_to_vmem [thread:$0]  %s56_s13, 8192, %s58_s16, [#allocation8], %s620_s29, %s620_s29, %s621_s30  }
   0xd   :  { %613 = dma.done.wait [#allocation3], 128  }
   0xe   :  { %614 = vsyncadd [#allocation3], 4294967168 }
   0xf   :  { %615 = dma.done.wait [#allocation5], 4112  }
  0x10   :  { %616 = vsyncadd [#allocation5], 4294963184 }
  0x11   :  { %617 = dma.done.wait [#allocation8], 8192  }
  0x12   :  { %618 = vsyncadd [#allocation8], 4294959104  ;;  %v85_v0 = vld [vmem:[%s705_s0] sm:$0xff]  ;;  %vm104_vm0 = vcmask 1043456   ;;  %v94_v2 = vld [vmem:[#allocation4 + $0x30] sm:$0xff]  ;;  %vm100_vm1 = vcmask 64512  }
  0x13   :  { %v83_v1 = vld [vmem:[#allocation2] sm:$0xff]  ;;  %v87_v3 = vpack.c.bf16 %v85_v0, %v85_v0  ;;  %v92_v5 = vld [vmem:[#allocation4 + $0x20] sm:$0xff]  ;;  %v93_v6 = vld [vmem:[#allocation4 + $0x28] sm:$0xff]  ;;  %vm135_vm2 = vcmask 523264  }
  0x14   :  { %v95_v4 = vld [vmem:[#allocation4 + $0x38] sm:$0xff]  ;;  %v129_v8 = vld [vmem:[#allocation4 + $0x70] sm:$0xff]  ;;  %v676_v11 = vpack.c.bf16 %v83_v1, %v83_v1  ;;  %v127_v13 = vld [vmem:[#allocation4 + $0x60] sm:$0xff]  ;;  %v98_v15 = vpack.c.bf16 %v93_v6, %v92_v5 }
  0x15   :  { %v99_v7 = vpack.c.bf16 %v95_v4, %v94_v2  ;;  %v130_v9 = vld [vmem:[#allocation4 + $0x78] sm:$0xff]  ;;  %v106_v10 = vsel %vm104_vm0, %v87_v3, 0  ;;  %v128_v14 = vld [vmem:[#allocation4 + $0x68] sm:$0xff]  ;;  %v90_v16 = vld [vmem:[#allocation4 + $0x10] sm:$0xff] }
  0x16   :  { %v134_v12 = vpack.c.bf16 %v130_v9, %v129_v8  ;;  %115 = vmatpush.bf16.msra.mxu0 %v106_v10  ;;  %v91_v17 = vld [vmem:[#allocation4 + $0x18] sm:$0xff]  ;;  %v133_v18 = vpack.c.bf16 %v128_v14, %v127_v13  ;;  %v125_v19 = vld [vmem:[#allocation4 + $0x50] sm:$0xff]  ;;  %v88_v22 = vld [vmem:[#allocation4] sm:$0xff] }
  0x17   :  { %158 = vmatpush.bf16.msra.mxu2 %v99_v7  ;;  %v126_v20 = vld [vmem:[#allocation4 + $0x58] sm:$0xff]  ;;  %v97_v21 = vpack.c.bf16 %v91_v17, %v90_v16  ;;  %v89_v23 = vld [vmem:[#allocation4 + $0x8] sm:$0xff]  ;;  %v123_v26 = vld [vmem:[#allocation4 + $0x40] sm:$0xff] }
  0x18   :  { %143 = vmatpush.bf16.msra.mxu1 %v134_v12  ;;  %v132_v24 = vpack.c.bf16 %v126_v20, %v125_v19  ;;  %v96_v25 = vpack.c.bf16 %v89_v23, %v88_v22  ;;  %v124_v27 = vld [vmem:[#allocation4 + $0x48] sm:$0xff]  ;;  %v190_v29 = vld [vmem:[#allocation4 + $0xb0] sm:$0xff]  ;;  %v191_v30 = vld [vmem:[#allocation4 + $0xb8] sm:$0xff] }
  0x19   :  { %495 = vmatmul.msk.bf16.vlgmr.msra.gmra.mxu0 %vm100_vm1, %v676_v11  ;;  %v131_v28 = vpack.c.bf16 %v124_v27, %v123_v26  ;;  %v195_v33 = vpack.c.bf16 %v191_v30, %v190_v29  ;;  %v188_v36 = vld [vmem:[#allocation4 + $0xa0] sm:$0xff]  ;;  %v189_v37 = vld [vmem:[#allocation4 + $0xa8] sm:$0xff]  ;;  %v186_v40 = vld [vmem:[#allocation4 + $0x90] sm:$0xff] }
  0x1a   :  { %v194_v39 = vpack.c.bf16 %v189_v37, %v188_v36  ;;  %v187_v41 = vld [vmem:[#allocation4 + $0x98] sm:$0xff]  ;;  %v184_v43 = vld [vmem:[#allocation4 + $0x80] sm:$0xff]  ;;  %v185_v44 = vld [vmem:[#allocation4 + $0x88] sm:$0xff] }
  0x1b   :  { %159 = vmatpush.bf16.msra.mxu2 %v98_v15  ;;  %v193_v42 = vpack.c.bf16 %v187_v41, %v186_v40  ;;  %v192_v45 = vpack.c.bf16 %v185_v44, %v184_v43  ;;  %v236_v54 = vld [vmem:[#allocation4 + $0xf0] sm:$0xff]  ;;  %v237_v55 = vld [vmem:[#allocation4 + $0xf8] sm:$0xff]  ;;  %v234_v57 = vld [vmem:[#allocation4 + $0xe0] sm:$0xff] }
  0x1c   :  { %144 = vmatpush.bf16.msra.mxu1 %v133_v18  ;;  %v241_v56 = vpack.c.bf16 %v237_v55, %v236_v54  ;;  %v235_v58 = vld [vmem:[#allocation4 + $0xe8] sm:$0xff]  ;;  %v232_v60 = vld [vmem:[#allocation4 + $0xd0] sm:$0xff]  ;;  %v233_v61 = vld [vmem:[#allocation4 + $0xd8] sm:$0xff] }
  0x1d   :  { %v240_v59 = vpack.c.bf16 %v235_v58, %v234_v57  ;;  %v239_v62 = vpack.c.bf16 %v233_v61, %v232_v60  ;;  %v230_v63 = vld [vmem:[#allocation4 + $0xc0] sm:$0xff]  ;;  %v231_v0 = vld [vmem:[#allocation4 + $0xc8] sm:$0xff]  ;;  %v279_v2 = vld [vmem:[#allocation7 + $0x70] sm:$0xff] }
  0x1e   :  { %v238_v1 = vpack.c.bf16 %v231_v0, %v230_v63  ;;  %v277_v4 = vld [vmem:[#allocation7 + $0x60] sm:$0xff]  ;;  %v278_v6 = vld [vmem:[#allocation7 + $0x68] sm:$0xff]  ;;  %v275_v8 = vld [vmem:[#allocation7 + $0x50] sm:$0xff] }
  0x1f   :  { %160 = vmatpush.bf16.msra.mxu2 %v97_v21  ;;  %v287_v7 = vpack.c.bf16 %v278_v6, %v277_v4  ;;  %v276_v9 = vld [vmem:[#allocation7 + $0x58] sm:$0xff]  ;;  %v273_v13 = vld [vmem:[#allocation7 + $0x40] sm:$0xff]  ;;  %v274_v14 = vld [vmem:[#allocation7 + $0x48] sm:$0xff] }
  0x20   :  { %145 = vmatpush.bf16.msra.mxu1 %v132_v24  ;;  %v286_v10 = vpack.c.bf16 %v276_v9, %v275_v8  ;;  %v285_v16 = vpack.c.bf16 %v274_v14, %v273_v13  ;;  %v271_v17 = vld [vmem:[#allocation7 + $0x30] sm:$0xff]  ;;  %v272_v18 = vld [vmem:[#allocation7 + $0x38] sm:$0xff]  ;;  %v269_v21 = vld [vmem:[#allocation7 + $0x20] sm:$0xff] }
  0x21   :  { %v284_v19 = vpack.c.bf16 %v272_v18, %v271_v17  ;;  %v270_v22 = vld [vmem:[#allocation7 + $0x28] sm:$0xff]  ;;  %v267_v27 = vld [vmem:[#allocation7 + $0x10] sm:$0xff]  ;;  %v265_v30 = vld [vmem:[#allocation7] sm:$0xff] }
  0x22   :  { %v283_v23 = vpack.c.bf16 %v270_v22, %v269_v21  ;;  %v320_v37 = vld [vmem:[#allocation7 + $0xe8] sm:$0xff]  ;;  %v318_v40 = vld [vmem:[#allocation7 + $0xd8] sm:$0xff]  ;;  %v307_v61 = vld [vmem:[#allocation7 + $0x80] sm:$0xff] }
  0x23   :  { %161 = vmatpush.bf16.msra.mxu2 %v96_v25  ;;  %v316_v43 = vld [vmem:[#allocation7 + $0xc8] sm:$0xff]  ;;  %v389_v0 = vld [vmem:[#allocation7 + $0x170] sm:$0xff]  ;;  %v383_v9 = vld [vmem:[#allocation7 + $0x140] sm:$0xff] }
  0x24   :  { %146 = vmatpush.bf16.msra.mxu1 %v131_v28  ;;  %v268_v28 = vld [vmem:[#allocation7 + $0x18] sm:$0xff]  ;;  %v388_v4 = vld [vmem:[#allocation7 + $0x168] sm:$0xff]  ;;  %v385_v6 = vld [vmem:[#allocation7 + $0x150] sm:$0xff] }
  0x25   :  { %v282_v29 = vpack.c.bf16 %v268_v28, %v267_v27  ;;  %v381_v13 = vld [vmem:[#allocation7 + $0x130] sm:$0xff]  ;;  %v382_v14 = vld [vmem:[#allocation7 + $0x138] sm:$0xff]  ;;  %v380_v17 = vld [vmem:[#allocation7 + $0x128] sm:$0xff] }
  0x26   :  { %497 = vmatmul.msk.bf16.vlgmr.msra.gmra.mxu2 %vm135_vm2, %v87_v3  ;;  %v280_v3 = vld [vmem:[#allocation7 + $0x78] sm:$0xff]  ;;  %v375_v28 = vld [vmem:[#allocation7 + $0x100] sm:$0xff] }
  0x27   :  { %v288_v5 = vpack.c.bf16 %v280_v3, %v279_v2  ;;  %v387_v2 = vld [vmem:[#allocation7 + $0x160] sm:$0xff] }
  0x28   :  { %249 = vmatpush.bf16.msrb.mxu1 %v241_v56 }
  0x2c   :  { %250 = vmatpush.bf16.msrb.mxu1 %v240_v59 }
  0x30   :  { %251 = vmatpush.bf16.msrb.mxu1 %v239_v62  ;;  %v308_v62 = vld [vmem:[#allocation7 + $0x88] sm:$0xff] }
  0x31   :  { %v323_v63 = vpack.c.bf16 %v308_v62, %v307_v61 }
  0x34   :  { %252 = vmatpush.bf16.msrb.mxu1 %v238_v1  ;;  %v390_v1 = vld [vmem:[#allocation7 + $0x178] sm:$0xff] }
  0x35   :  { %v398_v3 = vpack.c.bf16 %v390_v1, %v389_v0 }
  0x96   :  { %v117_v31 = vpop.f32.mrf.mxu0 }
  0x97   :  { %v121_v32 = vpack.c.bf16 %v117_v31, %v117_v31  ;;  %v266_v31 = vld [vmem:[#allocation7 + $0x8] sm:$0xff] }
  0x99   :  { %496 = vmatmul.msk.bf16.vlgmr.msra.gmra.mxu1 %vm135_vm2, %v121_v32  ;;  %v167_v34 = vsel %vm104_vm0, %v121_v32, 0  ;;  %v281_v32 = vpack.c.bf16 %v266_v31, %v265_v30  ;;  %v445_v31 = vld [vmem:[#allocation7 + $0x1f0] sm:$0xff] }
  0x9a   :  { %176 = vmatpush.bf16.msra.mxu3 %v167_v34  ;;  %v322_v34 = vld [vmem:[#allocation7 + $0xf8] sm:$0xff] }
  0x9d   :  { %498 = vmatmul.msk.bf16.vlgmr.msra.gmra.mxu3 %vm100_vm1, %v676_v11 }
  0x9e   :  { %203 = vmatpush.bf16.msrb.mxu3 %v195_v33  ;;  %v119_v35 = vpop.f32.mrf.mxu0  ;;  %v321_v33 = vld [vmem:[#allocation7 + $0xf0] sm:$0xff] }
  0x9f   :  { %v319_v35 = vld [vmem:[#allocation7 + $0xe0] sm:$0xff]  ;;  %v330_v36 = vpack.c.bf16 %v322_v34, %v321_v33 }
  0xa0   :  { %v443_v33 = vld [vmem:[#allocation7 + $0x1e0] sm:$0xff] }
  0xa1   :  { %331 = vmatpush.bf16.msrb.mxu0 %v330_v36 }
  0xa2   :  { %204 = vmatpush.bf16.msrb.mxu3 %v194_v39  ;;  %v317_v39 = vld [vmem:[#allocation7 + $0xd0] sm:$0xff] }
  0xa3   :  { %v328_v41 = vpack.c.bf16 %v318_v40, %v317_v39  ;;  %v439_v40 = vld [vmem:[#allocation7 + $0x1c0] sm:$0xff] }
  0xa6   :  { %205 = vmatpush.bf16.msrb.mxu3 %v193_v42  ;;  %v315_v42 = vld [vmem:[#allocation7 + $0xc0] sm:$0xff] }
  0xa7   :  { %v327_v44 = vpack.c.bf16 %v316_v43, %v315_v42  ;;  %v437_v43 = vld [vmem:[#allocation7 + $0x1b0] sm:$0xff] }
  0xa9   :  { %v163_v38 = vpop.f32.mrf.mxu2 }
  0xaa   :  { %206 = vmatpush.bf16.msrb.mxu3 %v192_v45  ;;  %v313_v45 = vld [vmem:[#allocation7 + $0xb0] sm:$0xff] }
  0xb1   :  { %v165_v46 = vpop.f32.mrf.mxu2 }
  0xb2   :  { %v314_v46 = vld [vmem:[#allocation7 + $0xb8] sm:$0xff] }
 0x116   :  { %v148_v47 = vpop.f32.mrf.mxu1 }
 0x117   :  { %v164_v48 = vadd.f32 %v163_v38, %v148_v47  ;;  %v329_v38 = vpack.c.bf16 %v320_v37, %v319_v35  ;;  %v326_v47 = vpack.c.bf16 %v314_v46, %v313_v45  ;;  %v444_v35 = vld [vmem:[#allocation7 + $0x1e8] sm:$0xff]  ;;  %v441_v37 = vld [vmem:[#allocation7 + $0x1d0] sm:$0xff]  ;;  %v435_v46 = vld [vmem:[#allocation7 + $0x1a0] sm:$0xff] }
 0x118   :  { %v453_v36 = vpack.c.bf16 %v444_v35, %v443_v33 }
 0x119   :  { %332 = vmatpush.bf16.msrb.mxu0 %v329_v38  ;;  %v442_v38 = vld [vmem:[#allocation7 + $0x1d8] sm:$0xff] }
 0x11a   :  { %v452_v39 = vpack.c.bf16 %v442_v38, %v441_v37 }
 0x11d   :  { %333 = vmatpush.bf16.msrb.mxu0 %v328_v41  ;;  %v440_v41 = vld [vmem:[#allocation7 + $0x1c8] sm:$0xff] }
 0x11e   :  { %v150_v49 = vpop.f32.mrf.mxu1  ;;  %v451_v42 = vpack.c.bf16 %v440_v41, %v439_v40 }
 0x11f   :  { %v312_v49 = vld [vmem:[#allocation7 + $0xa8] sm:$0xff] }
 0x120   :  { %v178_v50 = vpop.f32.mrf.mxu3 }
 0x121   :  { %v182_v51 = vpack.c.bf16 %v178_v50, %v178_v50  ;;  %334 = vmatpush.bf16.msrb.mxu0 %v327_v44  ;;  %v438_v44 = vld [vmem:[#allocation7 + $0x1b8] sm:$0xff] }
 0x122   :  { %v450_v45 = vpack.c.bf16 %v438_v44, %v437_v43 }
 0x123   :  { %v213_v52 = vsel %vm104_vm0, %v182_v51, 0  ;;  %499 = vmatmul.msk.bf16.vlgmr.msrb.gmra.mxu3 %vm135_vm2, %v182_v51  ;;  %v511_v51 = vld [vmem:[#allocation6] ss:$0 sm:$0xff] }
 0x124   :  { %222 = vmatpush.bf16.msra.mxu3 %v213_v52  ;;  %v309_v52 = vld [vmem:[#allocation7 + $0x90] sm:$0xff] }
 0x125   :  { %335 = vmatpush.bf16.msrb.mxu0 %v326_v47  ;;  %v436_v47 = vld [vmem:[#allocation7 + $0x1a8] sm:$0xff] }
 0x128   :  { %v180_v53 = vpop.f32.mrf.mxu3  ;;  %344 = vmatpush.bf16.msrb.mxu3 %v288_v5  ;;  %v397_v5 = vpack.c.bf16 %v388_v4, %v387_v2  ;;  %v473_v4 = vlaneseq }
 0x129   :  { %v310_v53 = vld [vmem:[#allocation7 + $0x98] sm:$0xff] }
 0x12a   :  { %v324_v56 = vpack.c.bf16 %v310_v53, %v309_v52 }
 0x12c   :  { %345 = vmatpush.bf16.msrb.mxu3 %v287_v7  ;;  %v386_v7 = vld [vmem:[#allocation7 + $0x158] sm:$0xff] }
 0x12d   :  { %v396_v8 = vpack.c.bf16 %v386_v7, %v385_v6  ;;  %v512_v6 = vld [vmem:[%s710_s5] ss:$0 sm:$0xff] }
 0x130   :  { %346 = vmatpush.bf16.msrb.mxu3 %v286_v10  ;;  %v384_v10 = vld [vmem:[#allocation7 + $0x148] sm:$0xff] }
 0x133   :  { %500 = vmatmul.msk.bf16.vlgmr.msra.gmra.mxu3 %vm100_vm1, %v676_v11 }
 0x134   :  { %347 = vmatpush.bf16.msrb.mxu3 %v285_v16  ;;  %v379_v16 = vld [vmem:[#allocation7 + $0x120] sm:$0xff] }
 0x135   :  { %v393_v18 = vpack.c.bf16 %v380_v17, %v379_v16 }
 0x138   :  { %348 = vmatpush.bf16.msrb.mxu3 %v284_v19 }
 0x13c   :  { %349 = vmatpush.bf16.msrb.mxu3 %v283_v23 }
 0x140   :  { %350 = vmatpush.bf16.msrb.mxu3 %v282_v29  ;;  %v376_v29 = vld [vmem:[#allocation7 + $0x108] sm:$0xff] }
 0x141   :  { %v391_v30 = vpack.c.bf16 %v376_v29, %v375_v28 }
 0x144   :  { %351 = vmatpush.bf16.msrb.mxu3 %v281_v32  ;;  %v446_v32 = vld [vmem:[#allocation7 + $0x1f8] sm:$0xff] }
 0x145   :  { %v454_v34 = vpack.c.bf16 %v446_v32, %v445_v31 }
 0x1a6   :  { %v208_v12 = vpop.f32.mrf.mxu3 }
 0x1a7   :  { %v212_v15 = vadd.f32 %v208_v12, %v164_v48  ;;  %v311_v48 = vld [vmem:[#allocation7 + $0xa0] sm:$0xff]  ;;  %v395_v12 = vpack.c.bf16 %v384_v10, %v383_v9 }
 0x1a8   :  { %v325_v50 = vpack.c.bf16 %v312_v49, %v311_v48  ;;  %v449_v48 = vpack.c.bf16 %v436_v47, %v435_v46 }
 0x1aa   :  { %336 = vmatpush.bf16.msrb.mxu0 %v325_v50  ;;  %v433_v50 = vld [vmem:[#allocation7 + $0x190] sm:$0xff] }
 0x1ae   :  { %v210_v20 = vpop.f32.mrf.mxu3  ;;  %337 = vmatpush.bf16.msrb.mxu0 %v324_v56 }
 0x1b2   :  { %338 = vmatpush.bf16.msrb.mxu0 %v323_v63 }
 0x1b6   :  { %v224_v24 = vpop.f32.mrf.mxu3  ;;  %455 = vmatpush.bf16.msra.mxu0 %v454_v34 }
 0x1b7   :  { %v228_v25 = vpack.c.bf16 %v224_v24, %v224_v24 }
 0x1b9   :  { %501 = vmatmul.msk.bf16.vlgmr.msrb.gmra.mxu1 %vm135_vm2, %v228_v25  ;;  %v377_v25 = vld [vmem:[#allocation7 + $0x110] sm:$0xff] }
 0x1ba   :  { %456 = vmatpush.bf16.msra.mxu0 %v453_v36 }
 0x1be   :  { %v226_v26 = vpop.f32.mrf.mxu3  ;;  %457 = vmatpush.bf16.msra.mxu0 %v452_v39 }
 0x1bf   :  { %v378_v26 = vld [vmem:[#allocation7 + $0x118] sm:$0xff] }
 0x1c0   :  { %v392_v27 = vpack.c.bf16 %v378_v26, %v377_v25 }
 0x1c2   :  { %458 = vmatpush.bf16.msra.mxu0 %v451_v42 }
 0x1c6   :  { %459 = vmatpush.bf16.msra.mxu0 %v450_v45 }
 0x1ca   :  { %460 = vmatpush.bf16.msra.mxu0 %v449_v48 }
 0x236   :  { %v254_v54 = vpop.f32.mrf.mxu1 }
 0x237   :  { %v258_v55 = vadd.f32 %v254_v54, %v212_v15  ;;  %v394_v15 = vpack.c.bf16 %v382_v14, %v381_v13 }
 0x239   :  { %v262_v57 = vadd.f32 %v511_v51, %v258_v55  ;;  %v434_v51 = vld [vmem:[#allocation7 + $0x198] sm:$0xff] }
 0x23a   :  { %v448_v52 = vpack.c.bf16 %v434_v51, %v433_v50 }
 0x23b   :  { %v264_v58 = vpack.c.bf16 %v262_v57, %v262_v57 }
 0x23c   :  { %461 = vmatpush.bf16.msra.mxu0 %v448_v52 }
 0x23d   :  { %352 = vmatmul.bf16.vlgmr.msrb.gmra.mxu3 %v264_v58  ;;  %v290_v59 = vsel %vm104_vm0, %v264_v58, 0  ;;  %v431_v58 = vld [vmem:[#allocation7 + $0x180] sm:$0xff] }
 0x23e   :  { %v256_v60 = vpop.f32.mrf.mxu1  ;;  %299 = vmatpush.bf16.msrb.mxu2 %v290_v59  ;;  %v432_v59 = vld [vmem:[#allocation7 + $0x188] sm:$0xff] }
 0x23f   :  { %v447_v60 = vpack.c.bf16 %v432_v59, %v431_v58 }
 0x241   :  { %502 = vmatmul.msk.bf16.vlgmr.msrb.gmra.mxu2 %vm100_vm1, %v676_v11  ;;  %462 = vmatpush.bf16.msra.mxu0 %v447_v60 }
 0x242   :  { %399 = vmatpush.bf16.msra.mxu2 %v398_v3 }
 0x246   :  { %400 = vmatpush.bf16.msra.mxu2 %v397_v5  ;;  %v474_v5 = vand.u32 127, %v473_v4 }
 0x248   :  { %vm475_vm3 = vcmp.lt.s32.totalorder %v474_v5, 2 }
 0x24a   :  { %401 = vmatpush.bf16.msra.mxu2 %v396_v8 }
 0x24e   :  { %402 = vmatpush.bf16.msra.mxu2 %v395_v12 }
 0x252   :  { %403 = vmatpush.bf16.msra.mxu2 %v394_v15 }
 0x256   :  { %404 = vmatpush.bf16.msra.mxu2 %v393_v18 }
 0x25a   :  { %405 = vmatpush.bf16.msra.mxu2 %v392_v27 }
 0x25e   :  { %406 = vmatpush.bf16.msra.mxu2 %v391_v30 }
 0x2c0   :  { %v353_v19 = vpop.f32.mrf.mxu3 }
 0x2c4   :  { %v301_v20 = vpop.f32.mrf.mxu2 }
 0x2c5   :  { %v305_v21 = vpack.c.bf16 %v301_v20, %v301_v20 }
 0x2c7   :  { %v358_v22 = vsel %vm104_vm0, %v305_v21, 0  ;;  %339 = vmatmul.bf16.vlgmr.msrb.gmra.mxu0 %v305_v21 }
 0x2c8   :  { %v355_v23 = vpop.f32.mrf.mxu3  ;;  %367 = vmatpush.bf16.msra.mxu1 %v358_v22 }
 0x2cb   :  { %503 = vmatmul.msk.bf16.vlgmr.msra.gmra.mxu1 %vm100_vm1, %v676_v11 }
 0x2cc   :  { %v303_v24 = vpop.f32.mrf.mxu2 }
 0x344   :  { %v340_v49 = vpop.f32.mrf.mxu0 }
 0x345   :  { %v354_v62 = vadd.f32 %v353_v19, %v340_v49 }
 0x348   :  { %v369_v53 = vpop.f32.mrf.mxu1 }
 0x349   :  { %v373_v54 = vpack.c.bf16 %v369_v53, %v369_v53 }
 0x34b   :  { %v414_v55 = vsel %vm104_vm0, %v373_v54, 0  ;;  %407 = vmatmul.bf16.vlgmr.msra.gmra.mxu2 %v373_v54 }
 0x34c   :  { %v342_v56 = vpop.f32.mrf.mxu0  ;;  %423 = vmatpush.bf16.msrb.mxu1 %v414_v55 }
 0x34f   :  { %504 = vmatmul.msk.bf16.vlgmr.msrb.gmra.mxu1 %vm100_vm1, %v676_v11 }
 0x350   :  { %v371_v57 = vpop.f32.mrf.mxu1 }
 0x3cc   :  { %v425_v61 = vpop.f32.mrf.mxu1 }
 0x3cd   :  { %v429_v63 = vpack.c.bf16 %v425_v61, %v425_v61 }
 0x3ce   :  { %v408_v0 = vpop.f32.mrf.mxu2 }
 0x3cf   :  { %v412_v1 = vadd.f32 %v408_v0, %v354_v62  ;;  %463 = vmatmul.bf16.vlgmr.msra.gmra.mxu0 %v429_v63 }
 0x3d4   :  { %v427_v2 = vpop.f32.mrf.mxu1 }
 0x3d6   :  { %v410_v3 = vpop.f32.mrf.mxu2 }
 0x44c   :  { %v464_v11 = vpop.f32.mrf.mxu0 }
 0x44d   :  { %v468_v7 = vadd.f32 %v464_v11, %v412_v1 }
 0x44f   :  { %v472_v8 = vadd.f32 %v512_v6, %v468_v7 }
 0x451   :  { %v476_v9 = vsel %vm475_vm3, %v472_v8, -inf }
 0x452   :  { %477 = vmax.xlane.f32.xlu0 %v476_v9 }
 0x454   :  { %v466_v10 = vpop.f32.mrf.mxu0 }
 0x4c5   :  { %v478_v12 = vpop.xlane.xlu0 %477 }
 0x4c6   :  { %v479_v13 = vsub.f32 %v476_v9, %v478_v12 }
 0x4c8   :  { %v480_v14 = vmul.f32 1.442695, %v479_v13 }
 0x4ca   :  { %513 = vpow2.f32 %v480_v14 }
 0x4d0   :  { %v514_v15 = vpop.eup %513 }
 0x4d1   :  { %482 = vadd.xlane.f32.xlu0 %v514_v15 }
 0x544   :  { %v483_v16 = vpop.xlane.xlu0 %482 }
 0x545   :  { %515 = vlog2.f32 %v483_v16 }
 0x54b   :  { %v516_v17 = vpop.eup %515 }
 0x54c   :  { %v485_v18 = vmul.f32 0.6931472, %v516_v17 }
 0x54e   :  { %v486_v19 = vsub.f32 %v479_v13, %v485_v18 }
 0x550   :  { %487 = vst [vmem:[%s711_s6] sm:$0xff] %v486_v19 }
 0x551   :  { %492 = vsyncpa [#allocation3], 1 }
 0x552   :  { %493 = vsyncpa [#allocation5], 1 }
 0x553   :  { %494 = vsyncpa [#allocation8], 1 }

// kernel: lstm_tag_net_forward.3
= control target key start
LH: loop header
LB: loop body
LE: loop exit
PB: predicated region body
PF: predicated region fallthrough
CT: control target
= control target key end

     0   :  { %9 = vsyncpa [#allocation4], 0  ;;  %s1904_s0 = inlined_call_operand.hbm [shape: f32[8,16], index: 0, kind: input, shape index: {}]   ;;  %s1905_s1 = inlined_call_operand.hbm [shape: f32[16,256], index: 1, kind: input, shape index: {}]   ;;  %s1906_s2 = inlined_call_operand.hbm [shape: f32[64,256], index: 2, kind: input, shape index: {}]   ;;  %s1907_s3 = inlined_call_operand.vmem [shape: f32[1,256], index: 3, kind: input, shape index: {}]   ;;  %s1908_s4 = inlined_call_operand.vmem [shape: f32[8,64], index: 4, kind: output, shape index: {}]  }
   0x1   :  { %10 = vsyncpa [#allocation6], 0  ;;  %s26_s17 = sshll.u32 %s1905_s1, 4  ;;  %s1498_s18 = smov [#allocation5]   ;;  %s27_s17 = int_to_ptr.hbm [resolvable:$true] %s26_s17 }
   0x2   :  { %s28_s19 = sshll.u32 %s1498_s18, 4  ;;  %s16_s22 = sshll.u32 %s1904_s0, 4  ;;  %s29_s19 = int_to_ptr.vmem [resolvable:$true] %s28_s19  ;;  %s17_s22 = int_to_ptr.hbm [resolvable:$true] %s16_s22 }
   0x3   :  { %s1499_s23 = smov 256   ;;  %s1500_s24 = smov 16  }
   0x4   :  { %34 = dma.hbm_to_vmem [thread:$0]  %s27_s17, 512, %s29_s19, [#allocation6], %s1499_s23, %s1499_s23, %s1500_s24  }
   0x5   :  { %s1501_s25 = smov [#allocation3]   ;;  %s39_s29 = sshll.u32 %s1906_s2, 4  ;;  %s40_s29 = int_to_ptr.hbm [resolvable:$true] %s39_s29 }
   0x6   :  { %s18_s26 = sshll.u32 %s1501_s25, 4  ;;  %s1502_s1 = smov [#allocation7]   ;;  %s19_s26 = int_to_ptr.vmem [resolvable:$true] %s18_s26 }
   0x7   :  { %21 = dma.hbm_to_vmem [thread:$0]  %s17_s22, 128, %s19_s26, [#allocation4]  }
   0x8   :  { %s41_s30 = sshll.u32 %s1502_s1, 4  ;;  %s42_s30 = int_to_ptr.vmem [resolvable:$true] %s41_s30 }
   0x9   :  { %47 = dma.hbm_to_vmem [thread:$0]  %s40_s29, 2048, %s42_s30, [#allocation6], %s1499_s23, %s1499_s23, %s1500_s24  }
   0xa   :  { %1494 = dma.done.wait [#allocation4], 128  }
   0xb   :  { %1495 = vsyncadd [#allocation4], 4294967168 }
   0xc   :  { %1496 = dma.done.wait [#allocation6], 2560  }
   0xd   :  { %1497 = vsyncadd [#allocation6], 4294964736  ;;  %v1541_v0 = vld [vmem:[#allocation7 + $0x70] sm:$0xff]  ;;  %v1543_v1 = vld [vmem:[#allocation7 + $0x78] sm:$0xff]  ;;  %vm77_vm0 = vcmask 130048   ;;  %v1503_v24 = vmov 0.0  }
   0xe   :  { %v65_v2 = vld [vmem:[#allocation5] sm:$0xff]  ;;  %137 = vmatpush.msra.mxu2 %v1541_v0  ;;  %157 = vmatpush.msra.mxu3 %v1543_v1  ;;  %v67_v3 = vld [vmem:[#allocation5 + $0x10] sm:$0xff]  ;;  %v1549_v5 = vld [vmem:[#allocation7 + $0x68] sm:$0xff]  ;;  %s1505_s5 = smov 32   ;;  %s1506_s6 = smov 96   ;;  %vm259_vm9 = vcmask 261120  }
   0xf   :  { %v1547_v4 = vld [vmem:[#allocation7 + $0x60] sm:$0xff]  ;;  %v69_v6 = vpack.c.bf16 %v67_v3, %v65_v2  ;;  %v1551_v7 = vld [vmem:[#allocation7 + $0x50] sm:$0xff]  ;;  %v1553_v8 = vld [vmem:[#allocation7 + $0x58] sm:$0xff]  ;;  %vm251_vm10 = vcmask 253952   ;;  %vm257_vm11 = vcmask 516352   ;;  %vm125_vm12 = vcmask 523264  }
  0x10   :  { %v63_v9 = vld [vmem:[#allocation3] sm:$0xff]  ;;  %138 = vmatpush.msra.mxu2 %v1547_v4  ;;  %158 = vmatpush.msra.mxu3 %v1549_v5  ;;  %v66_v11 = vld [vmem:[#allocation5 + $0x8] sm:$0xff]  ;;  %v1557_v12 = vld [vmem:[#allocation7 + $0x40] sm:$0xff] }
  0x11   :  { %v64_v10 = vpack.c.bf16 %v63_v9, %v63_v9  ;;  %88 = vmatpush.bf16.msra.mxu0 %v69_v6  ;;  %v68_v13 = vld [vmem:[#allocation5 + $0x18] sm:$0xff]  ;;  %v1561_v14 = vld [vmem:[#allocation7 + $0x48] sm:$0xff]  ;;  %v1563_v16 = vld [vmem:[#allocation7 + $0x30] sm:$0xff] }
  0x12   :  { %139 = vmatpush.msra.mxu2 %v1551_v7  ;;  %159 = vmatpush.msra.mxu3 %v1553_v8  ;;  %v70_v15 = vpack.c.bf16 %v68_v13, %v66_v11  ;;  %v1568_v17 = vld [vmem:[#allocation7 + $0x38] sm:$0xff]  ;;  %v1571_v18 = vld [vmem:[#allocation7 + $0x20] sm:$0xff]  ;;  %v1574_v19 = vld [vmem:[#allocation7 + $0x28] sm:$0xff] }
  0x13   :  { %v1578_v20 = vld [vmem:[#allocation7 + $0x10] sm:$0xff]  ;;  %v1583_v21 = vld [vmem:[#allocation7 + $0x18] sm:$0xff]  ;;  %v1586_v22 = vld [vmem:[#allocation7] sm:$0xff] }
  0x14   :  { %1253 = vmatmul.msk.bf16.vlgmr.msra.gmra.mxu0 %vm77_vm0, %v64_v10  ;;  %140 = vmatpush.msra.mxu2 %v1557_v12  ;;  %v1590_v23 = vld [vmem:[#allocation7 + $0x8] sm:$0xff] }
  0x15   :  { %277 = vmatpush.msrb.mxu0 %v1541_v0  ;;  %160 = vmatpush.msra.mxu3 %v1561_v14  ;;  %v71_v25 = vld [vmem:[%s1907_s3] sm:$0x3]  ;;  %s1504_s3 = smov 64  }
  0x16   :  { %101 = vmatpush.bf16.msra.mxu1 %v70_v15  ;;  %141 = vmatpush.msra.mxu2 %v1563_v16  ;;  %v73_v26 = vperm.slane %v71_v25, 0  ;;  %v74_v29 = vperm.slane %v71_v25, 1 }
  0x17   :  { %161 = vmatpush.msra.mxu3 %v1568_v17  ;;  %278 = vmatpush.msrb.mxu0 %v1547_v4 }
  0x18   :  { %142 = vmatpush.msra.mxu2 %v1571_v18 }
  0x19   :  { %1254 = vmatmul.msk.bf16.vlgmr.msra.gmra.mxu1 %vm77_vm0, %v64_v10  ;;  %162 = vmatpush.msra.mxu3 %v1574_v19 }
  0x1a   :  { %297 = vmatpush.msrb.mxu1 %v1543_v1  ;;  %143 = vmatpush.msra.mxu2 %v1578_v20 }
  0x1b   :  { %279 = vmatpush.msrb.mxu0 %v1551_v7  ;;  %163 = vmatpush.msra.mxu3 %v1583_v21 }
  0x1c   :  { %298 = vmatpush.msrb.mxu1 %v1549_v5  ;;  %144 = vmatpush.msra.mxu2 %v1586_v22 }
  0x1d   :  { %280 = vmatpush.msrb.mxu0 %v1557_v12  ;;  %164 = vmatpush.msra.mxu3 %v1590_v23 }
  0x1e   :  { %299 = vmatpush.msrb.mxu1 %v1553_v8  ;;  %145 = vmatmul.f32.vlgmr.msra.gmra.mxu2 %v1503_v24 }
  0x1f   :  { %165 = vmatmul.f32.vlgmr.msra.gmra.mxu3 %v1503_v24  ;;  %281 = vmatpush.msrb.mxu0 %v1563_v16 }
  0x20   :  { %300 = vmatpush.msrb.mxu1 %v1561_v14  ;;  %418 = vmatpush.msrb.mxu2 %v1541_v0 }
  0x21   :  { %438 = vmatpush.msrb.mxu3 %v1543_v1  ;;  %282 = vmatpush.msrb.mxu0 %v1571_v18 }
  0x22   :  { %301 = vmatpush.msrb.mxu1 %v1568_v17  ;;  %419 = vmatpush.msrb.mxu2 %v1547_v4 }
  0x23   :  { %439 = vmatpush.msrb.mxu3 %v1549_v5  ;;  %283 = vmatpush.msrb.mxu0 %v1578_v20 }
  0x24   :  { %302 = vmatpush.msrb.mxu1 %v1574_v19  ;;  %420 = vmatpush.msrb.mxu2 %v1551_v7 }
  0x25   :  { %440 = vmatpush.msrb.mxu3 %v1553_v8  ;;  %284 = vmatpush.msrb.mxu0 %v1586_v22 }
  0x26   :  { %303 = vmatpush.msrb.mxu1 %v1583_v21  ;;  %421 = vmatpush.msrb.mxu2 %v1557_v12 }
  0x27   :  { %441 = vmatpush.msrb.mxu3 %v1561_v14  ;;  %559 = vmatpush.msra.mxu0 %v1541_v0 }
  0x28   :  { %304 = vmatpush.msrb.mxu1 %v1590_v23  ;;  %422 = vmatpush.msrb.mxu2 %v1563_v16 }
  0x29   :  { %442 = vmatpush.msrb.mxu3 %v1568_v17  ;;  %560 = vmatpush.msra.mxu0 %v1547_v4 }
  0x2a   :  { %579 = vmatpush.msra.mxu1 %v1543_v1  ;;  %423 = vmatpush.msrb.mxu2 %v1571_v18 }
  0x2b   :  { %443 = vmatpush.msrb.mxu3 %v1574_v19  ;;  %561 = vmatpush.msra.mxu0 %v1551_v7 }
  0x2c   :  { %580 = vmatpush.msra.mxu1 %v1549_v5  ;;  %424 = vmatpush.msrb.mxu2 %v1578_v20 }
  0x2d   :  { %444 = vmatpush.msrb.mxu3 %v1583_v21  ;;  %562 = vmatpush.msra.mxu0 %v1557_v12 }
  0x2e   :  { %581 = vmatpush.msra.mxu1 %v1553_v8  ;;  %425 = vmatpush.msrb.mxu2 %v1586_v22 }
  0x2f   :  { %445 = vmatpush.msrb.mxu3 %v1590_v23  ;;  %563 = vmatpush.msra.mxu0 %v1563_v16 }
  0x30   :  { %582 = vmatpush.msra.mxu1 %v1561_v14  ;;  %700 = vmatpush.msra.mxu2 %v1541_v0 }
  0x31   :  { %720 = vmatpush.msra.mxu3 %v1543_v1  ;;  %564 = vmatpush.msra.mxu0 %v1571_v18 }
  0x32   :  { %583 = vmatpush.msra.mxu1 %v1568_v17  ;;  %701 = vmatpush.msra.mxu2 %v1547_v4 }
  0x33   :  { %721 = vmatpush.msra.mxu3 %v1549_v5  ;;  %565 = vmatpush.msra.mxu0 %v1578_v20 }
  0x34   :  { %584 = vmatpush.msra.mxu1 %v1574_v19  ;;  %702 = vmatpush.msra.mxu2 %v1551_v7 }
  0x35   :  { %722 = vmatpush.msra.mxu3 %v1553_v8  ;;  %566 = vmatpush.msra.mxu0 %v1586_v22 }
  0x36   :  { %585 = vmatpush.msra.mxu1 %v1583_v21  ;;  %703 = vmatpush.msra.mxu2 %v1557_v12 }
  0x37   :  { %723 = vmatpush.msra.mxu3 %v1561_v14 }
  0x38   :  { %586 = vmatpush.msra.mxu1 %v1590_v23  ;;  %704 = vmatpush.msra.mxu2 %v1563_v16 }
  0x39   :  { %724 = vmatpush.msra.mxu3 %v1568_v17 }
  0x3a   :  { %705 = vmatpush.msra.mxu2 %v1571_v18 }
  0x3b   :  { %725 = vmatpush.msra.mxu3 %v1574_v19 }
  0x3c   :  { %706 = vmatpush.msra.mxu2 %v1578_v20 }
  0x3d   :  { %726 = vmatpush.msra.mxu3 %v1583_v21 }
  0x3e   :  { %707 = vmatpush.msra.mxu2 %v1586_v22 }
  0x3f   :  { %727 = vmatpush.msra.mxu3 %v1590_v23 }
  0x91   :  { %v90_v27 = vpop.f32.mrf.mxu0 }
  0x92   :  { %v91_v28 = vadd.f32 %v90_v27, %v73_v26 }
  0x94   :  { %107 = vst [vmem:[#allocation2] sm:$0xff] %v91_v28 }
  0x96   :  { %v103_v30 = vpop.f32.mrf.mxu1 }
  0x97   :  { %v104_v31 = vadd.f32 %v103_v30, %v74_v29 }
  0x99   :  { %108 = vst [vmem:[#allocation2 + $0x8] sm:$0xff] %v104_v31  ;;  %v92_v32 = vpop.f32.mrf.mxu0 }
  0x9b   :  { %v169_v34 = vld [vmem:[#allocation2] ss:$0 sm:$0xff] }
  0x9e   :  { %v105_v33 = vpop.f32.mrf.mxu1 }
  0xa0   :  { %v171_v38 = vld [vmem:[#allocation2 + $0xf] ss:$0 sm:$0xff] }
  0xa1   :  { %v146_v35 = vpop.f32.mrf.mxu2 }
  0xa2   :  { %v170_v36 = vadd.f32 %v169_v34, %v146_v35  ;;  %v166_v37 = vpop.f32.mrf.mxu3 }
  0xa3   :  { %v172_v39 = vadd.f32 %v171_v38, %v166_v37 }
  0xa4   :  { %1294 = vtanh.f32 %v170_v36  ;;  %v1255_v42 = vmul.f32 -1.442695, %v170_v36 }
  0xa5   :  { %1296 = vtanh.f32 %v172_v39  ;;  %v1256_v43 = vmul.f32 -1.442695, %v172_v39 }
  0xa6   :  { %1298 = vpow2.f32 %v1255_v42  ;;  %v309_v42 = vld [vmem:[#allocation2 + $0x1] ss:$0 sm:$0xff] }
  0xa7   :  { %1300 = vpow2.f32 %v1256_v43 }
  0xaa   :  { %v1295_v40 = vpop.eup %1294 }
  0xab   :  { %195 = vrot.lane.b32.xlu0 %v1295_v40, %s1504_s3  ;;  %v1297_v41 = vpop.eup %1296 }
  0xac   :  { %v1299_v44 = vpop.eup %1298 }
  0xad   :  { %v176_v45 = vadd.f32 1.0, %v1299_v44  ;;  %v1301_v46 = vpop.eup %1300  ;;  %v311_v44 = vld [vmem:[#allocation2 + $0xe] ss:$0 sm:$0xff] }
  0xae   :  { %v213_v47 = vadd.f32 1.0, %v1301_v46 }
  0xaf   :  { %1302 = vrcp.f32 %v176_v45  ;;  %v188_v56 = vand.u32 2147483648, %v176_v45  ;;  %vm182_vm2 = vweird.f32 %v176_v45  ;;  %v186_v57 = vand.u32 2147483647, %v176_v45 }
  0xb0   :  { %1304 = vrcp.f32 %v213_v47  ;;  %vm219_vm5 = vweird.f32 %v213_v47  ;;  %v225_v3 = vand.u32 2147483648, %v213_v47  ;;  %v223_v6 = vand.u32 2147483647, %v213_v47 }
  0xb1   :  { %v189_v60 = vor.u32 1.1754944e-38, %v188_v56  ;;  %vm187_vm4 = vcmp.eq.f32.partialorder %v186_v57, 8.507059e+37 }
  0xb2   :  { %v226_v10 = vor.u32 1.1754944e-38, %v225_v3  ;;  %vm224_vm8 = vcmp.eq.f32.partialorder %v223_v6, 8.507059e+37 }
  0xb3   :  { %232 = vrot.lane.b32.xlu0 %v1297_v41, %s1504_s3 }
  0xb5   :  { %v1303_v48 = vpop.eup %1302 }
  0xb6   :  { %v178_v49 = vmul.f32 %v1303_v48, %v176_v45  ;;  %v1305_v51 = vpop.eup %1304  ;;  %vm183_vm1 = vweird.f32 %v1303_v48 }
  0xb7   :  { %v215_v53 = vmul.f32 %v1305_v51, %v213_v47  ;;  %vm184_vm3 = vmor %vm182_vm2, %vm183_vm1  ;;  %vm220_vm6 = vweird.f32 %v1305_v51 }
  0xb8   :  { %v179_v50 = vsub.f32 1.0, %v178_v49  ;;  %vm221_vm7 = vmor %vm219_vm5, %vm220_vm6 }
  0xb9   :  { %v216_v55 = vsub.f32 1.0, %v215_v53 }
  0xba   :  { %v180_v52 = vmul.f32 %v1303_v48, %v179_v50 }
  0xbb   :  { %v217_v59 = vmul.f32 %v1305_v51, %v216_v55 }
  0xbc   :  { %v181_v54 = vadd.f32 %v1303_v48, %v180_v52 }
  0xbd   :  { %v218_v2 = vadd.f32 %v1305_v51, %v217_v59 }
  0xbe   :  { %v185_v58 = vsel %vm184_vm3, %v1303_v48, %v181_v54 }
  0xbf   :  { %v190_v62 = vsel %vm187_vm4, %v189_v60, %v185_v58  ;;  %v222_v9 = vsel %vm221_vm7, %v1305_v51, %v218_v2 }
  0xc0   :  { %v227_v11 = vsel %vm224_vm8, %v226_v10, %v222_v9  ;;  %v193_v24 = vmul.f32 0.0, %v190_v62 }
  0xc1   :  { %v230_v27 = vmul.f32 0.0, %v227_v11 }
 0x11d   :  { %v196_v61 = vpop.permute.xlu0 %195 }
 0x11e   :  { %v198_v63 = vmul.f32 %v196_v61, %v190_v62 }
 0x120   :  { %200 = vrot.lane.b32.xlu1 %v198_v63, %s1505_s5 }
 0x125   :  { %v233_v13 = vpop.permute.xlu0 %232 }
 0x126   :  { %v235_v15 = vmul.f32 %v233_v13, %v227_v11 }
 0x128   :  { %237 = vrot.lane.b32.xlu1 %v235_v15, %s1505_s5 }
 0x192   :  { %v201_v25 = vpop.permute.xlu1 %200 }
 0x193   :  { %v203_v26 = vadd.f32 %v201_v25, %v193_v24 }
 0x195   :  { %1306 = vtanh.f32 %v203_v26 }
 0x19a   :  { %v238_v28 = vpop.permute.xlu1 %237 }
 0x19b   :  { %v1307_v29 = vpop.eup %1306  ;;  %v240_v30 = vadd.f32 %v238_v28, %v230_v27 }
 0x19c   :  { %206 = vrot.lane.b32.xlu2 %v1307_v29, %s1504_s3 }
 0x19d   :  { %1308 = vtanh.f32 %v240_v30 }
 0x1a3   :  { %v1309_v31 = vpop.eup %1308 }
 0x1a4   :  { %243 = vrot.lane.b32.xlu2 %v1309_v31, %s1504_s3 }
 0x1ac   :  { %262 = vrot.lane.b32.xlu2 %v203_v26, %s1506_s6 }
 0x1f6   :  { %v207_v32 = vpop.permute.xlu2 %206 }
 0x1f7   :  { %v209_v33 = vmul.f32 %v207_v32, %v190_v62 }
 0x1f9   :  { %248 = vrot.lane.b32.xlu0 %v209_v33, %s1505_s5 }
 0x1fe   :  { %v244_v34 = vpop.permute.xlu2 %243 }
 0x1ff   :  { %v246_v35 = vmul.f32 %v244_v34, %v227_v11 }
 0x201   :  { %254 = vrot.lane.b32.xlu1 %v246_v35, %s1504_s3 }
 0x206   :  { %v263_v36 = vpop.permute.xlu2 %262 }
 0x207   :  { %v1668_v37 = vsel %vm259_vm9, %v263_v36, %v240_v30 }
 0x208   :  { %334 = vrot.lane.b32.xlu2 %v1668_v37, %s1505_s5 }
 0x262   :  { %v335_v31 = vpop.permute.xlu2 %334 }
 0x26b   :  { %v249_v38 = vpop.permute.xlu0 %248 }
 0x26c   :  { %252 = vst.msk [vmem:[%s1908_s4] sm:$0x1] %vm251_vm10, %v249_v38 }
 0x273   :  { %v255_v39 = vpop.permute.xlu1 %254 }
 0x274   :  { %258 = vst.msk [vmem:[%s1908_s4 + $0x7] sm:$0x1] %vm257_vm11, %v255_v39  ;;  %v260_v40 = vsel %vm259_vm9, %v249_v38, %v255_v39 }
 0x275   :  { %1257 = vmatmul.msk.f32.vlgmr.msrb.gmra.mxu0 %vm125_vm12, %v260_v40  ;;  %1258 = vmatmul.msk.f32.vlgmr.msrb.gmra.mxu1 %vm125_vm12, %v260_v40 }
 0x276   :  { %841 = vmatpush.msrb.mxu0 %v1541_v0  ;;  %861 = vmatpush.msrb.mxu1 %v1543_v1 }
 0x278   :  { %842 = vmatpush.msrb.mxu0 %v1547_v4  ;;  %862 = vmatpush.msrb.mxu1 %v1549_v5 }
 0x27a   :  { %843 = vmatpush.msrb.mxu0 %v1551_v7  ;;  %863 = vmatpush.msrb.mxu1 %v1553_v8 }
 0x27c   :  { %844 = vmatpush.msrb.mxu0 %v1557_v12  ;;  %864 = vmatpush.msrb.mxu1 %v1561_v14 }
 0x27e   :  { %845 = vmatpush.msrb.mxu0 %v1563_v16  ;;  %865 = vmatpush.msrb.mxu1 %v1568_v17 }
 0x280   :  { %846 = vmatpush.msrb.mxu0 %v1571_v18  ;;  %866 = vmatpush.msrb.mxu1 %v1574_v19 }
 0x282   :  { %847 = vmatpush.msrb.mxu0 %v1578_v20  ;;  %867 = vmatpush.msrb.mxu1 %v1583_v21 }
 0x284   :  { %848 = vmatpush.msrb.mxu0 %v1586_v22  ;;  %868 = vmatpush.msrb.mxu1 %v1590_v23 }
 0x2f2   :  { %v286_v41 = vpop.f32.mrf.mxu0  ;;  %v306_v43 = vpop.f32.mrf.mxu1 }
 0x2f3   :  { %v310_v45 = vadd.f32 %v309_v42, %v286_v41  ;;  %v312_v46 = vadd.f32 %v311_v44, %v306_v43 }
 0x2f5   :  { %1310 = vtanh.f32 %v310_v45  ;;  %v1259_v49 = vmul.f32 -1.442695, %v310_v45  ;;  %v1260_v50 = vmul.f32 -1.442695, %v312_v46 }
 0x2f6   :  { %1312 = vtanh.f32 %v312_v46 }
 0x2f7   :  { %1314 = vpow2.f32 %v1259_v49 }
 0x2f8   :  { %1316 = vpow2.f32 %v1260_v50  ;;  %v450_v50 = vld [vmem:[#allocation2 + $0x2] ss:$0 sm:$0xff] }
 0x2fb   :  { %v1311_v47 = vpop.eup %1310 }
 0x2fc   :  { %v1313_v48 = vpop.eup %1312  ;;  %339 = vrot.lane.b32.xlu0 %v1311_v47, %s1504_s3 }
 0x2fd   :  { %376 = vrot.lane.b32.xlu1 %v1313_v48, %s1504_s3  ;;  %v1315_v51 = vpop.eup %1314 }
 0x2fe   :  { %v1317_v52 = vpop.eup %1316  ;;  %v316_v53 = vadd.f32 1.0, %v1315_v51 }
 0x2ff   :  { %v357_v54 = vadd.f32 1.0, %v1317_v52  ;;  %v452_v52 = vld [vmem:[#allocation2 + $0xd] ss:$0 sm:$0xff] }
 0x300   :  { %1318 = vrcp.f32 %v316_v53  ;;  %v328_v3 = vand.u32 2147483648, %v316_v53  ;;  %vm322_vm15 = vweird.f32 %v316_v53  ;;  %v326_v9 = vand.u32 2147483647, %v316_v53 }
 0x301   :  { %1320 = vrcp.f32 %v357_v54  ;;  %v369_v6 = vand.u32 2147483648, %v357_v54  ;;  %vm363_vm0 = vweird.f32 %v357_v54  ;;  %v367_v10 = vand.u32 2147483647, %v357_v54 }
 0x302   :  { %v329_v15 = vor.u32 1.1754944e-38, %v328_v3  ;;  %vm327_vm3 = vcmp.eq.f32.partialorder %v326_v9, 8.507059e+37 }
 0x303   :  { %v370_v24 = vor.u32 1.1754944e-38, %v369_v6  ;;  %vm368_vm4 = vcmp.eq.f32.partialorder %v367_v10, 8.507059e+37 }
 0x306   :  { %v1319_v55 = vpop.eup %1318 }
 0x307   :  { %v1321_v56 = vpop.eup %1320  ;;  %v318_v57 = vmul.f32 %v1319_v55, %v316_v53  ;;  %vm323_vm13 = vweird.f32 %v1319_v55 }
 0x308   :  { %v359_v58 = vmul.f32 %v1321_v56, %v357_v54  ;;  %vm364_vm14 = vweird.f32 %v1321_v56  ;;  %vm324_vm1 = vmor %vm322_vm15, %vm323_vm13 }
 0x309   :  { %v319_v59 = vsub.f32 1.0, %v318_v57  ;;  %vm365_vm2 = vmor %vm363_vm0, %vm364_vm14 }
 0x30a   :  { %v360_v60 = vsub.f32 1.0, %v359_v58 }
 0x30b   :  { %v320_v61 = vmul.f32 %v1319_v55, %v319_v59 }
 0x30c   :  { %v361_v62 = vmul.f32 %v1321_v56, %v360_v60 }
 0x30d   :  { %v321_v63 = vadd.f32 %v1319_v55, %v320_v61 }
 0x30e   :  { %v362_v2 = vadd.f32 %v1321_v56, %v361_v62 }
 0x30f   :  { %v325_v11 = vsel %vm324_vm1, %v1319_v55, %v321_v63 }
 0x310   :  { %v366_v13 = vsel %vm365_vm2, %v1321_v56, %v362_v2  ;;  %v330_v26 = vsel %vm327_vm3, %v329_v15, %v325_v11 }
 0x311   :  { %v371_v28 = vsel %vm368_vm4, %v370_v24, %v366_v13  ;;  %v337_v32 = vmul.f32 %v335_v31, %v330_v26 }
 0x312   :  { %v374_v33 = vmul.f32 %v371_v28, %v1668_v37 }
 0x36e   :  { %v340_v25 = vpop.permute.xlu0 %339 }
 0x36f   :  { %v377_v27 = vpop.permute.xlu1 %376  ;;  %v342_v29 = vmul.f32 %v340_v25, %v330_v26 }
 0x370   :  { %v379_v30 = vmul.f32 %v377_v27, %v371_v28 }
 0x371   :  { %344 = vrot.lane.b32.xlu0 %v342_v29, %s1505_s5 }
 0x372   :  { %381 = vrot.lane.b32.xlu1 %v379_v30, %s1505_s5 }
 0x3e3   :  { %v345_v34 = vpop.permute.xlu0 %344 }
 0x3e4   :  { %v382_v35 = vpop.permute.xlu1 %381  ;;  %v347_v36 = vadd.f32 %v345_v34, %v337_v32 }
 0x3e5   :  { %v384_v38 = vadd.f32 %v382_v35, %v374_v33 }
 0x3e6   :  { %1322 = vtanh.f32 %v347_v36 }
 0x3e7   :  { %1324 = vtanh.f32 %v384_v38 }
 0x3ec   :  { %v1323_v39 = vpop.eup %1322 }
 0x3ed   :  { %v1325_v40 = vpop.eup %1324  ;;  %350 = vrot.lane.b32.xlu2 %v1323_v39, %s1504_s3 }
 0x3ee   :  { %387 = vrot.lane.b32.xlu0 %v1325_v40, %s1504_s3 }
 0x3f6   :  { %403 = vrot.lane.b32.xlu0 %v347_v36, %s1506_s6 }
 0x447   :  { %v351_v41 = vpop.permute.xlu2 %350 }
 0x448   :  { %v353_v42 = vmul.f32 %v351_v41, %v330_v26 }
 0x44a   :  { %392 = vrot.lane.b32.xlu1 %v353_v42, %s1505_s5 }
 0x460   :  { %v388_v43 = vpop.permute.xlu0 %387 }
 0x461   :  { %v390_v37 = vmul.f32 %v388_v43, %v371_v28 }
 0x463   :  { %397 = vrot.lane.b32.xlu2 %v390_v37, %s1504_s3 }
 0x468   :  { %v404_v44 = vpop.permute.xlu0 %403 }
 0x469   :  { %v1710_v45 = vsel %vm259_vm9, %v404_v44, %v384_v38 }
 0x46a   :  { %475 = vrot.lane.b32.xlu0 %v1710_v45, %s1505_s5 }
 0x4bc   :  { %v393_v46 = vpop.permute.xlu1 %392 }
 0x4bd   :  { %395 = vst.msk [vmem:[%s1908_s4 + $0x1] sm:$0x1] %vm251_vm10, %v393_v46  ;;  %v398_v47 = vpop.permute.xlu2 %397 }
 0x4be   :  { %400 = vst.msk [vmem:[%s1908_s4 + $0x6] sm:$0x1] %vm257_vm11, %v398_v47  ;;  %v401_v48 = vsel %vm259_vm9, %v393_v46, %v398_v47 }
 0x4bf   :  { %1261 = vmatmul.msk.f32.vlgmr.msrb.gmra.mxu2 %vm125_vm12, %v401_v48  ;;  %1262 = vmatmul.msk.f32.vlgmr.msrb.gmra.mxu3 %vm125_vm12, %v401_v48 }
 0x4c0   :  { %982 = vmatpush.msrb.mxu2 %v1541_v0  ;;  %1002 = vmatpush.msrb.mxu3 %v1543_v1 }
 0x4c2   :  { %983 = vmatpush.msrb.mxu2 %v1547_v4  ;;  %1003 = vmatpush.msrb.mxu3 %v1549_v5 }
 0x4c4   :  { %984 = vmatpush.msrb.mxu2 %v1551_v7  ;;  %1004 = vmatpush.msrb.mxu3 %v1553_v8 }
 0x4c6   :  { %985 = vmatpush.msrb.mxu2 %v1557_v12  ;;  %1005 = vmatpush.msrb.mxu3 %v1561_v14 }
 0x4c8   :  { %986 = vmatpush.msrb.mxu2 %v1563_v16  ;;  %1006 = vmatpush.msrb.mxu3 %v1568_v17 }
 0x4ca   :  { %987 = vmatpush.msrb.mxu2 %v1571_v18  ;;  %1007 = vmatpush.msrb.mxu3 %v1574_v19 }
 0x4cc   :  { %988 = vmatpush.msrb.mxu2 %v1578_v20  ;;  %1008 = vmatpush.msrb.mxu3 %v1583_v21 }
 0x4ce   :  { %989 = vmatpush.msrb.mxu2 %v1586_v22  ;;  %1009 = vmatpush.msrb.mxu3 %v1590_v23 }
 0x4dc   :  { %v476_v37 = vpop.permute.xlu0 %475 }
 0x542   :  { %v427_v49 = vpop.f32.mrf.mxu2  ;;  %v447_v51 = vpop.f32.mrf.mxu3 }
 0x543   :  { %v451_v53 = vadd.f32 %v450_v50, %v427_v49  ;;  %v453_v54 = vadd.f32 %v452_v52, %v447_v51 }
 0x545   :  { %1326 = vtanh.f32 %v451_v53  ;;  %v1264_v57 = vmul.f32 -1.442695, %v453_v54  ;;  %v1263_v61 = vmul.f32 -1.442695, %v451_v53 }
 0x546   :  { %1328 = vtanh.f32 %v453_v54 }
 0x547   :  { %1330 = vpow2.f32 %v1264_v57 }
 0x54b   :  { %v1327_v55 = vpop.eup %1326 }
 0x54c   :  { %v1329_v56 = vpop.eup %1328  ;;  %480 = vrot.lane.b32.xlu1 %v1327_v55, %s1504_s3 }
 0x54d   :  { %517 = vrot.lane.b32.xlu2 %v1329_v56, %s1504_s3  ;;  %v1331_v58 = vpop.eup %1330 }
 0x54e   :  { %v498_v59 = vadd.f32 1.0, %v1331_v58 }
 0x550   :  { %1332 = vrcp.f32 %v498_v59  ;;  %v510_v10 = vand.u32 2147483648, %v498_v59  ;;  %vm504_vm6 = vweird.f32 %v498_v59  ;;  %v508_v11 = vand.u32 2147483647, %v498_v59 }
 0x551   :  { %1334 = vpow2.f32 %v1263_v61 }
 0x552   :  { %v511_v15 = vor.u32 1.1754944e-38, %v510_v10  ;;  %vm509_vm8 = vcmp.eq.f32.partialorder %v508_v11, 8.507059e+37 }
 0x556   :  { %v1333_v60 = vpop.eup %1332 }
 0x557   :  { %v500_v62 = vmul.f32 %v1333_v60, %v498_v59  ;;  %v1335_v2 = vpop.eup %1334  ;;  %vm505_vm5 = vweird.f32 %v1333_v60 }
 0x558   :  { %v457_v6 = vadd.f32 1.0, %v1335_v2  ;;  %vm506_vm7 = vmor %vm504_vm6, %vm505_vm5 }
 0x559   :  { %v501_v63 = vsub.f32 1.0, %v500_v62 }
 0x55a   :  { %1336 = vrcp.f32 %v457_v6  ;;  %v469_v32 = vand.u32 2147483648, %v457_v6  ;;  %vm463_vm14 = vweird.f32 %v457_v6  ;;  %v467_v33 = vand.u32 2147483647, %v457_v6 }
 0x55b   :  { %v502_v3 = vmul.f32 %v1333_v60, %v501_v63 }
 0x55c   :  { %v470_v35 = vor.u32 1.1754944e-38, %v469_v32  ;;  %vm468_vm0 = vcmp.eq.f32.partialorder %v467_v33, 8.507059e+37 }
 0x55d   :  { %v503_v9 = vadd.f32 %v1333_v60, %v502_v3 }
 0x55f   :  { %v507_v13 = vsel %vm506_vm7, %v1333_v60, %v503_v9 }
 0x560   :  { %v512_v25 = vsel %vm509_vm8, %v511_v15, %v507_v13  ;;  %v1337_v26 = vpop.eup %1336 }
 0x561   :  { %v459_v28 = vmul.f32 %v1337_v26, %v457_v6  ;;  %vm464_vm13 = vweird.f32 %v1337_v26  ;;  %v515_v40 = vmul.f32 %v512_v25, %v1710_v45 }
 0x562   :  { %vm465_vm15 = vmor %vm463_vm14, %vm464_vm13 }
 0x563   :  { %v460_v29 = vsub.f32 1.0, %v459_v28 }
 0x565   :  { %v461_v30 = vmul.f32 %v1337_v26, %v460_v29 }
 0x567   :  { %v462_v31 = vadd.f32 %v1337_v26, %v461_v30 }
 0x569   :  { %v466_v34 = vsel %vm465_vm15, %v1337_v26, %v462_v31 }
 0x56a   :  { %v471_v38 = vsel %vm468_vm0, %v470_v35, %v466_v34 }
 0x56b   :  { %v478_v44 = vmul.f32 %v476_v37, %v471_v38 }
 0x5a7   :  { %v518_v24 = vpop.permute.xlu2 %517 }
 0x5a8   :  { %v520_v27 = vmul.f32 %v518_v24, %v512_v25 }
 0x5aa   :  { %522 = vrot.lane.b32.xlu2 %v520_v27, %s1505_s5 }
 0x5be   :  { %v481_v36 = vpop.permute.xlu1 %480 }
 0x5bf   :  { %v483_v39 = vmul.f32 %v481_v36, %v471_v38 }
 0x5c1   :  { %485 = vrot.lane.b32.xlu1 %v483_v39, %s1505_s5 }
 0x604   :  { %v523_v41 = vpop.permute.xlu2 %522 }
 0x605   :  { %v525_v42 = vadd.f32 %v523_v41, %v515_v40 }
 0x607   :  { %1338 = vtanh.f32 %v525_v42 }
 0x60d   :  { %v1339_v43 = vpop.eup %1338 }
 0x60e   :  { %528 = vrot.lane.b32.xlu1 %v1339_v43, %s1504_s3 }
 0x633   :  { %v486_v46 = vpop.permute.xlu1 %485 }
 0x634   :  { %v488_v47 = vadd.f32 %v486_v46, %v478_v44 }
 0x636   :  { %1340 = vtanh.f32 %v488_v47  ;;  %544 = vrot.lane.b32.xlu1 %v488_v47, %s1506_s6 }
 0x63c   :  { %v1341_v48 = vpop.eup %1340 }
 0x63d   :  { %491 = vrot.lane.b32.xlu0 %v1341_v48, %s1504_s3 }
 0x680   :  { %v529_v49 = vpop.permute.xlu1 %528 }
 0x681   :  { %v531_v50 = vmul.f32 %v529_v49, %v512_v25 }
 0x683   :  { %538 = vrot.lane.b32.xlu0 %v531_v50, %s1504_s3 }
 0x6a8   :  { %v545_v45 = vpop.permute.xlu1 %544 }
 0x6a9   :  { %v1751_v51 = vsel %vm259_vm9, %v545_v45, %v525_v42  ;;  %v732_v45 = vld [vmem:[#allocation2 + $0x4] ss:$0 sm:$0xff] }
 0x6aa   :  { %616 = vrot.lane.b32.xlu1 %v1751_v51, %s1505_s5 }
 0x6af   :  { %v492_v52 = vpop.permute.xlu0 %491 }
 0x6b0   :  { %v494_v53 = vmul.f32 %v492_v52, %v471_v38  ;;  %v734_v52 = vld [vmem:[#allocation2 + $0xb] ss:$0 sm:$0xff] }
 0x6b2   :  { %533 = vrot.lane.b32.xlu2 %v494_v53, %s1505_s5 }
 0x6f5   :  { %v539_v54 = vpop.permute.xlu0 %538 }
 0x6f6   :  { %541 = vst.msk [vmem:[%s1908_s4 + $0x5] sm:$0x1] %vm257_vm11, %v539_v54 }
 0x70c   :  { %v534_v55 = vpop.permute.xlu2 %533 }
 0x70d   :  { %536 = vst.msk [vmem:[%s1908_s4 + $0x2] sm:$0x1] %vm251_vm10, %v534_v55  ;;  %v542_v56 = vsel %vm259_vm9, %v534_v55, %v539_v54 }
 0x70e   :  { %1265 = vmatmul.msk.f32.vlgmr.msra.gmra.mxu0 %vm125_vm12, %v542_v56  ;;  %1266 = vmatmul.msk.f32.vlgmr.msra.gmra.mxu1 %vm125_vm12, %v542_v56 }
 0x70f   :  { %1123 = vmatpush.msra.mxu0 %v1541_v0  ;;  %1143 = vmatpush.msra.mxu1 %v1543_v1  ;;  %v591_v1 = vld [vmem:[#allocation2 + $0x3] ss:$0 sm:$0xff] }
 0x711   :  { %1124 = vmatpush.msra.mxu0 %v1547_v4  ;;  %1144 = vmatpush.msra.mxu1 %v1549_v5  ;;  %v593_v5 = vld [vmem:[#allocation2 + $0xc] ss:$0 sm:$0xff] }
 0x713   :  { %1125 = vmatpush.msra.mxu0 %v1551_v7  ;;  %1145 = vmatpush.msra.mxu1 %v1553_v8 }
 0x715   :  { %1126 = vmatpush.msra.mxu0 %v1557_v12  ;;  %1146 = vmatpush.msra.mxu1 %v1561_v14 }
 0x717   :  { %1127 = vmatpush.msra.mxu0 %v1563_v16  ;;  %1147 = vmatpush.msra.mxu1 %v1568_v17 }
 0x719   :  { %1128 = vmatpush.msra.mxu0 %v1571_v18  ;;  %1148 = vmatpush.msra.mxu1 %v1574_v19 }
 0x71b   :  { %1129 = vmatpush.msra.mxu0 %v1578_v20  ;;  %1149 = vmatpush.msra.mxu1 %v1583_v21 }
 0x71c   :  { %v617_v31 = vpop.permute.xlu1 %616 }
 0x71d   :  { %1130 = vmatpush.msra.mxu0 %v1586_v22  ;;  %1150 = vmatpush.msra.mxu1 %v1590_v23 }
 0x78b   :  { %v568_v0 = vpop.f32.mrf.mxu0  ;;  %v588_v4 = vpop.f32.mrf.mxu1 }
 0x78c   :  { %v592_v7 = vadd.f32 %v591_v1, %v568_v0  ;;  %v594_v8 = vadd.f32 %v593_v5, %v588_v4 }
 0x78e   :  { %1342 = vtanh.f32 %v592_v7  ;;  %v1267_v16 = vmul.f32 -1.442695, %v592_v7  ;;  %v1268_v20 = vmul.f32 -1.442695, %v594_v8 }
 0x78f   :  { %1344 = vtanh.f32 %v594_v8 }
 0x790   :  { %1346 = vpow2.f32 %v1267_v16 }
 0x794   :  { %v1343_v12 = vpop.eup %1342 }
 0x795   :  { %v1345_v14 = vpop.eup %1344  ;;  %621 = vrot.lane.b32.xlu2 %v1343_v12, %s1504_s3 }
 0x796   :  { %658 = vrot.lane.b32.xlu0 %v1345_v14, %s1504_s3  ;;  %v1347_v17 = vpop.eup %1346 }
 0x797   :  { %v598_v18 = vadd.f32 1.0, %v1347_v17 }
 0x799   :  { %1348 = vrcp.f32 %v598_v18  ;;  %v610_v60 = vand.u32 2147483648, %v598_v18  ;;  %vm604_vm2 = vweird.f32 %v598_v18  ;;  %v608_v61 = vand.u32 2147483647, %v598_v18 }
 0x79a   :  { %1350 = vpow2.f32 %v1268_v20 }
 0x79b   :  { %v611_v63 = vor.u32 1.1754944e-38, %v610_v60  ;;  %vm609_vm4 = vcmp.eq.f32.partialorder %v608_v61, 8.507059e+37 }
 0x79f   :  { %v1349_v19 = vpop.eup %1348 }
 0x7a0   :  { %v600_v21 = vmul.f32 %v1349_v19, %v598_v18  ;;  %v1351_v57 = vpop.eup %1350  ;;  %vm605_vm1 = vweird.f32 %v1349_v19 }
 0x7a1   :  { %v639_v58 = vadd.f32 1.0, %v1351_v57  ;;  %vm606_vm3 = vmor %vm604_vm2, %vm605_vm1 }
 0x7a2   :  { %v601_v22 = vsub.f32 1.0, %v600_v21 }
 0x7a3   :  { %1352 = vrcp.f32 %v639_v58  ;;  %v651_v24 = vand.u32 2147483648, %v639_v58  ;;  %vm645_vm6 = vweird.f32 %v639_v58  ;;  %v649_v25 = vand.u32 2147483647, %v639_v58 }
 0x7a4   :  { %v602_v23 = vmul.f32 %v1349_v19, %v601_v22 }
 0x7a5   :  { %v652_v27 = vor.u32 1.1754944e-38, %v651_v24  ;;  %vm650_vm8 = vcmp.eq.f32.partialorder %v649_v25, 8.507059e+37 }
 0x7a6   :  { %v603_v59 = vadd.f32 %v1349_v19, %v602_v23 }
 0x7a8   :  { %v607_v62 = vsel %vm606_vm3, %v1349_v19, %v603_v59 }
 0x7a9   :  { %v612_v3 = vsel %vm609_vm4, %v611_v63, %v607_v62  ;;  %v1353_v9 = vpop.eup %1352 }
 0x7aa   :  { %v641_v10 = vmul.f32 %v1353_v9, %v639_v58  ;;  %vm646_vm5 = vweird.f32 %v1353_v9  ;;  %v619_v32 = vmul.f32 %v617_v31, %v612_v3 }
 0x7ab   :  { %vm647_vm7 = vmor %vm645_vm6, %vm646_vm5 }
 0x7ac   :  { %v642_v11 = vsub.f32 1.0, %v641_v10 }
 0x7ae   :  { %v643_v13 = vmul.f32 %v1353_v9, %v642_v11 }
 0x7b0   :  { %v644_v15 = vadd.f32 %v1353_v9, %v643_v13 }
 0x7b2   :  { %v648_v26 = vsel %vm647_vm7, %v1353_v9, %v644_v15 }
 0x7b3   :  { %v653_v29 = vsel %vm650_vm8, %v652_v27, %v648_v26 }
 0x7b4   :  { %v656_v36 = vmul.f32 %v653_v29, %v1751_v51 }
 0x7ef   :  { %v622_v2 = vpop.permute.xlu2 %621 }
 0x7f0   :  { %v624_v6 = vmul.f32 %v622_v2, %v612_v3 }
 0x7f2   :  { %626 = vrot.lane.b32.xlu2 %v624_v6, %s1505_s5 }
 0x808   :  { %v659_v28 = vpop.permute.xlu0 %658 }
 0x809   :  { %v661_v30 = vmul.f32 %v659_v28, %v653_v29 }
 0x80b   :  { %663 = vrot.lane.b32.xlu0 %v661_v30, %s1505_s5 }
 0x84c   :  { %v627_v33 = vpop.permute.xlu2 %626 }
 0x84d   :  { %v629_v34 = vadd.f32 %v627_v33, %v619_v32 }
 0x84f   :  { %1354 = vtanh.f32 %v629_v34 }
 0x855   :  { %v1355_v35 = vpop.eup %1354 }
 0x856   :  { %632 = vrot.lane.b32.xlu1 %v1355_v35, %s1504_s3 }
 0x87d   :  { %v664_v38 = vpop.permute.xlu0 %663 }
 0x87e   :  { %v666_v39 = vadd.f32 %v664_v38, %v656_v36 }
 0x880   :  { %1356 = vtanh.f32 %v666_v39 }
 0x886   :  { %v1357_v40 = vpop.eup %1356 }
 0x887   :  { %669 = vrot.lane.b32.xlu2 %v1357_v40, %s1504_s3 }
 0x88f   :  { %685 = vrot.lane.b32.xlu2 %v629_v34, %s1506_s6 }
 0x8c8   :  { %v633_v41 = vpop.permute.xlu1 %632 }
 0x8c9   :  { %v635_v42 = vmul.f32 %v633_v41, %v612_v3 }
 0x8cb   :  { %674 = vrot.lane.b32.xlu0 %v635_v42, %s1505_s5 }
 0x8e1   :  { %v670_v43 = vpop.permute.xlu2 %669 }
 0x8e2   :  { %v672_v37 = vmul.f32 %v670_v43, %v653_v29  ;;  %v873_v43 = vld [vmem:[#allocation2 + $0x5] ss:$0 sm:$0xff] }
 0x8e4   :  { %679 = vrot.lane.b32.xlu1 %v672_v37, %s1504_s3 }
 0x8e9   :  { %v686_v44 = vpop.permute.xlu2 %685 }
 0x8ea   :  { %v1794_v46 = vsel %vm259_vm9, %v686_v44, %v666_v39  ;;  %v875_v44 = vld [vmem:[#allocation2 + $0xa] ss:$0 sm:$0xff] }
 0x8eb   :  { %757 = vrot.lane.b32.xlu2 %v1794_v46, %s1505_s5 }
 0x93d   :  { %v675_v47 = vpop.permute.xlu0 %674 }
 0x93e   :  { %677 = vst.msk [vmem:[%s1908_s4 + $0x3] sm:$0x1] %vm251_vm10, %v675_v47 }
 0x945   :  { %v758_v15 = vpop.permute.xlu2 %757 }
 0x956   :  { %v680_v48 = vpop.permute.xlu1 %679 }
 0x957   :  { %682 = vst.msk [vmem:[%s1908_s4 + $0x4] sm:$0x1] %vm257_vm11, %v680_v48  ;;  %v683_v49 = vsel %vm259_vm9, %v675_v47, %v680_v48 }
 0x958   :  { %1269 = vmatmul.msk.f32.vlgmr.msra.gmra.mxu2 %vm125_vm12, %v683_v49  ;;  %1270 = vmatmul.msk.f32.vlgmr.msra.gmra.mxu3 %vm125_vm12, %v683_v49 }
 0x9db   :  { %v709_v50 = vpop.f32.mrf.mxu2  ;;  %v729_v51 = vpop.f32.mrf.mxu3 }
 0x9dc   :  { %v733_v53 = vadd.f32 %v732_v45, %v709_v50  ;;  %v735_v54 = vadd.f32 %v734_v52, %v729_v51 }
 0x9de   :  { %1358 = vtanh.f32 %v733_v53  ;;  %v1271_v0 = vmul.f32 -1.442695, %v733_v53  ;;  %v1272_v1 = vmul.f32 -1.442695, %v735_v54 }
 0x9df   :  { %1360 = vtanh.f32 %v735_v54 }
 0x9e0   :  { %1362 = vpow2.f32 %v1271_v0 }
 0x9e1   :  { %1364 = vpow2.f32 %v1272_v1 }
 0x9e4   :  { %v1359_v55 = vpop.eup %1358 }
 0x9e5   :  { %v1361_v56 = vpop.eup %1360  ;;  %762 = vrot.lane.b32.xlu0 %v1359_v55, %s1504_s3 }
 0x9e6   :  { %799 = vrot.lane.b32.xlu1 %v1361_v56, %s1504_s3  ;;  %v1363_v4 = vpop.eup %1362 }
 0x9e7   :  { %v1365_v5 = vpop.eup %1364  ;;  %v739_v7 = vadd.f32 1.0, %v1363_v4 }
 0x9e8   :  { %v780_v8 = vadd.f32 1.0, %v1365_v5 }
 0x9e9   :  { %1366 = vrcp.f32 %v739_v7  ;;  %v751_v57 = vand.u32 2147483648, %v739_v7  ;;  %vm745_vm15 = vweird.f32 %v739_v7  ;;  %v749_v59 = vand.u32 2147483647, %v739_v7 }
 0x9ea   :  { %1368 = vrcp.f32 %v780_v8  ;;  %v792_v58 = vand.u32 2147483648, %v780_v8  ;;  %vm786_vm0 = vweird.f32 %v780_v8  ;;  %v790_v60 = vand.u32 2147483647, %v780_v8 }
 0x9eb   :  { %v752_v63 = vor.u32 1.1754944e-38, %v751_v57  ;;  %vm750_vm3 = vcmp.eq.f32.partialorder %v749_v59, 8.507059e+37 }
 0x9ec   :  { %v793_v2 = vor.u32 1.1754944e-38, %v792_v58  ;;  %vm791_vm4 = vcmp.eq.f32.partialorder %v790_v60, 8.507059e+37 }
 0x9ef   :  { %v1367_v12 = vpop.eup %1366 }
 0x9f0   :  { %v1369_v14 = vpop.eup %1368  ;;  %v741_v16 = vmul.f32 %v1367_v12, %v739_v7  ;;  %vm746_vm13 = vweird.f32 %v1367_v12 }
 0x9f1   :  { %v782_v17 = vmul.f32 %v1369_v14, %v780_v8  ;;  %vm787_vm14 = vweird.f32 %v1369_v14  ;;  %vm747_vm1 = vmor %vm745_vm15, %vm746_vm13 }
 0x9f2   :  { %v742_v18 = vsub.f32 1.0, %v741_v16  ;;  %vm788_vm2 = vmor %vm786_vm0, %vm787_vm14 }
 0x9f3   :  { %v783_v19 = vsub.f32 1.0, %v782_v17 }
 0x9f4   :  { %v743_v20 = vmul.f32 %v1367_v12, %v742_v18 }
 0x9f5   :  { %v784_v21 = vmul.f32 %v1369_v14, %v783_v19 }
 0x9f6   :  { %v744_v22 = vadd.f32 %v1367_v12, %v743_v20 }
 0x9f7   :  { %v785_v23 = vadd.f32 %v1369_v14, %v784_v21 }
 0x9f8   :  { %v748_v61 = vsel %vm747_vm1, %v1367_v12, %v744_v22 }
 0x9f9   :  { %v789_v62 = vsel %vm788_vm2, %v1369_v14, %v785_v23  ;;  %v753_v6 = vsel %vm750_vm3, %v752_v63, %v748_v61 }
 0x9fa   :  { %v794_v10 = vsel %vm791_vm4, %v793_v2, %v789_v62  ;;  %v760_v24 = vmul.f32 %v758_v15, %v753_v6 }
 0x9fb   :  { %v797_v25 = vmul.f32 %v794_v10, %v1794_v46 }
 0xa57   :  { %v763_v3 = vpop.permute.xlu0 %762 }
 0xa58   :  { %v800_v9 = vpop.permute.xlu1 %799  ;;  %v765_v11 = vmul.f32 %v763_v3, %v753_v6 }
 0xa59   :  { %v802_v13 = vmul.f32 %v800_v9, %v794_v10 }
 0xa5a   :  { %767 = vrot.lane.b32.xlu0 %v765_v11, %s1505_s5 }
 0xa5b   :  { %804 = vrot.lane.b32.xlu1 %v802_v13, %s1505_s5 }
 0xacc   :  { %v768_v26 = vpop.permute.xlu0 %767 }
 0xacd   :  { %v805_v27 = vpop.permute.xlu1 %804  ;;  %v770_v28 = vadd.f32 %v768_v26, %v760_v24 }
 0xace   :  { %v807_v29 = vadd.f32 %v805_v27, %v797_v25 }
 0xacf   :  { %1370 = vtanh.f32 %v770_v28 }
 0xad0   :  { %1372 = vtanh.f32 %v807_v29 }
 0xad5   :  { %v1371_v30 = vpop.eup %1370 }
 0xad6   :  { %v1373_v31 = vpop.eup %1372  ;;  %773 = vrot.lane.b32.xlu2 %v1371_v30, %s1504_s3 }
 0xad7   :  { %810 = vrot.lane.b32.xlu0 %v1373_v31, %s1504_s3 }
 0xadf   :  { %826 = vrot.lane.b32.xlu0 %v770_v28, %s1506_s6 }
 0xb30   :  { %v774_v32 = vpop.permute.xlu2 %773 }
 0xb31   :  { %v776_v33 = vmul.f32 %v774_v32, %v753_v6 }
 0xb33   :  { %815 = vrot.lane.b32.xlu1 %v776_v33, %s1505_s5 }
 0xb49   :  { %v811_v34 = vpop.permute.xlu0 %810 }
 0xb4a   :  { %v813_v35 = vmul.f32 %v811_v34, %v794_v10  ;;  %v1014_v34 = vld [vmem:[#allocation2 + $0x6] ss:$0 sm:$0xff] }
 0xb4c   :  { %820 = vrot.lane.b32.xlu2 %v813_v35, %s1504_s3 }
 0xb51   :  { %v827_v36 = vpop.permute.xlu0 %826 }
 0xb52   :  { %v1820_v38 = vsel %vm259_vm9, %v827_v36, %v807_v29  ;;  %v1016_v36 = vld [vmem:[#allocation2 + $0x9] ss:$0 sm:$0xff] }
 0xb53   :  { %898 = vrot.lane.b32.xlu0 %v1820_v38, %s1505_s5 }
 0xba5   :  { %v816_v39 = vpop.permute.xlu1 %815 }
 0xba6   :  { %818 = vst.msk [vmem:[%s1908_s4 + $0x4] sm:$0x1] %vm251_vm10, %v816_v39  ;;  %v821_v40 = vpop.permute.xlu2 %820 }
 0xba7   :  { %823 = vst.msk [vmem:[%s1908_s4 + $0x3] sm:$0x1] %vm257_vm11, %v821_v40  ;;  %v824_v41 = vsel %vm259_vm9, %v816_v39, %v821_v40 }
 0xba8   :  { %1273 = vmatmul.msk.f32.vlgmr.msrb.gmra.mxu0 %vm125_vm12, %v824_v41  ;;  %1274 = vmatmul.msk.f32.vlgmr.msrb.gmra.mxu1 %vm125_vm12, %v824_v41 }
 0xbc5   :  { %v899_v9 = vpop.permute.xlu0 %898 }
 0xc25   :  { %v850_v42 = vpop.f32.mrf.mxu0  ;;  %v870_v37 = vpop.f32.mrf.mxu1 }
 0xc26   :  { %v874_v46 = vadd.f32 %v873_v43, %v850_v42  ;;  %v876_v47 = vadd.f32 %v875_v44, %v870_v37 }
 0xc28   :  { %1374 = vtanh.f32 %v874_v46  ;;  %v1276_v50 = vmul.f32 -1.442695, %v876_v47  ;;  %v1275_v53 = vmul.f32 -1.442695, %v874_v46 }
 0xc29   :  { %1376 = vtanh.f32 %v876_v47 }
 0xc2a   :  { %1378 = vpow2.f32 %v1276_v50 }
 0xc2e   :  { %v1375_v48 = vpop.eup %1374 }
 0xc2f   :  { %v1377_v49 = vpop.eup %1376  ;;  %903 = vrot.lane.b32.xlu1 %v1375_v48, %s1504_s3 }
 0xc30   :  { %940 = vrot.lane.b32.xlu2 %v1377_v49, %s1504_s3  ;;  %v1379_v45 = vpop.eup %1378 }
 0xc31   :  { %v921_v51 = vadd.f32 1.0, %v1379_v45 }
 0xc33   :  { %1380 = vrcp.f32 %v921_v51  ;;  %v933_v5 = vand.u32 2147483648, %v921_v51  ;;  %vm927_vm6 = vweird.f32 %v921_v51  ;;  %v931_v7 = vand.u32 2147483647, %v921_v51 }
 0xc34   :  { %1382 = vpow2.f32 %v1275_v53 }
 0xc35   :  { %v934_v12 = vor.u32 1.1754944e-38, %v933_v5  ;;  %vm932_vm8 = vcmp.eq.f32.partialorder %v931_v7, 8.507059e+37 }
 0xc39   :  { %v1381_v52 = vpop.eup %1380 }
 0xc3a   :  { %v923_v54 = vmul.f32 %v1381_v52, %v921_v51  ;;  %v1383_v56 = vpop.eup %1382  ;;  %vm928_vm5 = vweird.f32 %v1381_v52 }
 0xc3b   :  { %v880_v1 = vadd.f32 1.0, %v1383_v56  ;;  %vm929_vm7 = vmor %vm927_vm6, %vm928_vm5 }
 0xc3c   :  { %v924_v55 = vsub.f32 1.0, %v923_v54 }
 0xc3d   :  { %1384 = vrcp.f32 %v880_v1  ;;  %v892_v23 = vand.u32 2147483648, %v880_v1  ;;  %vm886_vm14 = vweird.f32 %v880_v1  ;;  %v890_v57 = vand.u32 2147483647, %v880_v1 }
 0xc3e   :  { %v925_v0 = vmul.f32 %v1381_v52, %v924_v55 }
 0xc3f   :  { %v893_v59 = vor.u32 1.1754944e-38, %v892_v23  ;;  %vm891_vm0 = vcmp.eq.f32.partialorder %v890_v57, 8.507059e+37 }
 0xc40   :  { %v926_v4 = vadd.f32 %v1381_v52, %v925_v0 }
 0xc42   :  { %v930_v8 = vsel %vm929_vm7, %v1381_v52, %v926_v4 }
 0xc43   :  { %v935_v16 = vsel %vm932_vm8, %v934_v12, %v930_v8  ;;  %v1385_v17 = vpop.eup %1384 }
 0xc44   :  { %v882_v19 = vmul.f32 %v1385_v17, %v880_v1  ;;  %vm887_vm13 = vweird.f32 %v1385_v17  ;;  %v938_v63 = vmul.f32 %v935_v16, %v1820_v38 }
 0xc45   :  { %vm888_vm15 = vmor %vm886_vm14, %vm887_vm13 }
 0xc46   :  { %v883_v20 = vsub.f32 1.0, %v882_v19 }
 0xc48   :  { %v884_v21 = vmul.f32 %v1385_v17, %v883_v20 }
 0xc4a   :  { %v885_v22 = vadd.f32 %v1385_v17, %v884_v21 }
 0xc4c   :  { %v889_v58 = vsel %vm888_vm15, %v1385_v17, %v885_v22 }
 0xc4d   :  { %v894_v61 = vsel %vm891_vm0, %v893_v59, %v889_v58 }
 0xc4e   :  { %v901_v10 = vmul.f32 %v899_v9, %v894_v61 }
 0xc8a   :  { %v941_v14 = vpop.permute.xlu2 %940 }
 0xc8b   :  { %v943_v18 = vmul.f32 %v941_v14, %v935_v16 }
 0xc8d   :  { %945 = vrot.lane.b32.xlu2 %v943_v18, %s1505_s5 }
 0xca1   :  { %v904_v60 = vpop.permute.xlu1 %903 }
 0xca2   :  { %v906_v62 = vmul.f32 %v904_v60, %v894_v61 }
 0xca4   :  { %908 = vrot.lane.b32.xlu1 %v906_v62, %s1505_s5 }
 0xce7   :  { %v946_v2 = vpop.permute.xlu2 %945 }
 0xce8   :  { %v948_v3 = vadd.f32 %v946_v2, %v938_v63 }
 0xcea   :  { %1386 = vtanh.f32 %v948_v3 }
 0xcf0   :  { %v1387_v6 = vpop.eup %1386 }
 0xcf1   :  { %951 = vrot.lane.b32.xlu1 %v1387_v6, %s1504_s3 }
 0xd16   :  { %v909_v11 = vpop.permute.xlu1 %908 }
 0xd17   :  { %v911_v13 = vadd.f32 %v909_v11, %v901_v10 }
 0xd19   :  { %1388 = vtanh.f32 %v911_v13  ;;  %967 = vrot.lane.b32.xlu1 %v911_v13, %s1506_s6 }
 0xd1f   :  { %v1389_v15 = vpop.eup %1388 }
 0xd20   :  { %914 = vrot.lane.b32.xlu0 %v1389_v15, %s1504_s3 }
 0xd63   :  { %v952_v24 = vpop.permute.xlu1 %951 }
 0xd64   :  { %v954_v25 = vmul.f32 %v952_v24, %v935_v16 }
 0xd66   :  { %961 = vrot.lane.b32.xlu0 %v954_v25, %s1504_s3 }
 0xd8b   :  { %v968_v26 = vpop.permute.xlu1 %967 }
 0xd8c   :  { %v1845_v27 = vsel %vm259_vm9, %v968_v26, %v948_v3  ;;  %v1155_v26 = vld [vmem:[#allocation2 + $0x7] ss:$0 sm:$0xff] }
 0xd8d   :  { %1039 = vrot.lane.b32.xlu1 %v1845_v27, %s1505_s5 }
 0xd92   :  { %v915_v28 = vpop.permute.xlu0 %914 }
 0xd93   :  { %v917_v29 = vmul.f32 %v915_v28, %v894_v61  ;;  %v1157_v28 = vld [vmem:[#allocation2 + $0x8] ss:$0 sm:$0xff] }
 0xd95   :  { %956 = vrot.lane.b32.xlu2 %v917_v29, %s1505_s5 }
 0xdd8   :  { %v962_v30 = vpop.permute.xlu0 %961 }
 0xdd9   :  { %964 = vst.msk [vmem:[%s1908_s4 + $0x2] sm:$0x1] %vm257_vm11, %v962_v30 }
 0xdef   :  { %v957_v31 = vpop.permute.xlu2 %956 }
 0xdf0   :  { %959 = vst.msk [vmem:[%s1908_s4 + $0x5] sm:$0x1] %vm251_vm10, %v957_v31  ;;  %v965_v32 = vsel %vm259_vm9, %v957_v31, %v962_v30 }
 0xdf1   :  { %1277 = vmatmul.msk.f32.vlgmr.msrb.gmra.mxu2 %vm125_vm12, %v965_v32  ;;  %1278 = vmatmul.msk.f32.vlgmr.msrb.gmra.mxu3 %vm125_vm12, %v965_v32 }
 0xdff   :  { %v1040_v22 = vpop.permute.xlu1 %1039 }
 0xe74   :  { %v991_v33 = vpop.f32.mrf.mxu2  ;;  %v1011_v35 = vpop.f32.mrf.mxu3 }
 0xe75   :  { %v1015_v38 = vadd.f32 %v1014_v34, %v991_v33  ;;  %v1017_v39 = vadd.f32 %v1016_v36, %v1011_v35 }
 0xe77   :  { %1390 = vtanh.f32 %v1015_v38  ;;  %v1279_v42 = vmul.f32 -1.442695, %v1015_v38  ;;  %v1280_v46 = vmul.f32 -1.442695, %v1017_v39 }
 0xe78   :  { %1392 = vtanh.f32 %v1017_v39 }
 0xe79   :  { %1394 = vpow2.f32 %v1279_v42 }
 0xe7d   :  { %v1391_v40 = vpop.eup %1390 }
 0xe7e   :  { %v1393_v41 = vpop.eup %1392  ;;  %1044 = vrot.lane.b32.xlu2 %v1391_v40, %s1504_s3 }
 0xe7f   :  { %1081 = vrot.lane.b32.xlu0 %v1393_v41, %s1504_s3  ;;  %v1395_v43 = vpop.eup %1394 }
 0xe80   :  { %v1021_v37 = vadd.f32 1.0, %v1395_v43 }
 0xe82   :  { %1396 = vrcp.f32 %v1021_v37  ;;  %v1033_v52 = vand.u32 2147483648, %v1021_v37  ;;  %vm1027_vm2 = vweird.f32 %v1021_v37  ;;  %v1031_v53 = vand.u32 2147483647, %v1021_v37 }
 0xe83   :  { %1398 = vpow2.f32 %v1280_v46 }
 0xe84   :  { %v1034_v55 = vor.u32 1.1754944e-38, %v1033_v52  ;;  %vm1032_vm4 = vcmp.eq.f32.partialorder %v1031_v53, 8.507059e+37 }
 0xe88   :  { %v1397_v44 = vpop.eup %1396 }
 0xe89   :  { %v1023_v47 = vmul.f32 %v1397_v44, %v1021_v37  ;;  %v1399_v50 = vpop.eup %1398  ;;  %vm1028_vm1 = vweird.f32 %v1397_v44 }
 0xe8a   :  { %v1062_v45 = vadd.f32 1.0, %v1399_v50  ;;  %vm1029_vm3 = vmor %vm1027_vm2, %vm1028_vm1 }
 0xe8b   :  { %v1024_v48 = vsub.f32 1.0, %v1023_v47 }
 0xe8c   :  { %1400 = vrcp.f32 %v1062_v45  ;;  %v1074_v14 = vand.u32 2147483648, %v1062_v45  ;;  %vm1068_vm6 = vweird.f32 %v1062_v45  ;;  %v1072_v16 = vand.u32 2147483647, %v1062_v45 }
 0xe8d   :  { %v1025_v49 = vmul.f32 %v1397_v44, %v1024_v48 }
 0xe8e   :  { %v1075_v18 = vor.u32 1.1754944e-38, %v1074_v14  ;;  %vm1073_vm8 = vcmp.eq.f32.partialorder %v1072_v16, 8.507059e+37 }
 0xe8f   :  { %v1026_v51 = vadd.f32 %v1397_v44, %v1025_v49 }
 0xe91   :  { %v1030_v54 = vsel %vm1029_vm3, %v1397_v44, %v1026_v51 }
 0xe92   :  { %v1035_v0 = vsel %vm1032_vm4, %v1034_v55, %v1030_v54  ;;  %v1401_v4 = vpop.eup %1400 }
 0xe93   :  { %v1064_v5 = vmul.f32 %v1401_v4, %v1062_v45  ;;  %vm1069_vm5 = vweird.f32 %v1401_v4  ;;  %v1042_v23 = vmul.f32 %v1040_v22, %v1035_v0 }
 0xe94   :  { %vm1070_vm7 = vmor %vm1068_vm6, %vm1069_vm5 }
 0xe95   :  { %v1065_v7 = vsub.f32 1.0, %v1064_v5 }
 0xe97   :  { %v1066_v8 = vmul.f32 %v1401_v4, %v1065_v7 }
 0xe99   :  { %v1067_v12 = vadd.f32 %v1401_v4, %v1066_v8 }
 0xe9b   :  { %v1071_v17 = vsel %vm1070_vm7, %v1401_v4, %v1067_v12 }
 0xe9c   :  { %v1076_v20 = vsel %vm1073_vm8, %v1075_v18, %v1071_v17 }
 0xe9d   :  { %v1079_v60 = vmul.f32 %v1076_v20, %v1845_v27 }
 0xed8   :  { %v1045_v56 = vpop.permute.xlu2 %1044 }
 0xed9   :  { %v1047_v1 = vmul.f32 %v1045_v56, %v1035_v0 }
 0xedb   :  { %1049 = vrot.lane.b32.xlu2 %v1047_v1, %s1505_s5 }
 0xef1   :  { %v1082_v19 = vpop.permute.xlu0 %1081 }
 0xef2   :  { %v1084_v21 = vmul.f32 %v1082_v19, %v1076_v20 }
 0xef4   :  { %1086 = vrot.lane.b32.xlu0 %v1084_v21, %s1505_s5 }
 0xf35   :  { %v1050_v57 = vpop.permute.xlu2 %1049 }
 0xf36   :  { %v1052_v58 = vadd.f32 %v1050_v57, %v1042_v23 }
 0xf38   :  { %1402 = vtanh.f32 %v1052_v58 }
 0xf3e   :  { %v1403_v59 = vpop.eup %1402 }
 0xf3f   :  { %1055 = vrot.lane.b32.xlu1 %v1403_v59, %s1504_s3 }
 0xf66   :  { %v1087_v61 = vpop.permute.xlu0 %1086 }
 0xf67   :  { %v1089_v62 = vadd.f32 %v1087_v61, %v1079_v60 }
 0xf69   :  { %1404 = vtanh.f32 %v1089_v62 }
 0xf6f   :  { %v1405_v63 = vpop.eup %1404 }
 0xf70   :  { %1092 = vrot.lane.b32.xlu2 %v1405_v63, %s1504_s3 }
 0xf78   :  { %1108 = vrot.lane.b32.xlu2 %v1052_v58, %s1506_s6 }
 0xfb1   :  { %v1056_v2 = vpop.permute.xlu1 %1055 }
 0xfb2   :  { %v1058_v3 = vmul.f32 %v1056_v2, %v1035_v0 }
 0xfb4   :  { %1097 = vrot.lane.b32.xlu0 %v1058_v3, %s1505_s5 }
 0xfca   :  { %v1093_v6 = vpop.permute.xlu2 %1092 }
 0xfcb   :  { %v1095_v9 = vmul.f32 %v1093_v6, %v1076_v20 }
 0xfcd   :  { %1102 = vrot.lane.b32.xlu1 %v1095_v9, %s1504_s3 }
 0xfd2   :  { %v1109_v10 = vpop.permute.xlu2 %1108 }
 0xfd3   :  { %v1872_v11 = vsel %vm259_vm9, %v1109_v10, %v1089_v62 }
 0xfd4   :  { %1180 = vrot.lane.b32.xlu2 %v1872_v11, %s1505_s5 }
0x1026   :  { %v1098_v13 = vpop.permute.xlu0 %1097 }
0x1027   :  { %1100 = vst.msk [vmem:[%s1908_s4 + $0x6] sm:$0x1] %vm251_vm10, %v1098_v13 }
0x102e   :  { %v1181_v12 = vpop.permute.xlu2 %1180 }
0x103f   :  { %v1103_v15 = vpop.permute.xlu1 %1102 }
0x1040   :  { %1105 = vst.msk [vmem:[%s1908_s4 + $0x1] sm:$0x1] %vm257_vm11, %v1103_v15  ;;  %v1106_v24 = vsel %vm259_vm9, %v1098_v13, %v1103_v15 }
0x1041   :  { %1281 = vmatmul.msk.f32.vlgmr.msra.gmra.mxu0 %vm125_vm12, %v1106_v24  ;;  %1282 = vmatmul.msk.f32.vlgmr.msra.gmra.mxu1 %vm125_vm12, %v1106_v24 }
0x10be   :  { %v1132_v25 = vpop.f32.mrf.mxu0  ;;  %v1152_v27 = vpop.f32.mrf.mxu1 }
0x10bf   :  { %v1156_v29 = vadd.f32 %v1155_v26, %v1132_v25  ;;  %v1158_v30 = vadd.f32 %v1157_v28, %v1152_v27 }
0x10c1   :  { %1406 = vtanh.f32 %v1156_v29  ;;  %v1283_v33 = vmul.f32 -1.442695, %v1156_v29  ;;  %v1284_v34 = vmul.f32 -1.442695, %v1158_v30 }
0x10c2   :  { %1408 = vtanh.f32 %v1158_v30 }
0x10c3   :  { %1410 = vpow2.f32 %v1283_v33 }
0x10c4   :  { %1412 = vpow2.f32 %v1284_v34 }
0x10c7   :  { %v1407_v31 = vpop.eup %1406 }
0x10c8   :  { %v1409_v32 = vpop.eup %1408  ;;  %1185 = vrot.lane.b32.xlu0 %v1407_v31, %s1504_s3 }
0x10c9   :  { %1222 = vrot.lane.b32.xlu1 %v1409_v32, %s1504_s3  ;;  %v1411_v35 = vpop.eup %1410 }
0x10ca   :  { %v1413_v36 = vpop.eup %1412  ;;  %v1162_v38 = vadd.f32 1.0, %v1411_v35 }
0x10cb   :  { %v1203_v39 = vadd.f32 1.0, %v1413_v36 }
0x10cc   :  { %1414 = vrcp.f32 %v1162_v38  ;;  %v1174_v50 = vand.u32 2147483648, %v1162_v38  ;;  %vm1168_vm13 = vweird.f32 %v1162_v38  ;;  %v1172_v51 = vand.u32 2147483647, %v1162_v38 }
0x10cd   :  { %1416 = vrcp.f32 %v1203_v39  ;;  %v1215_v45 = vand.u32 2147483648, %v1203_v39  ;;  %vm1209_vm14 = vweird.f32 %v1203_v39  ;;  %v1213_v52 = vand.u32 2147483647, %v1203_v39 }
0x10ce   :  { %v1175_v55 = vor.u32 1.1754944e-38, %v1174_v50  ;;  %vm1173_vm1 = vcmp.eq.f32.partialorder %v1172_v51, 8.507059e+37 }
0x10cf   :  { %v1216_v56 = vor.u32 1.1754944e-38, %v1215_v45  ;;  %vm1214_vm2 = vcmp.eq.f32.partialorder %v1213_v52, 8.507059e+37 }
0x10d2   :  { %v1415_v40 = vpop.eup %1414 }
0x10d3   :  { %v1417_v41 = vpop.eup %1416  ;;  %v1164_v42 = vmul.f32 %v1415_v40, %v1162_v38  ;;  %vm1169_vm9 = vweird.f32 %v1415_v40 }
0x10d4   :  { %v1205_v43 = vmul.f32 %v1417_v41, %v1203_v39  ;;  %vm1210_vm12 = vweird.f32 %v1417_v41  ;;  %vm1170_vm15 = vmor %vm1168_vm13, %vm1169_vm9 }
0x10d5   :  { %v1165_v37 = vsub.f32 1.0, %v1164_v42  ;;  %vm1211_vm0 = vmor %vm1209_vm14, %vm1210_vm12 }
0x10d6   :  { %v1206_v44 = vsub.f32 1.0, %v1205_v43 }
0x10d7   :  { %v1166_v46 = vmul.f32 %v1415_v40, %v1165_v37 }
0x10d8   :  { %v1207_v47 = vmul.f32 %v1417_v41, %v1206_v44 }
0x10d9   :  { %v1167_v48 = vadd.f32 %v1415_v40, %v1166_v46 }
0x10da   :  { %v1208_v49 = vadd.f32 %v1417_v41, %v1207_v47 }
0x10db   :  { %v1171_v53 = vsel %vm1170_vm15, %v1415_v40, %v1167_v48 }
0x10dc   :  { %v1212_v54 = vsel %vm1211_vm0, %v1417_v41, %v1208_v49  ;;  %v1176_v1 = vsel %vm1173_vm1, %v1175_v55, %v1171_v53 }
0x10dd   :  { %v1217_v5 = vsel %vm1214_vm2, %v1216_v56, %v1212_v54  ;;  %v1183_v14 = vmul.f32 %v1181_v12, %v1176_v1 }
0x10de   :  { %v1220_v16 = vmul.f32 %v1217_v5, %v1872_v11 }
0x113a   :  { %v1186_v0 = vpop.permute.xlu0 %1185 }
0x113b   :  { %v1223_v4 = vpop.permute.xlu1 %1222  ;;  %v1188_v7 = vmul.f32 %v1186_v0, %v1176_v1 }
0x113c   :  { %v1225_v8 = vmul.f32 %v1223_v4, %v1217_v5 }
0x113d   :  { %1190 = vrot.lane.b32.xlu0 %v1188_v7, %s1505_s5 }
0x113e   :  { %1227 = vrot.lane.b32.xlu1 %v1225_v8, %s1505_s5 }
0x11af   :  { %v1191_v17 = vpop.permute.xlu0 %1190 }
0x11b0   :  { %v1228_v18 = vpop.permute.xlu1 %1227  ;;  %v1193_v19 = vadd.f32 %v1191_v17, %v1183_v14 }
0x11b1   :  { %v1230_v20 = vadd.f32 %v1228_v18, %v1220_v16 }
0x11b2   :  { %1418 = vtanh.f32 %v1193_v19 }
0x11b3   :  { %1420 = vtanh.f32 %v1230_v20 }
0x11b8   :  { %v1419_v21 = vpop.eup %1418 }
0x11b9   :  { %v1421_v22 = vpop.eup %1420  ;;  %1196 = vrot.lane.b32.xlu2 %v1419_v21, %s1504_s3 }
0x11ba   :  { %1233 = vrot.lane.b32.xlu0 %v1421_v22, %s1504_s3 }
0x1213   :  { %v1197_v23 = vpop.permute.xlu2 %1196 }
0x1214   :  { %v1199_v57 = vmul.f32 %v1197_v23, %v1176_v1 }
0x1216   :  { %1238 = vrot.lane.b32.xlu1 %v1199_v57, %s1505_s5 }
0x122c   :  { %v1234_v58 = vpop.permute.xlu0 %1233 }
0x122d   :  { %v1236_v59 = vmul.f32 %v1234_v58, %v1217_v5 }
0x122f   :  { %1243 = vrot.lane.b32.xlu2 %v1236_v59, %s1504_s3 }
0x1288   :  { %v1239_v60 = vpop.permute.xlu1 %1238 }
0x1289   :  { %1241 = vst.msk [vmem:[%s1908_s4 + $0x7] sm:$0x1] %vm251_vm10, %v1239_v60  ;;  %v1244_v61 = vpop.permute.xlu2 %1243 }
0x128a   :  { %1246 = vst.msk [vmem:[%s1908_s4] sm:$0x1] %vm257_vm11, %v1244_v61 }
0x128b   :  { %1251 = vsyncpa [#allocation4], 1 }
0x128c   :  { %1252 = vsyncpa [#allocation6], 1 }

// kernel: lstm_tag_net_forward.4
= control target key start
LH: loop header
LB: loop body
LE: loop exit
PB: predicated region body
PF: predicated region fallthrough
CT: control target
= control target key end

     0   :  { %9 = vsyncpa [#allocation4], 0  ;;  %s1882_s0 = inlined_call_operand.vmem [shape: f32[8,64], index: 0, kind: input, shape index: {}]   ;;  %s1883_s1 = inlined_call_operand.hbm [shape: f32[64,256], index: 1, kind: input, shape index: {}]   ;;  %s1884_s2 = inlined_call_operand.hbm [shape: f32[64,256], index: 2, kind: input, shape index: {}]   ;;  %s1885_s3 = inlined_call_operand.vmem [shape: f32[1,256], index: 3, kind: input, shape index: {}]   ;;  %s1886_s4 = inlined_call_operand.vmem [shape: f32[8,64], index: 4, kind: output, shape index: {}]  }
   0x1   :  { %s17_s17 = sshll.u32 %s1883_s1, 4  ;;  %s18_s17 = int_to_ptr.hbm [resolvable:$true] %s17_s17 }
   0x2   :  { %10 = vsyncpa [#allocation6], 0  ;;  %s1477_s18 = smov [#allocation3]   ;;  %s30_s22 = sshll.u32 %s1884_s2, 4  ;;  %s31_s22 = int_to_ptr.hbm [resolvable:$true] %s30_s22 }
   0x3   :  { %s19_s19 = sshll.u32 %s1477_s18, 4  ;;  %s1478_s23 = smov 256   ;;  %s20_s19 = int_to_ptr.vmem [resolvable:$true] %s19_s19 }
   0x4   :  { %s1479_s24 = smov 16   ;;  %s1480_s25 = smov [#allocation5]  }
   0x5   :  { %25 = dma.hbm_to_vmem [thread:$0]  %s18_s17, 2048, %s20_s19, [#allocation4], %s1478_s23, %s1478_s23, %s1479_s24  }
   0x6   :  { %s32_s26 = sshll.u32 %s1480_s25, 4  ;;  %s33_s26 = int_to_ptr.vmem [resolvable:$true] %s32_s26 }
   0x7   :  { %38 = dma.hbm_to_vmem [thread:$0]  %s31_s22, 2048, %s33_s26, [#allocation6], %s1478_s23, %s1478_s23, %s1479_s24  }
   0x8   :  { %1473 = dma.done.wait [#allocation4], 2048  }
   0x9   :  { %1474 = vsyncadd [#allocation4], 4294965248 }
   0xa   :  { %1475 = dma.done.wait [#allocation6], 2048  }
   0xb   :  { %1476 = vsyncadd [#allocation6], 4294965248  ;;  %v64_v0 = vld [vmem:[#allocation3 + $0x60] sm:$0xff]  ;;  %v66_v1 = vld [vmem:[#allocation3 + $0x70] sm:$0xff]  ;;  %vm82_vm0 = vcmask 523264   ;;  %v1481_v42 = vmov 0.0  }
   0xc   :  { %v65_v2 = vld [vmem:[#allocation3 + $0x68] sm:$0xff]  ;;  %v74_v3 = vpack.c.bf16 %v66_v1, %v64_v0  ;;  %v67_v4 = vld [vmem:[#allocation3 + $0x78] sm:$0xff]  ;;  %v60_v5 = vld [vmem:[#allocation3 + $0x40] sm:$0xff]  ;;  %s1483_s28 = smov 32   ;;  %s1484_s29 = smov 96   ;;  %vm263_vm9 = vcmask 261120  }
   0xd   :  { %v62_v6 = vld [vmem:[#allocation3 + $0x50] sm:$0xff]  ;;  %v75_v7 = vpack.c.bf16 %v67_v4, %v65_v2  ;;  %v61_v8 = vld [vmem:[#allocation3 + $0x48] sm:$0xff]  ;;  %v63_v9 = vld [vmem:[#allocation3 + $0x58] sm:$0xff]  ;;  %vm255_vm10 = vcmask 253952   ;;  %vm261_vm11 = vcmask 516352  }
   0xe   :  { %v1516_v10 = vld [vmem:[#allocation5 + $0x70] sm:$0xff]  ;;  %90 = vmatpush.bf16.msra.mxu0 %v74_v3  ;;  %v72_v11 = vpack.c.bf16 %v62_v6, %v60_v5  ;;  %v1519_v12 = vld [vmem:[#allocation5 + $0x78] sm:$0xff]  ;;  %v1521_v13 = vld [vmem:[#allocation5 + $0x60] sm:$0xff]  ;;  %v73_v15 = vpack.c.bf16 %v63_v9, %v61_v8 }
   0xf   :  { %141 = vmatpush.msra.mxu2 %v1516_v10  ;;  %v1523_v14 = vld [vmem:[#allocation5 + $0x68] sm:$0xff]  ;;  %103 = vmatpush.bf16.msra.mxu1 %v75_v7  ;;  %v56_v16 = vld [vmem:[#allocation3 + $0x20] sm:$0xff]  ;;  %v58_v17 = vld [vmem:[#allocation3 + $0x30] sm:$0xff] }
  0x10   :  { %161 = vmatpush.msra.mxu3 %v1519_v12  ;;  %v57_v18 = vld [vmem:[#allocation3 + $0x28] sm:$0xff]  ;;  %v59_v19 = vld [vmem:[#allocation3 + $0x38] sm:$0xff]  ;;  %v1527_v20 = vld [vmem:[#allocation5 + $0x50] sm:$0xff]  ;;  %v70_v23 = vpack.c.bf16 %v58_v17, %v56_v16 }
  0x11   :  { %142 = vmatpush.msra.mxu2 %v1521_v13  ;;  %v1529_v21 = vld [vmem:[#allocation5 + $0x58] sm:$0xff]  ;;  %v1532_v22 = vld [vmem:[#allocation5 + $0x40] sm:$0xff]  ;;  %v1535_v24 = vld [vmem:[#allocation5 + $0x48] sm:$0xff]  ;;  %v71_v25 = vpack.c.bf16 %v59_v19, %v57_v18 }
  0x12   :  { %162 = vmatpush.msra.mxu3 %v1523_v14  ;;  %91 = vmatpush.bf16.msra.mxu0 %v72_v11  ;;  %v52_v26 = vld [vmem:[#allocation3] sm:$0xff]  ;;  %v54_v27 = vld [vmem:[#allocation3 + $0x10] sm:$0xff]  ;;  %v53_v29 = vld [vmem:[#allocation3 + $0x8] sm:$0xff] }
  0x13   :  { %143 = vmatpush.msra.mxu2 %v1527_v20  ;;  %104 = vmatpush.bf16.msra.mxu1 %v73_v15  ;;  %v1538_v28 = vld [vmem:[#allocation5 + $0x30] sm:$0xff]  ;;  %v55_v30 = vld [vmem:[#allocation3 + $0x18] sm:$0xff]  ;;  %v1544_v32 = vld [vmem:[#allocation5 + $0x20] sm:$0xff]  ;;  %v68_v33 = vpack.c.bf16 %v54_v27, %v52_v26 }
  0x14   :  { %163 = vmatpush.msra.mxu3 %v1529_v21  ;;  %v1541_v31 = vld [vmem:[#allocation5 + $0x38] sm:$0xff]  ;;  %v1547_v34 = vld [vmem:[#allocation5 + $0x28] sm:$0xff]  ;;  %v50_v35 = vld [vmem:[%s1882_s0] sm:$0xff]  ;;  %v69_v36 = vpack.c.bf16 %v55_v30, %v53_v29 }
  0x15   :  { %144 = vmatpush.msra.mxu2 %v1532_v22  ;;  %v1553_v37 = vld [vmem:[#allocation5 + $0x10] sm:$0xff]  ;;  %v1556_v38 = vld [vmem:[#allocation5 + $0x18] sm:$0xff]  ;;  %v51_v39 = vpack.c.bf16 %v50_v35, %v50_v35  ;;  %v1559_v40 = vld [vmem:[#allocation5] sm:$0xff] }
  0x16   :  { %164 = vmatpush.msra.mxu3 %v1535_v24  ;;  %92 = vmatpush.bf16.msra.mxu0 %v70_v23  ;;  %v1562_v41 = vld [vmem:[#allocation5 + $0x8] sm:$0xff]  ;;  %v76_v43 = vld [vmem:[%s1885_s3] sm:$0x3]  ;;  %s1482_s3 = smov 64  }
  0x17   :  { %145 = vmatpush.msra.mxu2 %v1538_v28  ;;  %105 = vmatpush.bf16.msra.mxu1 %v71_v25  ;;  %v78_v44 = vperm.slane %v76_v43, 0  ;;  %v79_v45 = vperm.slane %v76_v43, 1 }
  0x18   :  { %165 = vmatpush.msra.mxu3 %v1541_v31 }
  0x19   :  { %146 = vmatpush.msra.mxu2 %v1544_v32 }
  0x1a   :  { %166 = vmatpush.msra.mxu3 %v1547_v34  ;;  %93 = vmatpush.bf16.msra.mxu0 %v68_v33 }
  0x1b   :  { %147 = vmatpush.msra.mxu2 %v1553_v37  ;;  %106 = vmatpush.bf16.msra.mxu1 %v69_v36 }
  0x1c   :  { %167 = vmatpush.msra.mxu3 %v1556_v38 }
  0x1d   :  { %148 = vmatpush.msra.mxu2 %v1559_v40  ;;  %1257 = vmatmul.msk.bf16.vlgmr.msra.gmra.mxu0 %vm82_vm0, %v51_v39 }
  0x1e   :  { %281 = vmatpush.msrb.mxu0 %v1516_v10  ;;  %168 = vmatpush.msra.mxu3 %v1562_v41 }
  0x1f   :  { %1258 = vmatmul.msk.bf16.vlgmr.msra.gmra.mxu1 %vm82_vm0, %v51_v39  ;;  %149 = vmatmul.f32.vlgmr.msra.gmra.mxu2 %v1481_v42 }
  0x20   :  { %169 = vmatmul.f32.vlgmr.msra.gmra.mxu3 %v1481_v42  ;;  %301 = vmatpush.msrb.mxu1 %v1519_v12 }
  0x21   :  { %282 = vmatpush.msrb.mxu0 %v1521_v13  ;;  %422 = vmatpush.msrb.mxu2 %v1516_v10 }
  0x22   :  { %302 = vmatpush.msrb.mxu1 %v1523_v14  ;;  %442 = vmatpush.msrb.mxu3 %v1519_v12 }
  0x23   :  { %283 = vmatpush.msrb.mxu0 %v1527_v20  ;;  %423 = vmatpush.msrb.mxu2 %v1521_v13 }
  0x24   :  { %303 = vmatpush.msrb.mxu1 %v1529_v21  ;;  %443 = vmatpush.msrb.mxu3 %v1523_v14 }
  0x25   :  { %284 = vmatpush.msrb.mxu0 %v1532_v22  ;;  %424 = vmatpush.msrb.mxu2 %v1527_v20 }
  0x26   :  { %304 = vmatpush.msrb.mxu1 %v1535_v24  ;;  %444 = vmatpush.msrb.mxu3 %v1529_v21 }
  0x27   :  { %285 = vmatpush.msrb.mxu0 %v1538_v28  ;;  %425 = vmatpush.msrb.mxu2 %v1532_v22 }
  0x28   :  { %305 = vmatpush.msrb.mxu1 %v1541_v31  ;;  %445 = vmatpush.msrb.mxu3 %v1535_v24 }
  0x29   :  { %286 = vmatpush.msrb.mxu0 %v1544_v32  ;;  %426 = vmatpush.msrb.mxu2 %v1538_v28 }
  0x2a   :  { %306 = vmatpush.msrb.mxu1 %v1547_v34  ;;  %446 = vmatpush.msrb.mxu3 %v1541_v31 }
  0x2b   :  { %287 = vmatpush.msrb.mxu0 %v1553_v37  ;;  %427 = vmatpush.msrb.mxu2 %v1544_v32 }
  0x2c   :  { %307 = vmatpush.msrb.mxu1 %v1556_v38  ;;  %447 = vmatpush.msrb.mxu3 %v1547_v34 }
  0x2d   :  { %288 = vmatpush.msrb.mxu0 %v1559_v40  ;;  %428 = vmatpush.msrb.mxu2 %v1553_v37 }
  0x2e   :  { %308 = vmatpush.msrb.mxu1 %v1562_v41  ;;  %448 = vmatpush.msrb.mxu3 %v1556_v38 }
  0x2f   :  { %429 = vmatpush.msrb.mxu2 %v1559_v40  ;;  %563 = vmatpush.msra.mxu0 %v1516_v10 }
  0x30   :  { %449 = vmatpush.msrb.mxu3 %v1562_v41  ;;  %583 = vmatpush.msra.mxu1 %v1519_v12 }
  0x31   :  { %564 = vmatpush.msra.mxu0 %v1521_v13  ;;  %704 = vmatpush.msra.mxu2 %v1516_v10 }
  0x32   :  { %584 = vmatpush.msra.mxu1 %v1523_v14  ;;  %724 = vmatpush.msra.mxu3 %v1519_v12 }
  0x33   :  { %565 = vmatpush.msra.mxu0 %v1527_v20  ;;  %705 = vmatpush.msra.mxu2 %v1521_v13 }
  0x34   :  { %585 = vmatpush.msra.mxu1 %v1529_v21  ;;  %725 = vmatpush.msra.mxu3 %v1523_v14 }
  0x35   :  { %566 = vmatpush.msra.mxu0 %v1532_v22  ;;  %706 = vmatpush.msra.mxu2 %v1527_v20 }
  0x36   :  { %586 = vmatpush.msra.mxu1 %v1535_v24  ;;  %726 = vmatpush.msra.mxu3 %v1529_v21 }
  0x37   :  { %567 = vmatpush.msra.mxu0 %v1538_v28  ;;  %707 = vmatpush.msra.mxu2 %v1532_v22 }
  0x38   :  { %587 = vmatpush.msra.mxu1 %v1541_v31  ;;  %727 = vmatpush.msra.mxu3 %v1535_v24 }
  0x39   :  { %568 = vmatpush.msra.mxu0 %v1544_v32  ;;  %708 = vmatpush.msra.mxu2 %v1538_v28 }
  0x3a   :  { %588 = vmatpush.msra.mxu1 %v1547_v34  ;;  %728 = vmatpush.msra.mxu3 %v1541_v31 }
  0x3b   :  { %569 = vmatpush.msra.mxu0 %v1553_v37  ;;  %709 = vmatpush.msra.mxu2 %v1544_v32 }
  0x3c   :  { %589 = vmatpush.msra.mxu1 %v1556_v38  ;;  %729 = vmatpush.msra.mxu3 %v1547_v34 }
  0x3d   :  { %570 = vmatpush.msra.mxu0 %v1559_v40  ;;  %710 = vmatpush.msra.mxu2 %v1553_v37 }
  0x3e   :  { %590 = vmatpush.msra.mxu1 %v1562_v41  ;;  %730 = vmatpush.msra.mxu3 %v1556_v38 }
  0x3f   :  { %711 = vmatpush.msra.mxu2 %v1559_v40 }
  0x40   :  { %731 = vmatpush.msra.mxu3 %v1562_v41 }
  0x9a   :  { %v95_v46 = vpop.f32.mrf.mxu0 }
  0x9b   :  { %v96_v47 = vadd.f32 %v95_v46, %v78_v44 }
  0x9c   :  { %v108_v48 = vpop.f32.mrf.mxu1 }
  0x9d   :  { %v109_v49 = vadd.f32 %v108_v48, %v79_v45  ;;  %112 = vst [vmem:[#allocation2] sm:$0xff] %v96_v47 }
  0x9f   :  { %113 = vst [vmem:[#allocation2 + $0x8] sm:$0xff] %v109_v49 }
  0xa2   :  { %v97_v50 = vpop.f32.mrf.mxu0  ;;  %v150_v51 = vpop.f32.mrf.mxu2 }
  0xa3   :  { %v170_v55 = vpop.f32.mrf.mxu3 }
  0xa4   :  { %v110_v52 = vpop.f32.mrf.mxu1  ;;  %v173_v53 = vld [vmem:[#allocation2] ss:$0 sm:$0xff] }
  0xa5   :  { %v174_v54 = vadd.f32 %v173_v53, %v150_v51 }
  0xa6   :  { %v175_v56 = vld [vmem:[#allocation2 + $0xf] ss:$0 sm:$0xff] }
  0xa7   :  { %1297 = vtanh.f32 %v174_v54  ;;  %v176_v57 = vadd.f32 %v175_v56, %v170_v55  ;;  %v1259_v60 = vmul.f32 -1.442695, %v174_v54 }
  0xa9   :  { %1299 = vtanh.f32 %v176_v57  ;;  %v1260_v61 = vmul.f32 -1.442695, %v176_v57 }
  0xaa   :  { %1301 = vpow2.f32 %v1259_v60  ;;  %v313_v60 = vld [vmem:[#allocation2 + $0x1] ss:$0 sm:$0xff] }
  0xab   :  { %1303 = vpow2.f32 %v1260_v61 }
  0xad   :  { %v1298_v58 = vpop.eup %1297 }
  0xae   :  { %199 = vrot.lane.b32.xlu0 %v1298_v58, %s1482_s3 }
  0xaf   :  { %v1300_v59 = vpop.eup %1299 }
  0xb0   :  { %v1302_v62 = vpop.eup %1301 }
  0xb1   :  { %v180_v63 = vadd.f32 1.0, %v1302_v62  ;;  %v1304_v0 = vpop.eup %1303  ;;  %v315_v62 = vld [vmem:[#allocation2 + $0xe] ss:$0 sm:$0xff] }
  0xb2   :  { %v217_v1 = vadd.f32 1.0, %v1304_v0 }
  0xb3   :  { %1305 = vrcp.f32 %v180_v63  ;;  %v192_v11 = vand.u32 2147483648, %v180_v63  ;;  %vm186_vm2 = vweird.f32 %v180_v63  ;;  %v190_v15 = vand.u32 2147483647, %v180_v63 }
  0xb4   :  { %1307 = vrcp.f32 %v217_v1  ;;  %vm223_vm5 = vweird.f32 %v217_v1  ;;  %v229_v27 = vand.u32 2147483648, %v217_v1  ;;  %v227_v29 = vand.u32 2147483647, %v217_v1 }
  0xb5   :  { %v193_v18 = vor.u32 1.1754944e-38, %v192_v11  ;;  %vm191_vm4 = vcmp.eq.f32.partialorder %v190_v15, 8.507059e+37 }
  0xb6   :  { %236 = vrot.lane.b32.xlu0 %v1300_v59, %s1482_s3  ;;  %v230_v33 = vor.u32 1.1754944e-38, %v229_v27  ;;  %vm228_vm8 = vcmp.eq.f32.partialorder %v227_v29, 8.507059e+37 }
  0xb9   :  { %v1306_v2 = vpop.eup %1305 }
  0xba   :  { %v182_v3 = vmul.f32 %v1306_v2, %v180_v63  ;;  %v1308_v5 = vpop.eup %1307  ;;  %vm187_vm1 = vweird.f32 %v1306_v2 }
  0xbb   :  { %v219_v7 = vmul.f32 %v1308_v5, %v217_v1  ;;  %vm188_vm3 = vmor %vm186_vm2, %vm187_vm1  ;;  %vm224_vm6 = vweird.f32 %v1308_v5 }
  0xbc   :  { %v183_v4 = vsub.f32 1.0, %v182_v3  ;;  %vm225_vm7 = vmor %vm223_vm5, %vm224_vm6 }
  0xbd   :  { %v220_v9 = vsub.f32 1.0, %v219_v7 }
  0xbe   :  { %v184_v6 = vmul.f32 %v1306_v2, %v183_v4 }
  0xbf   :  { %v221_v17 = vmul.f32 %v1308_v5, %v220_v9 }
  0xc0   :  { %v185_v8 = vadd.f32 %v1306_v2, %v184_v6 }
  0xc1   :  { %v222_v26 = vadd.f32 %v1308_v5, %v221_v17 }
  0xc2   :  { %v189_v16 = vsel %vm188_vm3, %v1306_v2, %v185_v8 }
  0xc3   :  { %v194_v23 = vsel %vm191_vm4, %v193_v18, %v189_v16  ;;  %v226_v30 = vsel %vm225_vm7, %v1308_v5, %v222_v26 }
  0xc4   :  { %v231_v35 = vsel %vm228_vm8, %v230_v33, %v226_v30  ;;  %v197_v42 = vmul.f32 0.0, %v194_v23 }
  0xc5   :  { %v234_v45 = vmul.f32 0.0, %v231_v35 }
 0x120   :  { %v200_v19 = vpop.permute.xlu0 %199 }
 0x121   :  { %v202_v25 = vmul.f32 %v200_v19, %v194_v23 }
 0x123   :  { %204 = vrot.lane.b32.xlu1 %v202_v25, %s1483_s28 }
 0x128   :  { %v237_v36 = vpop.permute.xlu0 %236 }
 0x129   :  { %v239_v39 = vmul.f32 %v237_v36, %v231_v35 }
 0x12b   :  { %241 = vrot.lane.b32.xlu1 %v239_v39, %s1483_s28 }
 0x195   :  { %v205_v43 = vpop.permute.xlu1 %204 }
 0x196   :  { %v207_v44 = vadd.f32 %v205_v43, %v197_v42 }
 0x198   :  { %1309 = vtanh.f32 %v207_v44 }
 0x19d   :  { %v242_v46 = vpop.permute.xlu1 %241 }
 0x19e   :  { %v1310_v47 = vpop.eup %1309  ;;  %v244_v48 = vadd.f32 %v242_v46, %v234_v45 }
 0x19f   :  { %210 = vrot.lane.b32.xlu2 %v1310_v47, %s1482_s3 }
 0x1a0   :  { %1311 = vtanh.f32 %v244_v48 }
 0x1a6   :  { %v1312_v49 = vpop.eup %1311 }
 0x1a7   :  { %247 = vrot.lane.b32.xlu2 %v1312_v49, %s1482_s3 }
 0x1af   :  { %266 = vrot.lane.b32.xlu2 %v207_v44, %s1484_s29 }
 0x1f9   :  { %v211_v50 = vpop.permute.xlu2 %210 }
 0x1fa   :  { %v213_v51 = vmul.f32 %v211_v50, %v194_v23 }
 0x1fc   :  { %252 = vrot.lane.b32.xlu0 %v213_v51, %s1483_s28 }
 0x201   :  { %v248_v52 = vpop.permute.xlu2 %247 }
 0x202   :  { %v250_v53 = vmul.f32 %v248_v52, %v231_v35 }
 0x204   :  { %258 = vrot.lane.b32.xlu1 %v250_v53, %s1482_s3 }
 0x209   :  { %v267_v54 = vpop.permute.xlu2 %266 }
 0x20a   :  { %v1646_v55 = vsel %vm263_vm9, %v267_v54, %v244_v48 }
 0x20b   :  { %338 = vrot.lane.b32.xlu2 %v1646_v55, %s1483_s28 }
 0x265   :  { %v339_v49 = vpop.permute.xlu2 %338 }
 0x26e   :  { %v253_v56 = vpop.permute.xlu0 %252 }
 0x26f   :  { %256 = vst.msk [vmem:[%s1886_s4] sm:$0x1] %vm255_vm10, %v253_v56 }
 0x276   :  { %v259_v57 = vpop.permute.xlu1 %258 }
 0x277   :  { %262 = vst.msk [vmem:[%s1886_s4 + $0x7] sm:$0x1] %vm261_vm11, %v259_v57  ;;  %v264_v58 = vsel %vm263_vm9, %v253_v56, %v259_v57 }
 0x278   :  { %1261 = vmatmul.msk.f32.vlgmr.msrb.gmra.mxu0 %vm82_vm0, %v264_v58  ;;  %1262 = vmatmul.msk.f32.vlgmr.msrb.gmra.mxu1 %vm82_vm0, %v264_v58 }
 0x279   :  { %845 = vmatpush.msrb.mxu0 %v1516_v10  ;;  %865 = vmatpush.msrb.mxu1 %v1519_v12 }
 0x27b   :  { %846 = vmatpush.msrb.mxu0 %v1521_v13  ;;  %866 = vmatpush.msrb.mxu1 %v1523_v14 }
 0x27d   :  { %847 = vmatpush.msrb.mxu0 %v1527_v20  ;;  %867 = vmatpush.msrb.mxu1 %v1529_v21 }
 0x27f   :  { %848 = vmatpush.msrb.mxu0 %v1532_v22  ;;  %868 = vmatpush.msrb.mxu1 %v1535_v24 }
 0x281   :  { %849 = vmatpush.msrb.mxu0 %v1538_v28  ;;  %869 = vmatpush.msrb.mxu1 %v1541_v31 }
 0x283   :  { %850 = vmatpush.msrb.mxu0 %v1544_v32  ;;  %870 = vmatpush.msrb.mxu1 %v1547_v34 }
 0x285   :  { %851 = vmatpush.msrb.mxu0 %v1553_v37  ;;  %871 = vmatpush.msrb.mxu1 %v1556_v38 }
 0x287   :  { %852 = vmatpush.msrb.mxu0 %v1559_v40  ;;  %872 = vmatpush.msrb.mxu1 %v1562_v41 }
 0x2f5   :  { %v290_v59 = vpop.f32.mrf.mxu0  ;;  %v310_v61 = vpop.f32.mrf.mxu1 }
 0x2f6   :  { %v314_v63 = vadd.f32 %v313_v60, %v290_v59  ;;  %v316_v0 = vadd.f32 %v315_v62, %v310_v61 }
 0x2f8   :  { %1313 = vtanh.f32 %v314_v63  ;;  %v1263_v3 = vmul.f32 -1.442695, %v314_v63  ;;  %v1264_v4 = vmul.f32 -1.442695, %v316_v0 }
 0x2f9   :  { %1315 = vtanh.f32 %v316_v0 }
 0x2fa   :  { %1317 = vpow2.f32 %v1263_v3 }
 0x2fb   :  { %1319 = vpow2.f32 %v1264_v4  ;;  %v454_v4 = vld [vmem:[#allocation2 + $0x2] ss:$0 sm:$0xff] }
 0x2fe   :  { %v1314_v1 = vpop.eup %1313 }
 0x2ff   :  { %v1316_v2 = vpop.eup %1315  ;;  %343 = vrot.lane.b32.xlu0 %v1314_v1, %s1482_s3 }
 0x300   :  { %380 = vrot.lane.b32.xlu1 %v1316_v2, %s1482_s3  ;;  %v1318_v5 = vpop.eup %1317 }
 0x301   :  { %v1320_v6 = vpop.eup %1319  ;;  %v320_v7 = vadd.f32 1.0, %v1318_v5 }
 0x302   :  { %v361_v8 = vadd.f32 1.0, %v1320_v6  ;;  %v456_v6 = vld [vmem:[#allocation2 + $0xd] ss:$0 sm:$0xff] }
 0x303   :  { %1321 = vrcp.f32 %v320_v7  ;;  %v332_v27 = vand.u32 2147483648, %v320_v7  ;;  %vm326_vm14 = vweird.f32 %v320_v7  ;;  %v330_v30 = vand.u32 2147483647, %v320_v7 }
 0x304   :  { %1323 = vrcp.f32 %v361_v8  ;;  %v373_v29 = vand.u32 2147483648, %v361_v8  ;;  %vm367_vm15 = vweird.f32 %v361_v8  ;;  %v371_v33 = vand.u32 2147483647, %v361_v8 }
 0x305   :  { %v333_v39 = vor.u32 1.1754944e-38, %v332_v27  ;;  %vm331_vm3 = vcmp.eq.f32.partialorder %v330_v30, 8.507059e+37 }
 0x306   :  { %v374_v42 = vor.u32 1.1754944e-38, %v373_v29  ;;  %vm372_vm4 = vcmp.eq.f32.partialorder %v371_v33, 8.507059e+37 }
 0x309   :  { %v1322_v9 = vpop.eup %1321 }
 0x30a   :  { %v1324_v11 = vpop.eup %1323  ;;  %v322_v15 = vmul.f32 %v1322_v9, %v320_v7  ;;  %vm327_vm12 = vweird.f32 %v1322_v9 }
 0x30b   :  { %v363_v16 = vmul.f32 %v1324_v11, %v361_v8  ;;  %vm368_vm13 = vweird.f32 %v1324_v11  ;;  %vm328_vm1 = vmor %vm326_vm14, %vm327_vm12 }
 0x30c   :  { %v323_v17 = vsub.f32 1.0, %v322_v15  ;;  %vm369_vm2 = vmor %vm367_vm15, %vm368_vm13 }
 0x30d   :  { %v364_v18 = vsub.f32 1.0, %v363_v16 }
 0x30e   :  { %v324_v19 = vmul.f32 %v1322_v9, %v323_v17 }
 0x30f   :  { %v365_v23 = vmul.f32 %v1324_v11, %v364_v18 }
 0x310   :  { %v325_v25 = vadd.f32 %v1322_v9, %v324_v19 }
 0x311   :  { %v366_v26 = vadd.f32 %v1324_v11, %v365_v23 }
 0x312   :  { %v329_v35 = vsel %vm328_vm1, %v1322_v9, %v325_v25 }
 0x313   :  { %v370_v36 = vsel %vm369_vm2, %v1324_v11, %v366_v26  ;;  %v334_v44 = vsel %vm331_vm3, %v333_v39, %v329_v35 }
 0x314   :  { %v375_v46 = vsel %vm372_vm4, %v374_v42, %v370_v36  ;;  %v341_v50 = vmul.f32 %v339_v49, %v334_v44 }
 0x315   :  { %v378_v51 = vmul.f32 %v375_v46, %v1646_v55 }
 0x371   :  { %v344_v43 = vpop.permute.xlu0 %343 }
 0x372   :  { %v381_v45 = vpop.permute.xlu1 %380  ;;  %v346_v47 = vmul.f32 %v344_v43, %v334_v44 }
 0x373   :  { %v383_v48 = vmul.f32 %v381_v45, %v375_v46 }
 0x374   :  { %348 = vrot.lane.b32.xlu0 %v346_v47, %s1483_s28 }
 0x375   :  { %385 = vrot.lane.b32.xlu1 %v383_v48, %s1483_s28 }
 0x3e6   :  { %v349_v52 = vpop.permute.xlu0 %348 }
 0x3e7   :  { %v386_v53 = vpop.permute.xlu1 %385  ;;  %v351_v54 = vadd.f32 %v349_v52, %v341_v50 }
 0x3e8   :  { %v388_v56 = vadd.f32 %v386_v53, %v378_v51 }
 0x3e9   :  { %1325 = vtanh.f32 %v351_v54 }
 0x3ea   :  { %1327 = vtanh.f32 %v388_v56 }
 0x3ef   :  { %v1326_v57 = vpop.eup %1325 }
 0x3f0   :  { %v1328_v58 = vpop.eup %1327  ;;  %354 = vrot.lane.b32.xlu2 %v1326_v57, %s1482_s3 }
 0x3f1   :  { %391 = vrot.lane.b32.xlu0 %v1328_v58, %s1482_s3 }
 0x3f9   :  { %407 = vrot.lane.b32.xlu0 %v351_v54, %s1484_s29 }
 0x44a   :  { %v355_v59 = vpop.permute.xlu2 %354 }
 0x44b   :  { %v357_v60 = vmul.f32 %v355_v59, %v334_v44 }
 0x44d   :  { %396 = vrot.lane.b32.xlu1 %v357_v60, %s1483_s28 }
 0x463   :  { %v392_v61 = vpop.permute.xlu0 %391 }
 0x464   :  { %v394_v55 = vmul.f32 %v392_v61, %v375_v46 }
 0x466   :  { %401 = vrot.lane.b32.xlu2 %v394_v55, %s1482_s3 }
 0x46b   :  { %v408_v62 = vpop.permute.xlu0 %407 }
 0x46c   :  { %v1688_v63 = vsel %vm263_vm9, %v408_v62, %v388_v56 }
 0x46d   :  { %479 = vrot.lane.b32.xlu0 %v1688_v63, %s1483_s28 }
 0x4bf   :  { %v397_v0 = vpop.permute.xlu1 %396 }
 0x4c0   :  { %399 = vst.msk [vmem:[%s1886_s4 + $0x1] sm:$0x1] %vm255_vm10, %v397_v0  ;;  %v402_v1 = vpop.permute.xlu2 %401 }
 0x4c1   :  { %404 = vst.msk [vmem:[%s1886_s4 + $0x6] sm:$0x1] %vm261_vm11, %v402_v1  ;;  %v405_v2 = vsel %vm263_vm9, %v397_v0, %v402_v1 }
 0x4c2   :  { %1265 = vmatmul.msk.f32.vlgmr.msrb.gmra.mxu2 %vm82_vm0, %v405_v2  ;;  %1266 = vmatmul.msk.f32.vlgmr.msrb.gmra.mxu3 %vm82_vm0, %v405_v2 }
 0x4c3   :  { %986 = vmatpush.msrb.mxu2 %v1516_v10  ;;  %1006 = vmatpush.msrb.mxu3 %v1519_v12 }
 0x4c5   :  { %987 = vmatpush.msrb.mxu2 %v1521_v13  ;;  %1007 = vmatpush.msrb.mxu3 %v1523_v14 }
 0x4c7   :  { %988 = vmatpush.msrb.mxu2 %v1527_v20  ;;  %1008 = vmatpush.msrb.mxu3 %v1529_v21 }
 0x4c9   :  { %989 = vmatpush.msrb.mxu2 %v1532_v22  ;;  %1009 = vmatpush.msrb.mxu3 %v1535_v24 }
 0x4cb   :  { %990 = vmatpush.msrb.mxu2 %v1538_v28  ;;  %1010 = vmatpush.msrb.mxu3 %v1541_v31 }
 0x4cd   :  { %991 = vmatpush.msrb.mxu2 %v1544_v32  ;;  %1011 = vmatpush.msrb.mxu3 %v1547_v34 }
 0x4cf   :  { %992 = vmatpush.msrb.mxu2 %v1553_v37  ;;  %1012 = vmatpush.msrb.mxu3 %v1556_v38 }
 0x4d1   :  { %993 = vmatpush.msrb.mxu2 %v1559_v40  ;;  %1013 = vmatpush.msrb.mxu3 %v1562_v41 }
 0x4df   :  { %v480_v55 = vpop.permute.xlu0 %479 }
 0x545   :  { %v431_v3 = vpop.f32.mrf.mxu2  ;;  %v451_v5 = vpop.f32.mrf.mxu3 }
 0x546   :  { %v455_v7 = vadd.f32 %v454_v4, %v431_v3  ;;  %v457_v8 = vadd.f32 %v456_v6, %v451_v5 }
 0x548   :  { %1329 = vtanh.f32 %v455_v7  ;;  %v1268_v15 = vmul.f32 -1.442695, %v457_v8  ;;  %v1267_v19 = vmul.f32 -1.442695, %v455_v7 }
 0x549   :  { %1331 = vtanh.f32 %v457_v8 }
 0x54a   :  { %1333 = vpow2.f32 %v1268_v15 }
 0x54e   :  { %v1330_v9 = vpop.eup %1329 }
 0x54f   :  { %v1332_v11 = vpop.eup %1331  ;;  %484 = vrot.lane.b32.xlu1 %v1330_v9, %s1482_s3 }
 0x550   :  { %521 = vrot.lane.b32.xlu2 %v1332_v11, %s1482_s3  ;;  %v1334_v16 = vpop.eup %1333 }
 0x551   :  { %v502_v17 = vadd.f32 1.0, %v1334_v16 }
 0x553   :  { %1335 = vrcp.f32 %v502_v17  ;;  %v514_v33 = vand.u32 2147483648, %v502_v17  ;;  %vm508_vm6 = vweird.f32 %v502_v17  ;;  %v512_v35 = vand.u32 2147483647, %v502_v17 }
 0x554   :  { %1337 = vpow2.f32 %v1267_v19 }
 0x555   :  { %v515_v39 = vor.u32 1.1754944e-38, %v514_v33  ;;  %vm513_vm8 = vcmp.eq.f32.partialorder %v512_v35, 8.507059e+37 }
 0x559   :  { %v1336_v18 = vpop.eup %1335 }
 0x55a   :  { %v504_v23 = vmul.f32 %v1336_v18, %v502_v17  ;;  %v1338_v26 = vpop.eup %1337  ;;  %vm509_vm5 = vweird.f32 %v1336_v18 }
 0x55b   :  { %v461_v29 = vadd.f32 1.0, %v1338_v26  ;;  %vm510_vm7 = vmor %vm508_vm6, %vm509_vm5 }
 0x55c   :  { %v505_v25 = vsub.f32 1.0, %v504_v23 }
 0x55d   :  { %1339 = vrcp.f32 %v461_v29  ;;  %v473_v50 = vand.u32 2147483648, %v461_v29  ;;  %vm467_vm13 = vweird.f32 %v461_v29  ;;  %v471_v51 = vand.u32 2147483647, %v461_v29 }
 0x55e   :  { %v506_v27 = vmul.f32 %v1336_v18, %v505_v25 }
 0x55f   :  { %v474_v53 = vor.u32 1.1754944e-38, %v473_v50  ;;  %vm472_vm15 = vcmp.eq.f32.partialorder %v471_v51, 8.507059e+37 }
 0x560   :  { %v507_v30 = vadd.f32 %v1336_v18, %v506_v27 }
 0x562   :  { %v511_v36 = vsel %vm510_vm7, %v1336_v18, %v507_v30 }
 0x563   :  { %v516_v43 = vsel %vm513_vm8, %v515_v39, %v511_v36  ;;  %v1340_v44 = vpop.eup %1339 }
 0x564   :  { %v463_v46 = vmul.f32 %v1340_v44, %v461_v29  ;;  %vm468_vm12 = vweird.f32 %v1340_v44  ;;  %v519_v58 = vmul.f32 %v516_v43, %v1688_v63 }
 0x565   :  { %vm469_vm14 = vmor %vm467_vm13, %vm468_vm12 }
 0x566   :  { %v464_v47 = vsub.f32 1.0, %v463_v46 }
 0x568   :  { %v465_v48 = vmul.f32 %v1340_v44, %v464_v47 }
 0x56a   :  { %v466_v49 = vadd.f32 %v1340_v44, %v465_v48 }
 0x56c   :  { %v470_v52 = vsel %vm469_vm14, %v1340_v44, %v466_v49 }
 0x56d   :  { %v475_v56 = vsel %vm472_vm15, %v474_v53, %v470_v52 }
 0x56e   :  { %v482_v62 = vmul.f32 %v480_v55, %v475_v56 }
 0x5aa   :  { %v522_v42 = vpop.permute.xlu2 %521 }
 0x5ab   :  { %v524_v45 = vmul.f32 %v522_v42, %v516_v43 }
 0x5ad   :  { %526 = vrot.lane.b32.xlu2 %v524_v45, %s1483_s28 }
 0x5c1   :  { %v485_v54 = vpop.permute.xlu1 %484 }
 0x5c2   :  { %v487_v57 = vmul.f32 %v485_v54, %v475_v56 }
 0x5c4   :  { %489 = vrot.lane.b32.xlu1 %v487_v57, %s1483_s28 }
 0x607   :  { %v527_v59 = vpop.permute.xlu2 %526 }
 0x608   :  { %v529_v60 = vadd.f32 %v527_v59, %v519_v58 }
 0x60a   :  { %1341 = vtanh.f32 %v529_v60 }
 0x610   :  { %v1342_v61 = vpop.eup %1341 }
 0x611   :  { %532 = vrot.lane.b32.xlu1 %v1342_v61, %s1482_s3 }
 0x636   :  { %v490_v0 = vpop.permute.xlu1 %489 }
 0x637   :  { %v492_v1 = vadd.f32 %v490_v0, %v482_v62 }
 0x639   :  { %1343 = vtanh.f32 %v492_v1  ;;  %548 = vrot.lane.b32.xlu1 %v492_v1, %s1484_s29 }
 0x63f   :  { %v1344_v2 = vpop.eup %1343 }
 0x640   :  { %495 = vrot.lane.b32.xlu0 %v1344_v2, %s1482_s3 }
 0x683   :  { %v533_v3 = vpop.permute.xlu1 %532 }
 0x684   :  { %v535_v4 = vmul.f32 %v533_v3, %v516_v43 }
 0x686   :  { %542 = vrot.lane.b32.xlu0 %v535_v4, %s1482_s3 }
 0x6ab   :  { %v549_v63 = vpop.permute.xlu1 %548 }
 0x6ac   :  { %v1729_v5 = vsel %vm263_vm9, %v549_v63, %v529_v60  ;;  %v736_v63 = vld [vmem:[#allocation2 + $0x4] ss:$0 sm:$0xff] }
 0x6ad   :  { %620 = vrot.lane.b32.xlu1 %v1729_v5, %s1483_s28 }
 0x6b2   :  { %v496_v6 = vpop.permute.xlu0 %495 }
 0x6b3   :  { %v498_v7 = vmul.f32 %v496_v6, %v475_v56  ;;  %v738_v6 = vld [vmem:[#allocation2 + $0xb] ss:$0 sm:$0xff] }
 0x6b5   :  { %537 = vrot.lane.b32.xlu2 %v498_v7, %s1483_s28 }
 0x6f8   :  { %v543_v8 = vpop.permute.xlu0 %542 }
 0x6f9   :  { %545 = vst.msk [vmem:[%s1886_s4 + $0x5] sm:$0x1] %vm261_vm11, %v543_v8 }
 0x70f   :  { %v538_v9 = vpop.permute.xlu2 %537 }
 0x710   :  { %540 = vst.msk [vmem:[%s1886_s4 + $0x2] sm:$0x1] %vm255_vm10, %v538_v9  ;;  %v546_v11 = vsel %vm263_vm9, %v538_v9, %v543_v8 }
 0x711   :  { %1269 = vmatmul.msk.f32.vlgmr.msra.gmra.mxu0 %vm82_vm0, %v546_v11  ;;  %1270 = vmatmul.msk.f32.vlgmr.msra.gmra.mxu1 %vm82_vm0, %v546_v11 }
 0x712   :  { %1127 = vmatpush.msra.mxu0 %v1516_v10  ;;  %1147 = vmatpush.msra.mxu1 %v1519_v12  ;;  %v595_v12 = vld [vmem:[#allocation2 + $0x3] ss:$0 sm:$0xff] }
 0x714   :  { %1128 = vmatpush.msra.mxu0 %v1521_v13  ;;  %1148 = vmatpush.msra.mxu1 %v1523_v14  ;;  %v597_v14 = vld [vmem:[#allocation2 + $0xc] ss:$0 sm:$0xff] }
 0x716   :  { %1129 = vmatpush.msra.mxu0 %v1527_v20  ;;  %1149 = vmatpush.msra.mxu1 %v1529_v21 }
 0x718   :  { %1130 = vmatpush.msra.mxu0 %v1532_v22  ;;  %1150 = vmatpush.msra.mxu1 %v1535_v24 }
 0x71a   :  { %1131 = vmatpush.msra.mxu0 %v1538_v28  ;;  %1151 = vmatpush.msra.mxu1 %v1541_v31 }
 0x71c   :  { %1132 = vmatpush.msra.mxu0 %v1544_v32  ;;  %1152 = vmatpush.msra.mxu1 %v1547_v34 }
 0x71e   :  { %1133 = vmatpush.msra.mxu0 %v1553_v37  ;;  %1153 = vmatpush.msra.mxu1 %v1556_v38 }
 0x71f   :  { %v621_v49 = vpop.permute.xlu1 %620 }
 0x720   :  { %1134 = vmatpush.msra.mxu0 %v1559_v40  ;;  %1154 = vmatpush.msra.mxu1 %v1562_v41 }
 0x78e   :  { %v572_v10 = vpop.f32.mrf.mxu0  ;;  %v592_v13 = vpop.f32.mrf.mxu1 }
 0x78f   :  { %v596_v20 = vadd.f32 %v595_v12, %v572_v10  ;;  %v598_v21 = vadd.f32 %v597_v14, %v592_v13 }
 0x791   :  { %1345 = vtanh.f32 %v596_v20  ;;  %v1271_v28 = vmul.f32 -1.442695, %v596_v20  ;;  %v1272_v37 = vmul.f32 -1.442695, %v598_v21 }
 0x792   :  { %1347 = vtanh.f32 %v598_v21 }
 0x793   :  { %1349 = vpow2.f32 %v1271_v28 }
 0x797   :  { %v1346_v22 = vpop.eup %1345 }
 0x798   :  { %v1348_v24 = vpop.eup %1347  ;;  %625 = vrot.lane.b32.xlu2 %v1346_v22, %s1482_s3 }
 0x799   :  { %662 = vrot.lane.b32.xlu0 %v1348_v24, %s1482_s3  ;;  %v1350_v31 = vpop.eup %1349 }
 0x79a   :  { %v602_v32 = vadd.f32 1.0, %v1350_v31 }
 0x79c   :  { %1351 = vrcp.f32 %v602_v32  ;;  %v614_v18 = vand.u32 2147483648, %v602_v32  ;;  %vm608_vm2 = vweird.f32 %v602_v32  ;;  %v612_v19 = vand.u32 2147483647, %v602_v32 }
 0x79d   :  { %1353 = vpow2.f32 %v1272_v37 }
 0x79e   :  { %v615_v25 = vor.u32 1.1754944e-38, %v614_v18  ;;  %vm613_vm4 = vcmp.eq.f32.partialorder %v612_v19, 8.507059e+37 }
 0x7a2   :  { %v1352_v34 = vpop.eup %1351 }
 0x7a3   :  { %v604_v38 = vmul.f32 %v1352_v34, %v602_v32  ;;  %v1354_v15 = vpop.eup %1353  ;;  %vm609_vm1 = vweird.f32 %v1352_v34 }
 0x7a4   :  { %v643_v16 = vadd.f32 1.0, %v1354_v15  ;;  %vm610_vm3 = vmor %vm608_vm2, %vm609_vm1 }
 0x7a5   :  { %v605_v40 = vsub.f32 1.0, %v604_v38 }
 0x7a6   :  { %1355 = vrcp.f32 %v643_v16  ;;  %v655_v42 = vand.u32 2147483648, %v643_v16  ;;  %vm649_vm6 = vweird.f32 %v643_v16  ;;  %v653_v43 = vand.u32 2147483647, %v643_v16 }
 0x7a7   :  { %v606_v41 = vmul.f32 %v1352_v34, %v605_v40 }
 0x7a8   :  { %v656_v45 = vor.u32 1.1754944e-38, %v655_v42  ;;  %vm654_vm8 = vcmp.eq.f32.partialorder %v653_v43, 8.507059e+37 }
 0x7a9   :  { %v607_v17 = vadd.f32 %v1352_v34, %v606_v41 }
 0x7ab   :  { %v611_v23 = vsel %vm610_vm3, %v1352_v34, %v607_v17 }
 0x7ac   :  { %v616_v27 = vsel %vm613_vm4, %v615_v25, %v611_v23  ;;  %v1356_v30 = vpop.eup %1355 }
 0x7ad   :  { %v645_v33 = vmul.f32 %v1356_v30, %v643_v16  ;;  %vm650_vm5 = vweird.f32 %v1356_v30  ;;  %v623_v50 = vmul.f32 %v621_v49, %v616_v27 }
 0x7ae   :  { %vm651_vm7 = vmor %vm649_vm6, %vm650_vm5 }
 0x7af   :  { %v646_v35 = vsub.f32 1.0, %v645_v33 }
 0x7b1   :  { %v647_v36 = vmul.f32 %v1356_v30, %v646_v35 }
 0x7b3   :  { %v648_v39 = vadd.f32 %v1356_v30, %v647_v36 }
 0x7b5   :  { %v652_v44 = vsel %vm651_vm7, %v1356_v30, %v648_v39 }
 0x7b6   :  { %v657_v47 = vsel %vm654_vm8, %v656_v45, %v652_v44 }
 0x7b7   :  { %v660_v54 = vmul.f32 %v657_v47, %v1729_v5 }
 0x7f2   :  { %v626_v26 = vpop.permute.xlu2 %625 }
 0x7f3   :  { %v628_v29 = vmul.f32 %v626_v26, %v616_v27 }
 0x7f5   :  { %630 = vrot.lane.b32.xlu2 %v628_v29, %s1483_s28 }
 0x80b   :  { %v663_v46 = vpop.permute.xlu0 %662 }
 0x80c   :  { %v665_v48 = vmul.f32 %v663_v46, %v657_v47 }
 0x80e   :  { %667 = vrot.lane.b32.xlu0 %v665_v48, %s1483_s28 }
 0x84f   :  { %v631_v51 = vpop.permute.xlu2 %630 }
 0x850   :  { %v633_v52 = vadd.f32 %v631_v51, %v623_v50 }
 0x852   :  { %1357 = vtanh.f32 %v633_v52 }
 0x858   :  { %v1358_v53 = vpop.eup %1357 }
 0x859   :  { %636 = vrot.lane.b32.xlu1 %v1358_v53, %s1482_s3 }
 0x880   :  { %v668_v56 = vpop.permute.xlu0 %667 }
 0x881   :  { %v670_v57 = vadd.f32 %v668_v56, %v660_v54 }
 0x883   :  { %1359 = vtanh.f32 %v670_v57 }
 0x889   :  { %v1360_v58 = vpop.eup %1359 }
 0x88a   :  { %673 = vrot.lane.b32.xlu2 %v1360_v58, %s1482_s3 }
 0x892   :  { %689 = vrot.lane.b32.xlu2 %v633_v52, %s1484_s29 }
 0x8cb   :  { %v637_v59 = vpop.permute.xlu1 %636 }
 0x8cc   :  { %v639_v60 = vmul.f32 %v637_v59, %v616_v27 }
 0x8ce   :  { %678 = vrot.lane.b32.xlu0 %v639_v60, %s1483_s28 }
 0x8e4   :  { %v674_v61 = vpop.permute.xlu2 %673 }
 0x8e5   :  { %v676_v55 = vmul.f32 %v674_v61, %v657_v47  ;;  %v877_v61 = vld [vmem:[#allocation2 + $0x5] ss:$0 sm:$0xff] }
 0x8e7   :  { %683 = vrot.lane.b32.xlu1 %v676_v55, %s1482_s3 }
 0x8ec   :  { %v690_v62 = vpop.permute.xlu2 %689 }
 0x8ed   :  { %v1772_v0 = vsel %vm263_vm9, %v690_v62, %v670_v57  ;;  %v879_v62 = vld [vmem:[#allocation2 + $0xa] ss:$0 sm:$0xff] }
 0x8ee   :  { %761 = vrot.lane.b32.xlu2 %v1772_v0, %s1483_s28 }
 0x940   :  { %v679_v1 = vpop.permute.xlu0 %678 }
 0x941   :  { %681 = vst.msk [vmem:[%s1886_s4 + $0x3] sm:$0x1] %vm255_vm10, %v679_v1 }
 0x948   :  { %v762_v39 = vpop.permute.xlu2 %761 }
 0x959   :  { %v684_v2 = vpop.permute.xlu1 %683 }
 0x95a   :  { %686 = vst.msk [vmem:[%s1886_s4 + $0x4] sm:$0x1] %vm261_vm11, %v684_v2  ;;  %v687_v3 = vsel %vm263_vm9, %v679_v1, %v684_v2 }
 0x95b   :  { %1273 = vmatmul.msk.f32.vlgmr.msra.gmra.mxu2 %vm82_vm0, %v687_v3  ;;  %1274 = vmatmul.msk.f32.vlgmr.msra.gmra.mxu3 %vm82_vm0, %v687_v3 }
 0x9de   :  { %v713_v4 = vpop.f32.mrf.mxu2  ;;  %v733_v5 = vpop.f32.mrf.mxu3 }
 0x9df   :  { %v737_v7 = vadd.f32 %v736_v63, %v713_v4  ;;  %v739_v8 = vadd.f32 %v738_v6, %v733_v5 }
 0x9e1   :  { %1361 = vtanh.f32 %v737_v7  ;;  %v1275_v10 = vmul.f32 -1.442695, %v737_v7  ;;  %v1276_v12 = vmul.f32 -1.442695, %v739_v8 }
 0x9e2   :  { %1363 = vtanh.f32 %v739_v8 }
 0x9e3   :  { %1365 = vpow2.f32 %v1275_v10 }
 0x9e4   :  { %1367 = vpow2.f32 %v1276_v12 }
 0x9e7   :  { %v1362_v9 = vpop.eup %1361 }
 0x9e8   :  { %v1364_v11 = vpop.eup %1363  ;;  %766 = vrot.lane.b32.xlu0 %v1362_v9, %s1482_s3 }
 0x9e9   :  { %803 = vrot.lane.b32.xlu1 %v1364_v11, %s1482_s3  ;;  %v1366_v13 = vpop.eup %1365 }
 0x9ea   :  { %v1368_v14 = vpop.eup %1367  ;;  %v743_v20 = vadd.f32 1.0, %v1366_v13 }
 0x9eb   :  { %v784_v21 = vadd.f32 1.0, %v1368_v14 }
 0x9ec   :  { %1369 = vrcp.f32 %v743_v20  ;;  %v755_v15 = vand.u32 2147483648, %v743_v20  ;;  %vm749_vm14 = vweird.f32 %v743_v20  ;;  %v753_v17 = vand.u32 2147483647, %v743_v20 }
 0x9ed   :  { %1371 = vrcp.f32 %v784_v21  ;;  %v796_v16 = vand.u32 2147483648, %v784_v21  ;;  %vm790_vm15 = vweird.f32 %v784_v21  ;;  %v794_v18 = vand.u32 2147483647, %v784_v21 }
 0x9ee   :  { %v756_v25 = vor.u32 1.1754944e-38, %v755_v15  ;;  %vm754_vm3 = vcmp.eq.f32.partialorder %v753_v17, 8.507059e+37 }
 0x9ef   :  { %v797_v26 = vor.u32 1.1754944e-38, %v796_v16  ;;  %vm795_vm4 = vcmp.eq.f32.partialorder %v794_v18, 8.507059e+37 }
 0x9f2   :  { %v1370_v22 = vpop.eup %1369 }
 0x9f3   :  { %v1372_v24 = vpop.eup %1371  ;;  %v745_v28 = vmul.f32 %v1370_v22, %v743_v20  ;;  %vm750_vm12 = vweird.f32 %v1370_v22 }
 0x9f4   :  { %v786_v31 = vmul.f32 %v1372_v24, %v784_v21  ;;  %vm791_vm13 = vweird.f32 %v1372_v24  ;;  %vm751_vm1 = vmor %vm749_vm14, %vm750_vm12 }
 0x9f5   :  { %v746_v32 = vsub.f32 1.0, %v745_v28  ;;  %vm792_vm2 = vmor %vm790_vm15, %vm791_vm13 }
 0x9f6   :  { %v787_v34 = vsub.f32 1.0, %v786_v31 }
 0x9f7   :  { %v747_v37 = vmul.f32 %v1370_v22, %v746_v32 }
 0x9f8   :  { %v788_v38 = vmul.f32 %v1372_v24, %v787_v34 }
 0x9f9   :  { %v748_v40 = vadd.f32 %v1370_v22, %v747_v37 }
 0x9fa   :  { %v789_v41 = vadd.f32 %v1372_v24, %v788_v38 }
 0x9fb   :  { %v752_v19 = vsel %vm751_vm1, %v1370_v22, %v748_v40 }
 0x9fc   :  { %v793_v23 = vsel %vm792_vm2, %v1372_v24, %v789_v41  ;;  %v757_v29 = vsel %vm754_vm3, %v756_v25, %v752_v19 }
 0x9fd   :  { %v798_v33 = vsel %vm795_vm4, %v797_v26, %v793_v23  ;;  %v764_v42 = vmul.f32 %v762_v39, %v757_v29 }
 0x9fe   :  { %v801_v43 = vmul.f32 %v798_v33, %v1772_v0 }
 0xa5a   :  { %v767_v27 = vpop.permute.xlu0 %766 }
 0xa5b   :  { %v804_v30 = vpop.permute.xlu1 %803  ;;  %v769_v35 = vmul.f32 %v767_v27, %v757_v29 }
 0xa5c   :  { %v806_v36 = vmul.f32 %v804_v30, %v798_v33 }
 0xa5d   :  { %771 = vrot.lane.b32.xlu0 %v769_v35, %s1483_s28 }
 0xa5e   :  { %808 = vrot.lane.b32.xlu1 %v806_v36, %s1483_s28 }
 0xacf   :  { %v772_v44 = vpop.permute.xlu0 %771 }
 0xad0   :  { %v809_v45 = vpop.permute.xlu1 %808  ;;  %v774_v46 = vadd.f32 %v772_v44, %v764_v42 }
 0xad1   :  { %v811_v47 = vadd.f32 %v809_v45, %v801_v43 }
 0xad2   :  { %1373 = vtanh.f32 %v774_v46 }
 0xad3   :  { %1375 = vtanh.f32 %v811_v47 }
 0xad8   :  { %v1374_v48 = vpop.eup %1373 }
 0xad9   :  { %v1376_v49 = vpop.eup %1375  ;;  %777 = vrot.lane.b32.xlu2 %v1374_v48, %s1482_s3 }
 0xada   :  { %814 = vrot.lane.b32.xlu0 %v1376_v49, %s1482_s3 }
 0xae2   :  { %830 = vrot.lane.b32.xlu0 %v774_v46, %s1484_s29 }
 0xb33   :  { %v778_v50 = vpop.permute.xlu2 %777 }
 0xb34   :  { %v780_v51 = vmul.f32 %v778_v50, %v757_v29 }
 0xb36   :  { %819 = vrot.lane.b32.xlu1 %v780_v51, %s1483_s28 }
 0xb4c   :  { %v815_v52 = vpop.permute.xlu0 %814 }
 0xb4d   :  { %v817_v53 = vmul.f32 %v815_v52, %v798_v33  ;;  %v1018_v52 = vld [vmem:[#allocation2 + $0x6] ss:$0 sm:$0xff] }
 0xb4f   :  { %824 = vrot.lane.b32.xlu2 %v817_v53, %s1482_s3 }
 0xb54   :  { %v831_v54 = vpop.permute.xlu0 %830 }
 0xb55   :  { %v1798_v56 = vsel %vm263_vm9, %v831_v54, %v811_v47  ;;  %v1020_v54 = vld [vmem:[#allocation2 + $0x9] ss:$0 sm:$0xff] }
 0xb56   :  { %902 = vrot.lane.b32.xlu0 %v1798_v56, %s1483_s28 }
 0xba8   :  { %v820_v57 = vpop.permute.xlu1 %819 }
 0xba9   :  { %822 = vst.msk [vmem:[%s1886_s4 + $0x4] sm:$0x1] %vm255_vm10, %v820_v57  ;;  %v825_v58 = vpop.permute.xlu2 %824 }
 0xbaa   :  { %827 = vst.msk [vmem:[%s1886_s4 + $0x3] sm:$0x1] %vm261_vm11, %v825_v58  ;;  %v828_v59 = vsel %vm263_vm9, %v820_v57, %v825_v58 }
 0xbab   :  { %1277 = vmatmul.msk.f32.vlgmr.msrb.gmra.mxu0 %vm82_vm0, %v828_v59  ;;  %1278 = vmatmul.msk.f32.vlgmr.msrb.gmra.mxu1 %vm82_vm0, %v828_v59 }
 0xbc8   :  { %v903_v30 = vpop.permute.xlu0 %902 }
 0xc28   :  { %v854_v60 = vpop.f32.mrf.mxu0  ;;  %v874_v55 = vpop.f32.mrf.mxu1 }
 0xc29   :  { %v878_v0 = vadd.f32 %v877_v61, %v854_v60  ;;  %v880_v1 = vadd.f32 %v879_v62, %v874_v55 }
 0xc2b   :  { %1377 = vtanh.f32 %v878_v0  ;;  %v1280_v4 = vmul.f32 -1.442695, %v880_v1  ;;  %v1279_v7 = vmul.f32 -1.442695, %v878_v0 }
 0xc2c   :  { %1379 = vtanh.f32 %v880_v1 }
 0xc2d   :  { %1381 = vpow2.f32 %v1280_v4 }
 0xc31   :  { %v1378_v2 = vpop.eup %1377 }
 0xc32   :  { %v1380_v3 = vpop.eup %1379  ;;  %907 = vrot.lane.b32.xlu1 %v1378_v2, %s1482_s3 }
 0xc33   :  { %944 = vrot.lane.b32.xlu2 %v1380_v3, %s1482_s3  ;;  %v1382_v63 = vpop.eup %1381 }
 0xc34   :  { %v925_v5 = vadd.f32 1.0, %v1382_v63 }
 0xc36   :  { %1383 = vrcp.f32 %v925_v5  ;;  %v937_v14 = vand.u32 2147483648, %v925_v5  ;;  %vm931_vm6 = vweird.f32 %v925_v5  ;;  %v935_v20 = vand.u32 2147483647, %v925_v5 }
 0xc37   :  { %1385 = vpow2.f32 %v1279_v7 }
 0xc38   :  { %v938_v22 = vor.u32 1.1754944e-38, %v937_v14  ;;  %vm936_vm8 = vcmp.eq.f32.partialorder %v935_v20, 8.507059e+37 }
 0xc3c   :  { %v1384_v6 = vpop.eup %1383 }
 0xc3d   :  { %v927_v8 = vmul.f32 %v1384_v6, %v925_v5  ;;  %v1386_v11 = vpop.eup %1385  ;;  %vm932_vm5 = vweird.f32 %v1384_v6 }
 0xc3e   :  { %v884_v12 = vadd.f32 1.0, %v1386_v11  ;;  %vm933_vm7 = vmor %vm931_vm6, %vm932_vm5 }
 0xc3f   :  { %v928_v9 = vsub.f32 1.0, %v927_v8 }
 0xc40   :  { %1387 = vrcp.f32 %v884_v12  ;;  %v896_v41 = vand.u32 2147483648, %v884_v12  ;;  %vm890_vm13 = vweird.f32 %v884_v12  ;;  %v894_v15 = vand.u32 2147483647, %v884_v12 }
 0xc41   :  { %v929_v10 = vmul.f32 %v1384_v6, %v928_v9 }
 0xc42   :  { %v897_v17 = vor.u32 1.1754944e-38, %v896_v41  ;;  %vm895_vm15 = vcmp.eq.f32.partialorder %v894_v15, 8.507059e+37 }
 0xc43   :  { %v930_v13 = vadd.f32 %v1384_v6, %v929_v10 }
 0xc45   :  { %v934_v21 = vsel %vm933_vm7, %v1384_v6, %v930_v13 }
 0xc46   :  { %v939_v28 = vsel %vm936_vm8, %v938_v22, %v934_v21  ;;  %v1388_v31 = vpop.eup %1387 }
 0xc47   :  { %v886_v34 = vmul.f32 %v1388_v31, %v884_v12  ;;  %vm891_vm12 = vweird.f32 %v1388_v31  ;;  %v942_v25 = vmul.f32 %v939_v28, %v1798_v56 }
 0xc48   :  { %vm892_vm14 = vmor %vm890_vm13, %vm891_vm12 }
 0xc49   :  { %v887_v37 = vsub.f32 1.0, %v886_v34 }
 0xc4b   :  { %v888_v38 = vmul.f32 %v1388_v31, %v887_v37 }
 0xc4d   :  { %v889_v40 = vadd.f32 %v1388_v31, %v888_v38 }
 0xc4f   :  { %v893_v16 = vsel %vm892_vm14, %v1388_v31, %v889_v40 }
 0xc50   :  { %v898_v19 = vsel %vm895_vm15, %v897_v17, %v893_v16 }
 0xc51   :  { %v905_v33 = vmul.f32 %v903_v30, %v898_v19 }
 0xc8d   :  { %v945_v24 = vpop.permute.xlu2 %944 }
 0xc8e   :  { %v947_v32 = vmul.f32 %v945_v24, %v939_v28 }
 0xc90   :  { %949 = vrot.lane.b32.xlu2 %v947_v32, %s1483_s28 }
 0xca4   :  { %v908_v18 = vpop.permute.xlu1 %907 }
 0xca5   :  { %v910_v23 = vmul.f32 %v908_v18, %v898_v19 }
 0xca7   :  { %912 = vrot.lane.b32.xlu1 %v910_v23, %s1483_s28 }
 0xcea   :  { %v950_v26 = vpop.permute.xlu2 %949 }
 0xceb   :  { %v952_v27 = vadd.f32 %v950_v26, %v942_v25 }
 0xced   :  { %1389 = vtanh.f32 %v952_v27 }
 0xcf3   :  { %v1390_v29 = vpop.eup %1389 }
 0xcf4   :  { %955 = vrot.lane.b32.xlu1 %v1390_v29, %s1482_s3 }
 0xd19   :  { %v913_v35 = vpop.permute.xlu1 %912 }
 0xd1a   :  { %v915_v36 = vadd.f32 %v913_v35, %v905_v33 }
 0xd1c   :  { %1391 = vtanh.f32 %v915_v36  ;;  %971 = vrot.lane.b32.xlu1 %v915_v36, %s1484_s29 }
 0xd22   :  { %v1392_v39 = vpop.eup %1391 }
 0xd23   :  { %918 = vrot.lane.b32.xlu0 %v1392_v39, %s1482_s3 }
 0xd66   :  { %v956_v42 = vpop.permute.xlu1 %955 }
 0xd67   :  { %v958_v43 = vmul.f32 %v956_v42, %v939_v28 }
 0xd69   :  { %965 = vrot.lane.b32.xlu0 %v958_v43, %s1482_s3 }
 0xd8e   :  { %v972_v44 = vpop.permute.xlu1 %971 }
 0xd8f   :  { %v1823_v45 = vsel %vm263_vm9, %v972_v44, %v952_v27  ;;  %v1159_v44 = vld [vmem:[#allocation2 + $0x7] ss:$0 sm:$0xff] }
 0xd90   :  { %1043 = vrot.lane.b32.xlu1 %v1823_v45, %s1483_s28 }
 0xd95   :  { %v919_v46 = vpop.permute.xlu0 %918 }
 0xd96   :  { %v921_v47 = vmul.f32 %v919_v46, %v898_v19  ;;  %v1161_v46 = vld [vmem:[#allocation2 + $0x8] ss:$0 sm:$0xff] }
 0xd98   :  { %960 = vrot.lane.b32.xlu2 %v921_v47, %s1483_s28 }
 0xddb   :  { %v966_v48 = vpop.permute.xlu0 %965 }
 0xddc   :  { %968 = vst.msk [vmem:[%s1886_s4 + $0x2] sm:$0x1] %vm261_vm11, %v966_v48 }
 0xdf2   :  { %v961_v49 = vpop.permute.xlu2 %960 }
 0xdf3   :  { %963 = vst.msk [vmem:[%s1886_s4 + $0x5] sm:$0x1] %vm255_vm10, %v961_v49  ;;  %v969_v50 = vsel %vm263_vm9, %v961_v49, %v966_v48 }
 0xdf4   :  { %1281 = vmatmul.msk.f32.vlgmr.msrb.gmra.mxu2 %vm82_vm0, %v969_v50  ;;  %1282 = vmatmul.msk.f32.vlgmr.msrb.gmra.mxu3 %vm82_vm0, %v969_v50 }
 0xe02   :  { %v1044_v40 = vpop.permute.xlu1 %1043 }
 0xe77   :  { %v995_v51 = vpop.f32.mrf.mxu2  ;;  %v1015_v53 = vpop.f32.mrf.mxu3 }
 0xe78   :  { %v1019_v56 = vadd.f32 %v1018_v52, %v995_v51  ;;  %v1021_v57 = vadd.f32 %v1020_v54, %v1015_v53 }
 0xe7a   :  { %1393 = vtanh.f32 %v1019_v56  ;;  %v1283_v60 = vmul.f32 -1.442695, %v1019_v56  ;;  %v1284_v0 = vmul.f32 -1.442695, %v1021_v57 }
 0xe7b   :  { %1395 = vtanh.f32 %v1021_v57 }
 0xe7c   :  { %1397 = vpow2.f32 %v1283_v60 }
 0xe80   :  { %v1394_v58 = vpop.eup %1393 }
 0xe81   :  { %v1396_v59 = vpop.eup %1395  ;;  %1048 = vrot.lane.b32.xlu2 %v1394_v58, %s1482_s3 }
 0xe82   :  { %1085 = vrot.lane.b32.xlu0 %v1396_v59, %s1482_s3  ;;  %v1398_v61 = vpop.eup %1397 }
 0xe83   :  { %v1025_v55 = vadd.f32 1.0, %v1398_v61 }
 0xe85   :  { %1399 = vrcp.f32 %v1025_v55  ;;  %v1037_v6 = vand.u32 2147483648, %v1025_v55  ;;  %vm1031_vm2 = vweird.f32 %v1025_v55  ;;  %v1035_v7 = vand.u32 2147483647, %v1025_v55 }
 0xe86   :  { %1401 = vpow2.f32 %v1284_v0 }
 0xe87   :  { %v1038_v9 = vor.u32 1.1754944e-38, %v1037_v6  ;;  %vm1036_vm4 = vcmp.eq.f32.partialorder %v1035_v7, 8.507059e+37 }
 0xe8b   :  { %v1400_v62 = vpop.eup %1399 }
 0xe8c   :  { %v1027_v1 = vmul.f32 %v1400_v62, %v1025_v55  ;;  %v1402_v4 = vpop.eup %1401  ;;  %vm1032_vm1 = vweird.f32 %v1400_v62 }
 0xe8d   :  { %v1066_v63 = vadd.f32 1.0, %v1402_v4  ;;  %vm1033_vm3 = vmor %vm1031_vm2, %vm1032_vm1 }
 0xe8e   :  { %v1028_v2 = vsub.f32 1.0, %v1027_v1 }
 0xe8f   :  { %1403 = vrcp.f32 %v1066_v63  ;;  %v1078_v24 = vand.u32 2147483648, %v1066_v63  ;;  %vm1072_vm6 = vweird.f32 %v1066_v63  ;;  %v1076_v28 = vand.u32 2147483647, %v1066_v63 }
 0xe90   :  { %v1029_v3 = vmul.f32 %v1400_v62, %v1028_v2 }
 0xe91   :  { %v1079_v32 = vor.u32 1.1754944e-38, %v1078_v24  ;;  %vm1077_vm8 = vcmp.eq.f32.partialorder %v1076_v28, 8.507059e+37 }
 0xe92   :  { %v1030_v5 = vadd.f32 %v1400_v62, %v1029_v3 }
 0xe94   :  { %v1034_v8 = vsel %vm1033_vm3, %v1400_v62, %v1030_v5 }
 0xe95   :  { %v1039_v10 = vsel %vm1036_vm4, %v1038_v9, %v1034_v8  ;;  %v1404_v13 = vpop.eup %1403 }
 0xe96   :  { %v1068_v14 = vmul.f32 %v1404_v13, %v1066_v63  ;;  %vm1073_vm5 = vweird.f32 %v1404_v13  ;;  %v1046_v41 = vmul.f32 %v1044_v40, %v1039_v10 }
 0xe97   :  { %vm1074_vm7 = vmor %vm1072_vm6, %vm1073_vm5 }
 0xe98   :  { %v1069_v20 = vsub.f32 1.0, %v1068_v14 }
 0xe9a   :  { %v1070_v21 = vmul.f32 %v1404_v13, %v1069_v20 }
 0xe9c   :  { %v1071_v22 = vadd.f32 %v1404_v13, %v1070_v21 }
 0xe9e   :  { %v1075_v31 = vsel %vm1074_vm7, %v1404_v13, %v1071_v22 }
 0xe9f   :  { %v1080_v37 = vsel %vm1077_vm8, %v1079_v32, %v1075_v31 }
 0xea0   :  { %v1083_v18 = vmul.f32 %v1080_v37, %v1823_v45 }
 0xedb   :  { %v1049_v11 = vpop.permute.xlu2 %1048 }
 0xedc   :  { %v1051_v12 = vmul.f32 %v1049_v11, %v1039_v10 }
 0xede   :  { %1053 = vrot.lane.b32.xlu2 %v1051_v12, %s1483_s28 }
 0xef4   :  { %v1086_v34 = vpop.permute.xlu0 %1085 }
 0xef5   :  { %v1088_v38 = vmul.f32 %v1086_v34, %v1080_v37 }
 0xef7   :  { %1090 = vrot.lane.b32.xlu0 %v1088_v38, %s1483_s28 }
 0xf38   :  { %v1054_v15 = vpop.permute.xlu2 %1053 }
 0xf39   :  { %v1056_v16 = vadd.f32 %v1054_v15, %v1046_v41 }
 0xf3b   :  { %1405 = vtanh.f32 %v1056_v16 }
 0xf41   :  { %v1406_v17 = vpop.eup %1405 }
 0xf42   :  { %1059 = vrot.lane.b32.xlu1 %v1406_v17, %s1482_s3 }
 0xf69   :  { %v1091_v19 = vpop.permute.xlu0 %1090 }
 0xf6a   :  { %v1093_v23 = vadd.f32 %v1091_v19, %v1083_v18 }
 0xf6c   :  { %1407 = vtanh.f32 %v1093_v23 }
 0xf72   :  { %v1408_v25 = vpop.eup %1407 }
 0xf73   :  { %1096 = vrot.lane.b32.xlu2 %v1408_v25, %s1482_s3 }
 0xf7b   :  { %1112 = vrot.lane.b32.xlu2 %v1056_v16, %s1484_s29 }
 0xfb4   :  { %v1060_v26 = vpop.permute.xlu1 %1059 }
 0xfb5   :  { %v1062_v27 = vmul.f32 %v1060_v26, %v1039_v10 }
 0xfb7   :  { %1101 = vrot.lane.b32.xlu0 %v1062_v27, %s1483_s28 }
 0xfcd   :  { %v1097_v29 = vpop.permute.xlu2 %1096 }
 0xfce   :  { %v1099_v30 = vmul.f32 %v1097_v29, %v1080_v37 }
 0xfd0   :  { %1106 = vrot.lane.b32.xlu1 %v1099_v30, %s1482_s3 }
 0xfd5   :  { %v1113_v33 = vpop.permute.xlu2 %1112 }
 0xfd6   :  { %v1850_v35 = vsel %vm263_vm9, %v1113_v33, %v1093_v23 }
 0xfd7   :  { %1184 = vrot.lane.b32.xlu2 %v1850_v35, %s1483_s28 }
0x1029   :  { %v1102_v36 = vpop.permute.xlu0 %1101 }
0x102a   :  { %1104 = vst.msk [vmem:[%s1886_s4 + $0x6] sm:$0x1] %vm255_vm10, %v1102_v36 }
0x1031   :  { %v1185_v22 = vpop.permute.xlu2 %1184 }
0x1042   :  { %v1107_v39 = vpop.permute.xlu1 %1106 }
0x1043   :  { %1109 = vst.msk [vmem:[%s1886_s4 + $0x1] sm:$0x1] %vm261_vm11, %v1107_v39  ;;  %v1110_v42 = vsel %vm263_vm9, %v1102_v36, %v1107_v39 }
0x1044   :  { %1285 = vmatmul.msk.f32.vlgmr.msra.gmra.mxu0 %vm82_vm0, %v1110_v42  ;;  %1286 = vmatmul.msk.f32.vlgmr.msra.gmra.mxu1 %vm82_vm0, %v1110_v42 }
0x10c1   :  { %v1136_v43 = vpop.f32.mrf.mxu0  ;;  %v1156_v45 = vpop.f32.mrf.mxu1 }
0x10c2   :  { %v1160_v47 = vadd.f32 %v1159_v44, %v1136_v43  ;;  %v1162_v48 = vadd.f32 %v1161_v46, %v1156_v45 }
0x10c4   :  { %1409 = vtanh.f32 %v1160_v47  ;;  %v1287_v51 = vmul.f32 -1.442695, %v1160_v47  ;;  %v1288_v52 = vmul.f32 -1.442695, %v1162_v48 }
0x10c5   :  { %1411 = vtanh.f32 %v1162_v48 }
0x10c6   :  { %1413 = vpow2.f32 %v1287_v51 }
0x10c7   :  { %1415 = vpow2.f32 %v1288_v52 }
0x10ca   :  { %v1410_v49 = vpop.eup %1409 }
0x10cb   :  { %v1412_v50 = vpop.eup %1411  ;;  %1189 = vrot.lane.b32.xlu0 %v1410_v49, %s1482_s3 }
0x10cc   :  { %1226 = vrot.lane.b32.xlu1 %v1412_v50, %s1482_s3  ;;  %v1414_v53 = vpop.eup %1413 }
0x10cd   :  { %v1416_v54 = vpop.eup %1415  ;;  %v1166_v56 = vadd.f32 1.0, %v1414_v53 }
0x10ce   :  { %v1207_v57 = vadd.f32 1.0, %v1416_v54 }
0x10cf   :  { %1417 = vrcp.f32 %v1166_v56  ;;  %v1178_v4 = vand.u32 2147483648, %v1166_v56  ;;  %vm1172_vm12 = vweird.f32 %v1166_v56  ;;  %v1176_v5 = vand.u32 2147483647, %v1166_v56 }
0x10d0   :  { %1419 = vrcp.f32 %v1207_v57  ;;  %v1219_v63 = vand.u32 2147483648, %v1207_v57  ;;  %vm1213_vm13 = vweird.f32 %v1207_v57  ;;  %v1217_v6 = vand.u32 2147483647, %v1207_v57 }
0x10d1   :  { %v1179_v9 = vor.u32 1.1754944e-38, %v1178_v4  ;;  %vm1177_vm1 = vcmp.eq.f32.partialorder %v1176_v5, 8.507059e+37 }
0x10d2   :  { %v1220_v11 = vor.u32 1.1754944e-38, %v1219_v63  ;;  %vm1218_vm2 = vcmp.eq.f32.partialorder %v1217_v6, 8.507059e+37 }
0x10d5   :  { %v1418_v58 = vpop.eup %1417 }
0x10d6   :  { %v1420_v59 = vpop.eup %1419  ;;  %v1168_v60 = vmul.f32 %v1418_v58, %v1166_v56  ;;  %vm1173_vm0 = vweird.f32 %v1418_v58 }
0x10d7   :  { %v1209_v61 = vmul.f32 %v1420_v59, %v1207_v57  ;;  %vm1214_vm9 = vweird.f32 %v1420_v59  ;;  %vm1174_vm14 = vmor %vm1172_vm12, %vm1173_vm0 }
0x10d8   :  { %v1169_v55 = vsub.f32 1.0, %v1168_v60  ;;  %vm1215_vm15 = vmor %vm1213_vm13, %vm1214_vm9 }
0x10d9   :  { %v1210_v62 = vsub.f32 1.0, %v1209_v61 }
0x10da   :  { %v1170_v0 = vmul.f32 %v1418_v58, %v1169_v55 }
0x10db   :  { %v1211_v1 = vmul.f32 %v1420_v59, %v1210_v62 }
0x10dc   :  { %v1171_v2 = vadd.f32 %v1418_v58, %v1170_v0 }
0x10dd   :  { %v1212_v3 = vadd.f32 %v1420_v59, %v1211_v1 }
0x10de   :  { %v1175_v7 = vsel %vm1174_vm14, %v1418_v58, %v1171_v2 }
0x10df   :  { %v1216_v8 = vsel %vm1215_vm15, %v1420_v59, %v1212_v3  ;;  %v1180_v12 = vsel %vm1177_vm1, %v1179_v9, %v1175_v7 }
0x10e0   :  { %v1221_v14 = vsel %vm1218_vm2, %v1220_v11, %v1216_v8  ;;  %v1187_v24 = vmul.f32 %v1185_v22, %v1180_v12 }
0x10e1   :  { %v1224_v28 = vmul.f32 %v1221_v14, %v1850_v35 }
0x113d   :  { %v1190_v10 = vpop.permute.xlu0 %1189 }
0x113e   :  { %v1227_v13 = vpop.permute.xlu1 %1226  ;;  %v1192_v20 = vmul.f32 %v1190_v10, %v1180_v12 }
0x113f   :  { %v1229_v21 = vmul.f32 %v1227_v13, %v1221_v14 }
0x1140   :  { %1194 = vrot.lane.b32.xlu0 %v1192_v20, %s1483_s28 }
0x1141   :  { %1231 = vrot.lane.b32.xlu1 %v1229_v21, %s1483_s28 }
0x11b2   :  { %v1195_v31 = vpop.permute.xlu0 %1194 }
0x11b3   :  { %v1232_v32 = vpop.permute.xlu1 %1231  ;;  %v1197_v34 = vadd.f32 %v1195_v31, %v1187_v24 }
0x11b4   :  { %v1234_v37 = vadd.f32 %v1232_v32, %v1224_v28 }
0x11b5   :  { %1421 = vtanh.f32 %v1197_v34 }
0x11b6   :  { %1423 = vtanh.f32 %v1234_v37 }
0x11bb   :  { %v1422_v38 = vpop.eup %1421 }
0x11bc   :  { %v1424_v40 = vpop.eup %1423  ;;  %1200 = vrot.lane.b32.xlu2 %v1422_v38, %s1482_s3 }
0x11bd   :  { %1237 = vrot.lane.b32.xlu0 %v1424_v40, %s1482_s3 }
0x1216   :  { %v1201_v41 = vpop.permute.xlu2 %1200 }
0x1217   :  { %v1203_v15 = vmul.f32 %v1201_v41, %v1180_v12 }
0x1219   :  { %1242 = vrot.lane.b32.xlu1 %v1203_v15, %s1483_s28 }
0x122f   :  { %v1238_v16 = vpop.permute.xlu0 %1237 }
0x1230   :  { %v1240_v17 = vmul.f32 %v1238_v16, %v1221_v14 }
0x1232   :  { %1247 = vrot.lane.b32.xlu2 %v1240_v17, %s1482_s3 }
0x128b   :  { %v1243_v18 = vpop.permute.xlu1 %1242 }
0x128c   :  { %1245 = vst.msk [vmem:[%s1886_s4 + $0x7] sm:$0x1] %vm255_vm10, %v1243_v18  ;;  %v1248_v19 = vpop.permute.xlu2 %1247 }
0x128d   :  { %1250 = vst.msk [vmem:[%s1886_s4] sm:$0x1] %vm261_vm11, %v1248_v19 }
0x128e   :  { %1255 = vsyncpa [#allocation4], 1 }
0x128f   :  { %1256 = vsyncpa [#allocation6], 1 }

</bundles_post_ra>
